<compile_context>
chip_gen: v6e
topology: v6e:2x2x1
jax: 0.10.0
libtpu: 0.0.40
codegen_flags: <defaults>
</compile_context>

<pallas_src>
import functools

import numpy as np

import jax
import jax.numpy as jnp
from jax import lax
from jax.experimental import pallas as pl
from jax.experimental.pallas import tpu as pltpu

LEAKY_SLOPE = 0.1
BN_EPS = 1e-5
VMEM_LIMIT = 32 * 1024 * 1024   # explicit scoped-VMEM cap, safe on v5e/v6e/v7x


def _lrelu(x):
    # LeakyReLU(0.1) as a single max (2 VPU ops instead of cmp+mul+select).
    return jnp.maximum(x, LEAKY_SLOPE * x)


# ---------------------------------------------------------------------------
# Kernel A: query / key / value projections, computed once per position.
# Layout: channels on sublanes, positions on lanes.
# ---------------------------------------------------------------------------
def _project_kernel(x_ref, kvg_ref,
                    wq1_ref, bq1_ref, wq2_ref, bq2_ref,
                    wkv1_ref, wk2_ref, bk2_ref,
                    q_out, k_out, vp_out, *, ct):
    x = x_ref[...]                                                 # (C, T) bf16

    # Query path: conv1x1+BN+act twice; matmul_norm 1/sqrt(Ct) folded into wq2.
    q1 = _lrelu(jnp.dot(wq1_ref[...], x,
                        preferred_element_type=jnp.float32) + bq1_ref[...])
    q = _lrelu(jnp.dot(wq2_ref[...], q1.astype(jnp.bfloat16),
                       preferred_element_type=jnp.float32) + bq2_ref[...])
    q_out[...] = q.astype(q_out.dtype)

    # Key / value first projections fused into one (2Ct, C) @ (C, T) matmul;
    # the x_global contribution (constant per batch) is precomputed in kvg.
    kv1 = _lrelu(jnp.dot(wkv1_ref[...], x,
                         preferred_element_type=jnp.float32) + kvg_ref[...])
    k = _lrelu(jnp.dot(wk2_ref[...], kv1[:ct].astype(jnp.bfloat16),
                       preferred_element_type=jnp.float32) + bk2_ref[...])
    k_out[...] = k.astype(k_out.dtype)

    # Value + appended ones-row so the flash kernel gets l from the PV matmul.
    v = kv1[ct:]                                                   # (Ct, T)
    ones = jnp.ones((1, v.shape[1]), jnp.float32)
    vp_out[...] = jnp.concatenate([v, ones], axis=0).astype(vp_out.dtype)


# ---------------------------------------------------------------------------
# Kernel B: flash-style attention over L.  s[k, q] layout keeps softmax stats
# as (1, TQ) lane vectors; the ones-row of Vp makes row Ct of acc the softmax
# denominator, so no explicit sum(p) is needed.
# ---------------------------------------------------------------------------
def _flash_kernel(q_ref, k_ref, vp_ref, wo_ref, bo_ref, out_ref,
                  m_sc, acc_sc, *, ct):
    ki = pl.program_id(2)

    @pl.when(ki == 0)
    def _():
        m_sc[...] = jnp.full(m_sc.shape, -jnp.inf, jnp.float32)
        acc_sc[...] = jnp.zeros(acc_sc.shape, jnp.float32)

    # sim[t_k, t_q] = sum_c k[c, t_k] * q[c, t_q]
    s = lax.dot_general(k_ref[...], q_ref[...],
                        (((0,), (0,)), ((), ())),
                        preferred_element_type=jnp.float32)        # (TK, TQ)

    m_prev = m_sc[...]
    m_new = jnp.maximum(m_prev, jnp.max(s, axis=0, keepdims=True))  # (1, TQ)
    alpha = jnp.exp(m_prev - m_new)
    p = jnp.exp(s - m_new)                                         # (TK, TQ) f32
    acc_sc[...] = alpha * acc_sc[...] + jnp.dot(
        vp_ref[...], p.astype(jnp.bfloat16),
        preferred_element_type=jnp.float32)                        # (Ct+1, TQ)
    m_sc[...] = m_new

    @pl.when(ki == pl.num_programs(2) - 1)
    def _():
        a = acc_sc[...]
        # Deferred normalization: one EUP reciprocal on the (1, TQ) denom row.
        ctx = a[:ct] * pl.reciprocal(a[ct:], approx=True)          # (Ct, TQ)
        out = jnp.dot(wo_ref[...], ctx.astype(jnp.bfloat16),
                      preferred_element_type=jnp.float32) + bo_ref[...]
        out_ref[...] = _lrelu(out).astype(out_ref.dtype)


# ---------------------------------------------------------------------------
# Kernel C: bottleneck Conv3d(2C->C, k=3, p=1, bias=False) + BN + LeakyReLU.
# Grid point (n, t) produces Td output depth slices (C, Td*HW).  Inputs: one
# center chunk + two halo slices per stream (depth borders gated in-kernel).
# ---------------------------------------------------------------------------
def _bottleneck_kernel(xc_ref, xm_ref, xp_ref, ac_ref, am_ref, ap_ref,
                       wpack_ref, mask_ref, shift_ref, out_ref, *, td, H, W):
    hw = H * W
    lhw = td * hw
    t = pl.program_id(1)
    gp = jnp.where(t > 0, 1.0, 0.0).astype(jnp.bfloat16)
    gn = jnp.where(t < pl.num_programs(1) - 1, 1.0, 0.0).astype(jnp.bfloat16)

    xc = xc_ref[...]                                               # (C, Td*HW)
    ac = ac_ref[...]
    xm = xm_ref[...] * gp                                          # (C, HW)
    xp = xp_ref[...] * gn
    am = am_ref[...] * gp
    ap = ap_ref[...] * gn

    # Depth-shifted views of the chunk (bf16 end-to-end, no f32 round trip).
    if td > 1:
        x_minus = jnp.concatenate([xm, xc[:, :lhw - hw]], axis=1)
        x_plus = jnp.concatenate([xc[:, hw:], xp], axis=1)
        a_minus = jnp.concatenate([am, ac[:, :lhw - hw]], axis=1)
        a_plus = jnp.concatenate([ac[:, hw:], ap], axis=1)
    else:
        x_minus, x_plus, a_minus, a_plus = xm, xp, am, ap

    stack = jnp.concatenate([x_minus, xc, x_plus, a_minus, ac, a_plus],
                            axis=0)                                # (6C, Td*HW)

    # Center tap (kh=1, kw=1): no shift, no border mask -> initializes acc.
    acc = jnp.dot(wpack_ref[4], stack, preferred_element_type=jnp.float32)
    for kh in range(3):
        for kw in range(3):
            ti = kh * 3 + kw
            if ti == 4:
                continue
            tap = jnp.dot(wpack_ref[ti], stack,
                          preferred_element_type=jnp.float32)      # (C, Td*HW)
            off = (kh - 1) * W + (kw - 1)
            # out[l] needs tap[l + off] -> rotate by -off along lanes; H/W
            # border (and cross-slice wrap) contributions are zeroed by mask.
            tap = pltpu.roll(tap, (-off) % lhw, 1)
            acc = acc + mask_ref[ti] * tap

    y = acc + shift_ref[...]            # BN scale folded into wpack already
    out_ref[...] = _lrelu(y).astype(out_ref.dtype)


# ---------------------------------------------------------------------------
# Parameter construction (deterministic, synthetic).  (Cout, Cin) weights so
# forward is W @ x in the lane-dense layout.
# ---------------------------------------------------------------------------
def init_params(key, feats_channels, transform_channels):
    C, Ct = feats_channels, transform_channels
    ks = jax.random.split(key, 16)

    def dense(k, cout, cin):
        return jax.random.normal(k, (cout, cin), jnp.float32) / jnp.sqrt(cin)

    def bias(k, cout):
        return 0.01 * jax.random.normal(k, (cout, 1), jnp.float32)

    p = {}
    p['wq1'], p['bq1'] = dense(ks[0], Ct, C), bias(ks[1], Ct)
    p['wq2'], p['bq2'] = dense(ks[2], Ct, Ct), bias(ks[3], Ct)
    p['wk1g'] = dense(ks[4], Ct, C)      # acts on x_global (concat chans 0..C)
    p['wk1x'] = dense(ks[5], Ct, C)      # acts on x        (concat chans C..2C)
    p['bk1'] = bias(ks[6], Ct)
    p['wk2'], p['bk2'] = dense(ks[7], Ct, Ct), bias(ks[8], Ct)
    p['wv1g'] = dense(ks[9], Ct, C)
    p['wv1x'] = dense(ks[10], Ct, C)
    p['bv1'] = bias(ks[11], Ct)
    p['wo'], p['bo'] = dense(ks[12], C, Ct), bias(ks[13], C)
    # bottleneck Conv3d weight, PyTorch layout (Cout, Cin=2C, kd, kh, kw)
    p['wconv'] = (jax.random.normal(ks[14], (C, 2 * C, 3, 3, 3), jnp.float32)
                  / jnp.sqrt(27.0 * 2 * C))
    p['bn_scale'] = jnp.ones((C, 1), jnp.float32)    # gamma
    p['bn_shift'] = jnp.zeros((C, 1), jnp.float32)   # beta
    return p


def _const_spec(shape):
    nd = len(shape)
    return pl.BlockSpec(shape, lambda *_, _nd=nd: (0,) * _nd)


# ---------------------------------------------------------------------------
# Forward wrapper
# ---------------------------------------------------------------------------
def image_level_context(x, params, transform_channels, *,
                        q_tile=512, k_tile=512, proj_tile=512, d_tile=4):
    """x: (N, C, D, H, W) float32, PyTorch NCDHW convention."""
    N, C, D, H, W = x.shape
    HW = H * W
    L = D * HW
    Ct = transform_channels
    assert HW % 128 == 0, "H*W must be a multiple of 128 for lane-dense tiling"
    tq = min(q_tile, L)
    tk = min(k_tile, L)
    tp = min(proj_tile, L)
    for tt in (tq, tk, tp):
        assert tt % 128 == 0 and L % tt == 0

    td = max(1, min(d_tile, D))
    while D % td:
        td -= 1
    n_dc = D // td

    x_cl = x.reshape(N, C, L)                   # channels on sublanes, L on lanes
    x_bf = x_cl.astype(jnp.bfloat16)

    # AdaptiveAvgPool3d((1,1,1)) + trilinear upsample back to (D,H,W) is an
    # exact per-channel mean broadcast.
    xg = jnp.mean(x_cl, axis=2, keepdims=True)  # (N, C, 1) f32

    s = float(1.0 / np.sqrt(1.0 + BN_EPS))      # eval-mode BN fold
    qscale = float(Ct) ** -0.5
    bf = lambda a: a.astype(jnp.bfloat16)

    wq1 = bf(params['wq1'] * s); bq1 = params['bq1'] * s
    # 1/sqrt(Ct) folded into the 2nd query conv (LeakyReLU is pos.-homogeneous).
    wq2 = bf(params['wq2'] * (s * qscale)); bq2 = params['bq2'] * (s * qscale)
    wk2 = bf(params['wk2'] * s); bk2 = params['bk2'] * s
    wo = bf(params['wo'] * s); bo = params['bo'] * s

    # Fused key/value first projections; x_global part precomputed per batch.
    wkv1_x = bf(jnp.concatenate([params['wk1x'], params['wv1x']], axis=0) * s)
    wkv1_g = jnp.concatenate([params['wk1g'], params['wv1g']], axis=0) * s
    bkv1 = jnp.concatenate([params['bk1'], params['bv1']], axis=0) * s
    kvg = jnp.einsum('oc,ncx->nox', wkv1_g, xg) + bkv1[None]       # (N, 2Ct, 1)

    proj_weights = [wq1, bq1, wq2, bq2, wkv1_x, wk2, bk2]

    # ---- Kernel A: Q / K / V(+ones) projections, once per position ----
    q_all, k_all, vp_all = pl.pallas_call(
        functools.partial(_project_kernel, ct=Ct),
        out_shape=(jax.ShapeDtypeStruct((N, Ct, L), jnp.bfloat16),
                   jax.ShapeDtypeStruct((N, Ct, L), jnp.bfloat16),
                   jax.ShapeDtypeStruct((N, Ct + 1, L), jnp.bfloat16)),
        grid=(N, L // tp),
        in_specs=[pl.BlockSpec((None, C, tp), lambda n, i: (n, 0, i)),
                  pl.BlockSpec((None, 2 * Ct, 1), lambda n, i: (n, 0, 0))]
                 + [_const_spec(w.shape) for w in proj_weights],
        out_specs=(pl.BlockSpec((None, Ct, tp), lambda n, i: (n, 0, i)),
                   pl.BlockSpec((None, Ct, tp), lambda n, i: (n, 0, i)),
                   pl.BlockSpec((None, Ct + 1, tp), lambda n, i: (n, 0, i))),
        compiler_params=pltpu.CompilerParams(
            dimension_semantics=("parallel", "parallel"),
            vmem_limit_bytes=VMEM_LIMIT),
    )(x_bf, kvg, *proj_weights)

    # ---- Kernel B: flash attention + output projection ----
    attn = pl.pallas_call(
        functools.partial(_flash_kernel, ct=Ct),
        out_shape=jax.ShapeDtypeStruct((N, C, L), jnp.bfloat16),
        grid=(N, L // tq, L // tk),
        in_specs=[pl.BlockSpec((None, Ct, tq), lambda n, qi, ki: (n, 0, qi)),
                  pl.BlockSpec((None, Ct, tk), lambda n, qi, ki: (n, 0, ki)),
                  pl.BlockSpec((None, Ct + 1, tk), lambda n, qi, ki: (n, 0, ki)),
                  _const_spec(wo.shape), _const_spec(bo.shape)],
        out_specs=pl.BlockSpec((None, C, tq), lambda n, qi, ki: (n, 0, qi)),
        scratch_shapes=[pltpu.VMEM((1, tq), jnp.float32),        # running max
                        pltpu.VMEM((Ct + 1, tq), jnp.float32)],  # acc (+l row)
        compiler_params=pltpu.CompilerParams(
            dimension_semantics=("parallel", "parallel", "arbitrary"),
            vmem_limit_bytes=VMEM_LIMIT),
    )(q_all, k_all, vp_all, wo, bo)

    # ---- Kernel C: bottleneck on [x, feats_il], depth-chunked ----
    wc = params['wconv']                        # (Cout, 2C, 3, 3, 3)

    def pack(part):                             # (Cout, C, kd, kh, kw) -> (9, Cout, 3C)
        return part.transpose(3, 4, 0, 2, 1).reshape(9, C, 3 * C)

    bn_gain = params['bn_scale'][:, 0] * s      # gamma / sqrt(var+eps), folded
    wpack = jnp.concatenate([pack(wc[:, :C]), pack(wc[:, C:])], axis=2)  # (9,C,6C)
    wpack = bf(wpack * bn_gain[None, :, None])
    shift = params['bn_shift']                  # beta, (C, 1)

    # H/W-border validity masks per (kh, kw) tap, tiled across the depth chunk.
    masks = np.zeros((9, 1, HW), np.float32)
    hh, ww = np.meshgrid(np.arange(H), np.arange(W), indexing='ij')
    for kh in range(3):
        for kw in range(3):
            ok = ((hh + kh - 1 >= 0) & (hh + kh - 1 < H) &
                  (ww + kw - 1 >= 0) & (ww + kw - 1 < W))
            masks[kh * 3 + kw, 0] = ok.reshape(-1).astype(np.float32)
    masks = jnp.asarray(np.tile(masks, (1, 1, td)))     # (9, 1, td*HW)

    def center_spec():
        return pl.BlockSpec((None, C, td * HW), lambda n, t: (n, 0, t))

    def prev_spec():
        return pl.BlockSpec((None, C, HW),
                            lambda n, t: (n, 0, jnp.maximum(t * td - 1, 0)))

    def next_spec():
        return pl.BlockSpec((None, C, HW),
                            lambda n, t: (n, 0, jnp.minimum((t + 1) * td, D - 1)))

    out = pl.pallas_call(
        functools.partial(_bottleneck_kernel, td=td, H=H, W=W),
        out_shape=jax.ShapeDtypeStruct((N, C, L), x.dtype),
        grid=(N, n_dc),
        in_specs=[center_spec(), prev_spec(), next_spec(),
                  center_spec(), prev_spec(), next_spec(),
                  _const_spec(wpack.shape), _const_spec(masks.shape),
                  _const_spec(shift.shape)],
        out_specs=pl.BlockSpec((None, C, td * HW), lambda n, t: (n, 0, t)),
        compiler_params=pltpu.CompilerParams(
            dimension_semantics=("parallel", "parallel"),
            vmem_limit_bytes=VMEM_LIMIT),
    )(x_bf, x_bf, x_bf, attn, attn, attn, wpack, masks, shift)

    return out.reshape(N, C, D, H, W)


if __name__ == "__main__":
    feats_channels = 8
    transform_channels = 16
    N, D, H, W = 2, 4, 8, 16          # H*W = 128 -> lane-dense blocks

    key = jax.random.PRNGKey(0)
    kx, kp = jax.random.split(key)
    x = jax.random.normal(kx, (N, feats_channels, D, H, W), jnp.float32)
    params = init_params(kp, feats_channels, transform_channels)

    fwd = jax.jit(functools.partial(image_level_context,
                                    transform_channels=transform_channels,
                                    d_tile=2))          # exercise the halo path
    y = jax.block_until_ready(fwd(x, params))
    assert y.shape == (N, feats_channels, D, H, W), y.shape
    assert bool(jnp.all(jnp.isfinite(y)))
    print("KERNEL_OK")
</pallas_src>

<mosaic_0001>
module attributes {stable_mosaic.version = 11 : i64} {
  func.func @_project_kernel(%arg0: i32, %arg1: i32, %arg2: memref<1x8x512xbf16, #tpu.memory_space<vmem>>, %arg3: memref<1x32x1xf32, #tpu.memory_space<vmem>>, %arg4: memref<16x8xbf16, #tpu.memory_space<vmem>>, %arg5: memref<16x1xf32, #tpu.memory_space<vmem>>, %arg6: memref<16x16xbf16, #tpu.memory_space<vmem>>, %arg7: memref<16x1xf32, #tpu.memory_space<vmem>>, %arg8: memref<32x8xbf16, #tpu.memory_space<vmem>>, %arg9: memref<16x16xbf16, #tpu.memory_space<vmem>>, %arg10: memref<16x1xf32, #tpu.memory_space<vmem>>, %arg11: memref<1x16x512xbf16, #tpu.memory_space<vmem>>, %arg12: memref<1x16x512xbf16, #tpu.memory_space<vmem>>, %arg13: memref<1x17x512xbf16, #tpu.memory_space<vmem>>) attributes {dimension_semantics = [#tpu.dimension_semantics<parallel>, #tpu.dimension_semantics<parallel>], iteration_bounds = array<i64: 2, 1>, scalar_prefetch = 0 : i64, scratch_operands = 0 : i64, tpu.core_type = #tpu.core_type<tc>, window_params = [{transform_indices = @transform_0, window_bounds = array<i64: 1, 8, 512>}, {transform_indices = @transform_1, window_bounds = array<i64: 1, 32, 1>}, {pipeline_mode = #tpu.pipeline_mode<synchronous>, transform_indices = @transform_2, window_bounds = array<i64: 16, 8>}, {pipeline_mode = #tpu.pipeline_mode<synchronous>, transform_indices = @transform_3, window_bounds = array<i64: 16, 1>}, {pipeline_mode = #tpu.pipeline_mode<synchronous>, transform_indices = @transform_4, window_bounds = array<i64: 16, 16>}, {pipeline_mode = #tpu.pipeline_mode<synchronous>, transform_indices = @transform_5, window_bounds = array<i64: 16, 1>}, {pipeline_mode = #tpu.pipeline_mode<synchronous>, transform_indices = @transform_6, window_bounds = array<i64: 32, 8>}, {pipeline_mode = #tpu.pipeline_mode<synchronous>, transform_indices = @transform_7, window_bounds = array<i64: 16, 16>}, {pipeline_mode = #tpu.pipeline_mode<synchronous>, transform_indices = @transform_8, window_bounds = array<i64: 16, 1>}, {transform_indices = @transform_9, window_bounds = array<i64: 1, 16, 512>}, {transform_indices = @transform_10, window_bounds = array<i64: 1, 16, 512>}, {transform_indices = @transform_11, window_bounds = array<i64: 1, 17, 512>}]} {
    %c0 = arith.constant 0 : index
    %c0_0 = arith.constant 0 : index
    %c0_1 = arith.constant 0 : index
    %0 = vector.load %arg2[%c0, %c0_0, %c0_1] : memref<1x8x512xbf16, #tpu.memory_space<vmem>>, vector<1x8x512xbf16>
    %1 = vector.shape_cast %0 : vector<1x8x512xbf16> to vector<8x512xbf16>
    %c0_2 = arith.constant 0 : index
    %c0_3 = arith.constant 0 : index
    %2 = vector.load %arg4[%c0_2, %c0_3] : memref<16x8xbf16, #tpu.memory_space<vmem>>, vector<16x8xbf16>
    %cst = arith.constant dense<0.000000e+00> : vector<16x512xf32>
    %3 = tpu.matmul %2, %1, %cst {dimension_numbers = #tpu.dot_dimension_numbers<[1], [0], [0], [1], [0, 0, 1, 1], [], []>} : vector<16x8xbf16>, vector<8x512xbf16>, vector<16x512xf32> -> vector<16x512xf32>
    %c0_4 = arith.constant 0 : index
    %c0_5 = arith.constant 0 : index
    %4 = vector.load %arg5[%c0_4, %c0_5] : memref<16x1xf32, #tpu.memory_space<vmem>>, vector<16x1xf32>
    %5 = vector.broadcast %4 : vector<16x1xf32> to vector<16x512xf32>
    %6 = arith.addf %3, %5 : vector<16x512xf32>
    %cst_6 = arith.constant 1.000000e-01 : f32
    %7 = vector.broadcast %cst_6 : f32 to vector<16x512xf32>
    %8 = arith.mulf %7, %6 : vector<16x512xf32>
    %9 = arith.maximumf %6, %8 : vector<16x512xf32>
    %c0_7 = arith.constant 0 : index
    %c0_8 = arith.constant 0 : index
    %10 = vector.load %arg6[%c0_7, %c0_8] : memref<16x16xbf16, #tpu.memory_space<vmem>>, vector<16x16xbf16>
    %11 = arith.truncf %9 : vector<16x512xf32> to vector<16x512xbf16>
    %cst_9 = arith.constant dense<0.000000e+00> : vector<16x512xf32>
    %12 = tpu.matmul %10, %11, %cst_9 {dimension_numbers = #tpu.dot_dimension_numbers<[1], [0], [0], [1], [0, 0, 1, 1], [], []>} : vector<16x16xbf16>, vector<16x512xbf16>, vector<16x512xf32> -> vector<16x512xf32>
    %c0_10 = arith.constant 0 : index
    %c0_11 = arith.constant 0 : index
    %13 = vector.load %arg7[%c0_10, %c0_11] : memref<16x1xf32, #tpu.memory_space<vmem>>, vector<16x1xf32>
    %14 = vector.broadcast %13 : vector<16x1xf32> to vector<16x512xf32>
    %15 = arith.addf %12, %14 : vector<16x512xf32>
    %cst_12 = arith.constant 1.000000e-01 : f32
    %16 = vector.broadcast %cst_12 : f32 to vector<16x512xf32>
    %17 = arith.mulf %16, %15 : vector<16x512xf32>
    %18 = arith.maximumf %15, %17 : vector<16x512xf32>
    %19 = arith.truncf %18 : vector<16x512xf32> to vector<16x512xbf16>
    %c0_13 = arith.constant 0 : index
    %c0_14 = arith.constant 0 : index
    %c0_15 = arith.constant 0 : index
    %20 = vector.load %arg11[%c0_13, %c0_14, %c0_15] : memref<1x16x512xbf16, #tpu.memory_space<vmem>>, vector<1x16x512xbf16>
    %21 = vector.shape_cast %20 : vector<1x16x512xbf16> to vector<16x512xbf16>
    %22 = vector.shape_cast %19 : vector<16x512xbf16> to vector<1x16x512xbf16>
    tpu.vector_store %arg11[%c0_13, %c0_14, %c0_15], %22 {strides = array<i32>} : memref<1x16x512xbf16, #tpu.memory_space<vmem>>, vector<1x16x512xbf16>,
    %c0_16 = arith.constant 0 : index
    %c0_17 = arith.constant 0 : index
    %23 = vector.load %arg8[%c0_16, %c0_17] : memref<32x8xbf16, #tpu.memory_space<vmem>>, vector<32x8xbf16>
    %cst_18 = arith.constant dense<0.000000e+00> : vector<32x512xf32>
    %24 = tpu.matmul %23, %1, %cst_18 {dimension_numbers = #tpu.dot_dimension_numbers<[1], [0], [0], [1], [0, 0, 1, 1], [], []>} : vector<32x8xbf16>, vector<8x512xbf16>, vector<32x512xf32> -> vector<32x512xf32>
    %c0_19 = arith.constant 0 : index
    %c0_20 = arith.constant 0 : index
    %c0_21 = arith.constant 0 : index
    %25 = vector.load %arg3[%c0_19, %c0_20, %c0_21] : memref<1x32x1xf32, #tpu.memory_space<vmem>>, vector<1x32x1xf32>
    %26 = vector.shape_cast %25 : vector<1x32x1xf32> to vector<32x1xf32>
    %27 = vector.broadcast %26 : vector<32x1xf32> to vector<32x512xf32>
    %28 = arith.addf %24, %27 : vector<32x512xf32>
    %cst_22 = arith.constant 1.000000e-01 : f32
    %29 = vector.broadcast %cst_22 : f32 to vector<32x512xf32>
    %30 = arith.mulf %29, %28 : vector<32x512xf32>
    %31 = arith.maximumf %28, %30 : vector<32x512xf32>
    %c0_23 = arith.constant 0 : index
    %c0_24 = arith.constant 0 : index
    %32 = vector.load %arg9[%c0_23, %c0_24] : memref<16x16xbf16, #tpu.memory_space<vmem>>, vector<16x16xbf16>
    %33 = vector.extract_strided_slice %31 {offsets = [0, 0], sizes = [16, 512], strides = [1, 1]} : vector<32x512xf32> to vector<16x512xf32>
    %34 = arith.truncf %33 : vector<16x512xf32> to vector<16x512xbf16>
    %cst_25 = arith.constant dense<0.000000e+00> : vector<16x512xf32>
    %35 = tpu.matmul %32, %34, %cst_25 {dimension_numbers = #tpu.dot_dimension_numbers<[1], [0], [0], [1], [0, 0, 1, 1], [], []>} : vector<16x16xbf16>, vector<16x512xbf16>, vector<16x512xf32> -> vector<16x512xf32>
    %c0_26 = arith.constant 0 : index
    %c0_27 = arith.constant 0 : index
    %36 = vector.load %arg10[%c0_26, %c0_27] : memref<16x1xf32, #tpu.memory_space<vmem>>, vector<16x1xf32>
    %37 = vector.broadcast %36 : vector<16x1xf32> to vector<16x512xf32>
    %38 = arith.addf %35, %37 : vector<16x512xf32>
    %cst_28 = arith.constant 1.000000e-01 : f32
    %39 = vector.broadcast %cst_28 : f32 to vector<16x512xf32>
    %40 = arith.mulf %39, %38 : vector<16x512xf32>
    %41 = arith.maximumf %38, %40 : vector<16x512xf32>
    %42 = arith.truncf %41 : vector<16x512xf32> to vector<16x512xbf16>
    %c0_29 = arith.constant 0 : index
    %c0_30 = arith.constant 0 : index
    %c0_31 = arith.constant 0 : index
    %43 = vector.load %arg12[%c0_29, %c0_30, %c0_31] : memref<1x16x512xbf16, #tpu.memory_space<vmem>>, vector<1x16x512xbf16>
    %44 = vector.shape_cast %43 : vector<1x16x512xbf16> to vector<16x512xbf16>
    %45 = vector.shape_cast %42 : vector<16x512xbf16> to vector<1x16x512xbf16>
    tpu.vector_store %arg12[%c0_29, %c0_30, %c0_31], %45 {strides = array<i32>} : memref<1x16x512xbf16, #tpu.memory_space<vmem>>, vector<1x16x512xbf16>,
    %46 = vector.extract_strided_slice %31 {offsets = [16, 0], sizes = [16, 512], strides = [1, 1]} : vector<32x512xf32> to vector<16x512xf32>
    %cst_32 = arith.constant 1.000000e+00 : f32
    %47 = vector.broadcast %cst_32 : f32 to vector<1x512xf32>
    %48 = tpu.concatenate %46, %47 in 0 : vector<16x512xf32>, vector<1x512xf32> -> vector<17x512xf32>
    %49 = arith.truncf %48 : vector<17x512xf32> to vector<17x512xbf16>
    %c0_33 = arith.constant 0 : index
    %c0_34 = arith.constant 0 : index
    %c0_35 = arith.constant 0 : index
    %50 = vector.load %arg13[%c0_33, %c0_34, %c0_35] : memref<1x17x512xbf16, #tpu.memory_space<vmem>>, vector<1x17x512xbf16>
    %51 = vector.shape_cast %50 : vector<1x17x512xbf16> to vector<17x512xbf16>
    %52 = vector.shape_cast %49 : vector<17x512xbf16> to vector<1x17x512xbf16>
    tpu.vector_store %arg13[%c0_33, %c0_34, %c0_35], %52 {strides = array<i32>} : memref<1x17x512xbf16, #tpu.memory_space<vmem>>, vector<1x17x512xbf16>,
    return
  }
  func.func @transform_0(%arg0: i32, %arg1: i32) -> (i32, i32, i32) {
    %c0_i32 = arith.constant 0 : i32
    %c0_i32_0 = arith.constant 0 : i32
    return %arg0, %c0_i32, %arg1 : i32, i32, i32
  }
  func.func @transform_1(%arg0: i32, %arg1: i32) -> (i32, i32, i32) {
    %c0_i32 = arith.constant 0 : i32
    %c0_i32_0 = arith.constant 0 : i32
    %c0_i32_1 = arith.constant 0 : i32
    return %arg0, %c0_i32, %c0_i32_0 : i32, i32, i32
  }
  func.func @transform_2(%arg0: i32, %arg1: i32) -> (i32, i32) {
    %c0_i32 = arith.constant 0 : i32
    %c0_i32_0 = arith.constant 0 : i32
    %c0_i32_1 = arith.constant 0 : i32
    return %c0_i32, %c0_i32_0 : i32, i32
  }
  func.func @transform_3(%arg0: i32, %arg1: i32) -> (i32, i32) {
    %c0_i32 = arith.constant 0 : i32
    %c0_i32_0 = arith.constant 0 : i32
    %c0_i32_1 = arith.constant 0 : i32
    return %c0_i32, %c0_i32_0 : i32, i32
  }
  func.func @transform_4(%arg0: i32, %arg1: i32) -> (i32, i32) {
    %c0_i32 = arith.constant 0 : i32
    %c0_i32_0 = arith.constant 0 : i32
    %c0_i32_1 = arith.constant 0 : i32
    return %c0_i32, %c0_i32_0 : i32, i32
  }
  func.func @transform_5(%arg0: i32, %arg1: i32) -> (i32, i32) {
    %c0_i32 = arith.constant 0 : i32
    %c0_i32_0 = arith.constant 0 : i32
    %c0_i32_1 = arith.constant 0 : i32
    return %c0_i32, %c0_i32_0 : i32, i32
  }
  func.func @transform_6(%arg0: i32, %arg1: i32) -> (i32, i32) {
    %c0_i32 = arith.constant 0 : i32
    %c0_i32_0 = arith.constant 0 : i32
    %c0_i32_1 = arith.constant 0 : i32
    return %c0_i32, %c0_i32_0 : i32, i32
  }
  func.func @transform_7(%arg0: i32, %arg1: i32) -> (i32, i32) {
    %c0_i32 = arith.constant 0 : i32
    %c0_i32_0 = arith.constant 0 : i32
    %c0_i32_1 = arith.constant 0 : i32
    return %c0_i32, %c0_i32_0 : i32, i32
  }
  func.func @transform_8(%arg0: i32, %arg1: i32) -> (i32, i32) {
    %c0_i32 = arith.constant 0 : i32
    %c0_i32_0 = arith.constant 0 : i32
    %c0_i32_1 = arith.constant 0 : i32
    return %c0_i32, %c0_i32_0 : i32, i32
  }
  func.func @transform_9(%arg0: i32, %arg1: i32) -> (i32, i32, i32) {
    %c0_i32 = arith.constant 0 : i32
    %c0_i32_0 = arith.constant 0 : i32
    return %arg0, %c0_i32, %arg1 : i32, i32, i32
  }
  func.func @transform_10(%arg0: i32, %arg1: i32) -> (i32, i32, i32) {
    %c0_i32 = arith.constant 0 : i32
    %c0_i32_0 = arith.constant 0 : i32
    return %arg0, %c0_i32, %arg1 : i32, i32, i32
  }
  func.func @transform_11(%arg0: i32, %arg1: i32) -> (i32, i32, i32) {
    %c0_i32 = arith.constant 0 : i32
    %c0_i32_0 = arith.constant 0 : i32
    return %arg0, %c0_i32, %arg1 : i32, i32, i32
  }
}

module attributes {stable_mosaic.version = 11 : i64} {
  func.func @_flash_kernel(%arg0: i32, %arg1: i32, %arg2: i32, %arg3: memref<1x16x512xbf16, #tpu.memory_space<vmem>>, %arg4: memref<1x16x512xbf16, #tpu.memory_space<vmem>>, %arg5: memref<1x17x512xbf16, #tpu.memory_space<vmem>>, %arg6: memref<8x16xbf16, #tpu.memory_space<vmem>>, %arg7: memref<8x1xf32, #tpu.memory_space<vmem>>, %arg8: memref<1x8x512xbf16, #tpu.memory_space<vmem>>, %arg9: memref<1x512xf32, #tpu.memory_space<vmem>>, %arg10: memref<17x512xf32, #tpu.memory_space<vmem>>) attributes {dimension_semantics = [#tpu.dimension_semantics<parallel>, #tpu.dimension_semantics<parallel>, #tpu.dimension_semantics<arbitrary>], iteration_bounds = array<i64: 2, 1, 1>, scalar_prefetch = 0 : i64, scratch_operands = 2 : i64, tpu.core_type = #tpu.core_type<tc>, window_params = [{transform_indices = @transform_0, window_bounds = array<i64: 1, 16, 512>}, {transform_indices = @transform_1, window_bounds = array<i64: 1, 16, 512>}, {transform_indices = @transform_2, window_bounds = array<i64: 1, 17, 512>}, {pipeline_mode = #tpu.pipeline_mode<synchronous>, transform_indices = @transform_3, window_bounds = array<i64: 8, 16>}, {pipeline_mode = #tpu.pipeline_mode<synchronous>, transform_indices = @transform_4, window_bounds = array<i64: 8, 1>}, {transform_indices = @transform_5, window_bounds = array<i64: 1, 8, 512>}]} {
    %c0_i32 = arith.constant 0 : i32
    %0 = arith.cmpi eq, %arg2, %c0_i32 : i32
    %1 = arith.extui %0 : i1 to i32
    %c0_i32_0 = arith.constant 0 : i32
    %2 = arith.cmpi ne, %1, %c0_i32_0 : i32
    scf.if %2 {
      %cst_21 = arith.constant 0xFF800000 : f32
      %30 = vector.broadcast %cst_21 : f32 to vector<1x512xf32>
      %c0_22 = arith.constant 0 : index
      %c0_23 = arith.constant 0 : index
      %31 = vector.load %arg9[%c0_22, %c0_23] : memref<1x512xf32, #tpu.memory_space<vmem>>, vector<1x512xf32>
      tpu.vector_store %arg9[%c0_22, %c0_23], %30 {strides = array<i32>} : memref<1x512xf32, #tpu.memory_space<vmem>>, vector<1x512xf32>,
      %cst_24 = arith.constant 0.000000e+00 : f32
      %32 = vector.broadcast %cst_24 : f32 to vector<17x512xf32>
      %c0_25 = arith.constant 0 : index
      %c0_26 = arith.constant 0 : index
      %33 = vector.load %arg10[%c0_25, %c0_26] : memref<17x512xf32, #tpu.memory_space<vmem>>, vector<17x512xf32>
      tpu.vector_store %arg10[%c0_25, %c0_26], %32 {strides = array<i32>} : memref<17x512xf32, #tpu.memory_space<vmem>>, vector<17x512xf32>,
    } else {
    }
    %c0 = arith.constant 0 : index
    %c0_1 = arith.constant 0 : index
    %c0_2 = arith.constant 0 : index
    %3 = vector.load %arg4[%c0, %c0_1, %c0_2] : memref<1x16x512xbf16, #tpu.memory_space<vmem>>, vector<1x16x512xbf16>
    %4 = vector.shape_cast %3 : vector<1x16x512xbf16> to vector<16x512xbf16>
    %c0_3 = arith.constant 0 : index
    %c0_4 = arith.constant 0 : index
    %c0_5 = arith.constant 0 : index
    %5 = vector.load %arg3[%c0_3, %c0_4, %c0_5] : memref<1x16x512xbf16, #tpu.memory_space<vmem>>, vector<1x16x512xbf16>
    %6 = vector.shape_cast %5 : vector<1x16x512xbf16> to vector<16x512xbf16>
    %cst = arith.constant dense<0.000000e+00> : vector<512x512xf32>
    %7 = tpu.matmul %4, %6, %cst {dimension_numbers = #tpu.dot_dimension_numbers<[0], [0], [1], [1], [0, 1, 1, 1], [], []>} : vector<16x512xbf16>, vector<16x512xbf16>, vector<512x512xf32> -> vector<512x512xf32>
    %c0_6 = arith.constant 0 : index
    %c0_7 = arith.constant 0 : index
    %8 = vector.load %arg9[%c0_6, %c0_7] : memref<1x512xf32, #tpu.memory_space<vmem>>, vector<1x512xf32>
    %cst_8 = arith.constant dense<0xFF800000> : vector<512xf32>
    %9 = vector.multi_reduction <maximumf>, %7, %cst_8 [0] : vector<512x512xf32> to vector<512xf32>
    %10 = vector.shape_cast %9 : vector<512xf32> to vector<1x512xf32>
    %11 = arith.maximumf %8, %10 : vector<1x512xf32>
    %12 = arith.subf %8, %11 : vector<1x512xf32>
    %13 = math.exp %12 : vector<1x512xf32>
    %14 = vector.broadcast %11 : vector<1x512xf32> to vector<512x512xf32>
    %15 = arith.subf %7, %14 : vector<512x512xf32>
    %16 = math.exp %15 : vector<512x512xf32>
    %c0_9 = arith.constant 0 : index
    %c0_10 = arith.constant 0 : index
    %17 = vector.load %arg10[%c0_9, %c0_10] : memref<17x512xf32, #tpu.memory_space<vmem>>, vector<17x512xf32>
    %18 = vector.broadcast %13 : vector<1x512xf32> to vector<17x512xf32>
    %19 = arith.mulf %18, %17 : vector<17x512xf32>
    %c0_11 = arith.constant 0 : index
    %c0_12 = arith.constant 0 : index
    %c0_13 = arith.constant 0 : index
    %20 = vector.load %arg5[%c0_11, %c0_12, %c0_13] : memref<1x17x512xbf16, #tpu.memory_space<vmem>>, vector<1x17x512xbf16>
    %21 = vector.shape_cast %20 : vector<1x17x512xbf16> to vector<17x512xbf16>
    %22 = arith.truncf %16 : vector<512x512xf32> to vector<512x512xbf16>
    %cst_14 = arith.constant dense<0.000000e+00> : vector<17x512xf32>
    %23 = tpu.matmul %21, %22, %cst_14 {dimension_numbers = #tpu.dot_dimension_numbers<[1], [0], [0], [1], [0, 0, 1, 1], [], []>} : vector<17x512xbf16>, vector<512x512xbf16>, vector<17x512xf32> -> vector<17x512xf32>
    %24 = arith.addf %19, %23 : vector<17x512xf32>
    %c0_15 = arith.constant 0 : index
    %c0_16 = arith.constant 0 : index
    %25 = vector.load %arg10[%c0_15, %c0_16] : memref<17x512xf32, #tpu.memory_space<vmem>>, vector<17x512xf32>
    tpu.vector_store %arg10[%c0_15, %c0_16], %24 {strides = array<i32>} : memref<17x512xf32, #tpu.memory_space<vmem>>, vector<17x512xf32>,
    %c0_17 = arith.constant 0 : index
    %c0_18 = arith.constant 0 : index
    %26 = vector.load %arg9[%c0_17, %c0_18] : memref<1x512xf32, #tpu.memory_space<vmem>>, vector<1x512xf32>
    tpu.vector_store %arg9[%c0_17, %c0_18], %11 {strides = array<i32>} : memref<1x512xf32, #tpu.memory_space<vmem>>, vector<1x512xf32>,
    %c0_i32_19 = arith.constant 0 : i32
    %27 = arith.cmpi eq, %arg2, %c0_i32_19 : i32
    %28 = arith.extui %27 : i1 to i32
    %c0_i32_20 = arith.constant 0 : i32
    %29 = arith.cmpi ne, %28, %c0_i32_20 : i32
    scf.if %29 {
      %c0_21 = arith.constant 0 : index
      %c0_22 = arith.constant 0 : index
      %30 = vector.load %arg10[%c0_21, %c0_22] : memref<17x512xf32, #tpu.memory_space<vmem>>, vector<17x512xf32>
      %31 = vector.extract_strided_slice %30 {offsets = [0, 0], sizes = [16, 512], strides = [1, 1]} : vector<17x512xf32> to vector<16x512xf32>
      %32 = vector.extract_strided_slice %30 {offsets = [16, 0], sizes = [1, 512], strides = [1, 1]} : vector<17x512xf32> to vector<1x512xf32>
      %33 = tpu.reciprocal %32 {approx = true} : vector<1x512xf32> -> vector<1x512xf32>
      %34 = vector.broadcast %33 : vector<1x512xf32> to vector<16x512xf32>
      %35 = arith.mulf %31, %34 : vector<16x512xf32>
      %c0_23 = arith.constant 0 : index
      %c0_24 = arith.constant 0 : index
      %36 = vector.load %arg6[%c0_23, %c0_24] : memref<8x16xbf16, #tpu.memory_space<vmem>>, vector<8x16xbf16>
      %37 = arith.truncf %35 : vector<16x512xf32> to vector<16x512xbf16>
      %cst_25 = arith.constant dense<0.000000e+00> : vector<8x512xf32>
      %38 = tpu.matmul %36, %37, %cst_25 {dimension_numbers = #tpu.dot_dimension_numbers<[1], [0], [0], [1], [0, 0, 1, 1], [], []>} : vector<8x16xbf16>, vector<16x512xbf16>, vector<8x512xf32> -> vector<8x512xf32>
      %c0_26 = arith.constant 0 : index
      %c0_27 = arith.constant 0 : index
      %39 = vector.load %arg7[%c0_26, %c0_27] : memref<8x1xf32, #tpu.memory_space<vmem>>, vector<8x1xf32>
      %40 = vector.broadcast %39 : vector<8x1xf32> to vector<8x512xf32>
      %41 = arith.addf %38, %40 : vector<8x512xf32>
      %cst_28 = arith.constant 1.000000e-01 : f32
      %42 = vector.broadcast %cst_28 : f32 to vector<8x512xf32>
      %43 = arith.mulf %42, %41 : vector<8x512xf32>
      %44 = arith.maximumf %41, %43 : vector<8x512xf32>
      %45 = arith.truncf %44 : vector<8x512xf32> to vector<8x512xbf16>
      %c0_29 = arith.constant 0 : index
      %c0_30 = arith.constant 0 : index
      %c0_31 = arith.constant 0 : index
      %46 = vector.load %arg8[%c0_29, %c0_30, %c0_31] : memref<1x8x512xbf16, #tpu.memory_space<vmem>>, vector<1x8x512xbf16>
      %47 = vector.shape_cast %46 : vector<1x8x512xbf16> to vector<8x512xbf16>
      %48 = vector.shape_cast %45 : vector<8x512xbf16> to vector<1x8x512xbf16>
      tpu.vector_store %arg8[%c0_29, %c0_30, %c0_31], %48 {strides = array<i32>} : memref<1x8x512xbf16, #tpu.memory_space<vmem>>, vector<1x8x512xbf16>,
    } else {
    }
    return
  }
  func.func @transform_0(%arg0: i32, %arg1: i32, %arg2: i32) -> (i32, i32, i32) {
    %c0_i32 = arith.constant 0 : i32
    %c0_i32_0 = arith.constant 0 : i32
    return %arg0, %c0_i32, %arg1 : i32, i32, i32
  }
  func.func @transform_1(%arg0: i32, %arg1: i32, %arg2: i32) -> (i32, i32, i32) {
    %c0_i32 = arith.constant 0 : i32
    %c0_i32_0 = arith.constant 0 : i32
    return %arg0, %c0_i32, %arg2 : i32, i32, i32
  }
  func.func @transform_2(%arg0: i32, %arg1: i32, %arg2: i32) -> (i32, i32, i32) {
    %c0_i32 = arith.constant 0 : i32
    %c0_i32_0 = arith.constant 0 : i32
    return %arg0, %c0_i32, %arg2 : i32, i32, i32
  }
  func.func @transform_3(%arg0: i32, %arg1: i32, %arg2: i32) -> (i32, i32) {
    %c0_i32 = arith.constant 0 : i32
    %c0_i32_0 = arith.constant 0 : i32
    %c0_i32_1 = arith.constant 0 : i32
    return %c0_i32, %c0_i32_0 : i32, i32
  }
  func.func @transform_4(%arg0: i32, %arg1: i32, %arg2: i32) -> (i32, i32) {
    %c0_i32 = arith.constant 0 : i32
    %c0_i32_0 = arith.constant 0 : i32
    %c0_i32_1 = arith.constant 0 : i32
    return %c0_i32, %c0_i32_0 : i32, i32
  }
  func.func @transform_5(%arg0: i32, %arg1: i32, %arg2: i32) -> (i32, i32, i32) {
    %c0_i32 = arith.constant 0 : i32
    %c0_i32_0 = arith.constant 0 : i32
    return %arg0, %c0_i32, %arg1 : i32, i32, i32
  }
}

module attributes {stable_mosaic.version = 11 : i64} {
  func.func @_bottleneck_kernel(%arg0: i32, %arg1: i32, %arg2: memref<1x8x256xbf16, #tpu.memory_space<vmem>>, %arg3: memref<1x8x128xbf16, #tpu.memory_space<vmem>>, %arg4: memref<1x8x128xbf16, #tpu.memory_space<vmem>>, %arg5: memref<1x8x256xbf16, #tpu.memory_space<vmem>>, %arg6: memref<1x8x128xbf16, #tpu.memory_space<vmem>>, %arg7: memref<1x8x128xbf16, #tpu.memory_space<vmem>>, %arg8: memref<9x8x48xbf16, #tpu.memory_space<vmem>>, %arg9: memref<9x1x256xf32, #tpu.memory_space<vmem>>, %arg10: memref<8x1xf32, #tpu.memory_space<vmem>>, %arg11: memref<1x8x256xf32, #tpu.memory_space<vmem>>) attributes {dimension_semantics = [#tpu.dimension_semantics<parallel>, #tpu.dimension_semantics<parallel>], iteration_bounds = array<i64: 2, 2>, scalar_prefetch = 0 : i64, scratch_operands = 0 : i64, tpu.core_type = #tpu.core_type<tc>, window_params = [{transform_indices = @transform_0, window_bounds = array<i64: 1, 8, 256>}, {transform_indices = @transform_1, window_bounds = array<i64: 1, 8, 128>}, {transform_indices = @transform_2, window_bounds = array<i64: 1, 8, 128>}, {transform_indices = @transform_3, window_bounds = array<i64: 1, 8, 256>}, {transform_indices = @transform_4, window_bounds = array<i64: 1, 8, 128>}, {transform_indices = @transform_5, window_bounds = array<i64: 1, 8, 128>}, {pipeline_mode = #tpu.pipeline_mode<synchronous>, transform_indices = @transform_6, window_bounds = array<i64: 9, 8, 48>}, {pipeline_mode = #tpu.pipeline_mode<synchronous>, transform_indices = @transform_7, window_bounds = array<i64: 9, 1, 256>}, {pipeline_mode = #tpu.pipeline_mode<synchronous>, transform_indices = @transform_8, window_bounds = array<i64: 8, 1>}, {transform_indices = @transform_9, window_bounds = array<i64: 1, 8, 256>}]} {
    %c0_i32 = arith.constant 0 : i32
    %0 = arith.cmpi sgt, %arg1, %c0_i32 : i32
    %cst = arith.constant 1.000000e+00 : f32
    %cst_0 = arith.constant 0.000000e+00 : f32
    %1 = arith.select %0, %cst, %cst_0 : f32
    %2 = arith.truncf %1 : f32 to bf16
    %c1_i32 = arith.constant 1 : i32
    %3 = arith.cmpi slt, %arg1, %c1_i32 : i32
    %cst_1 = arith.constant 1.000000e+00 : f32
    %cst_2 = arith.constant 0.000000e+00 : f32
    %4 = arith.select %3, %cst_1, %cst_2 : f32
    %5 = arith.truncf %4 : f32 to bf16
    %c0 = arith.constant 0 : index
    %c0_3 = arith.constant 0 : index
    %c0_4 = arith.constant 0 : index
    %6 = vector.load %arg2[%c0, %c0_3, %c0_4] : memref<1x8x256xbf16, #tpu.memory_space<vmem>>, vector<1x8x256xbf16>
    %7 = vector.shape_cast %6 : vector<1x8x256xbf16> to vector<8x256xbf16>
    %c0_5 = arith.constant 0 : index
    %c0_6 = arith.constant 0 : index
    %c0_7 = arith.constant 0 : index
    %8 = vector.load %arg5[%c0_5, %c0_6, %c0_7] : memref<1x8x256xbf16, #tpu.memory_space<vmem>>, vector<1x8x256xbf16>
    %9 = vector.shape_cast %8 : vector<1x8x256xbf16> to vector<8x256xbf16>
    %c0_8 = arith.constant 0 : index
    %c0_9 = arith.constant 0 : index
    %c0_10 = arith.constant 0 : index
    %10 = vector.load %arg3[%c0_8, %c0_9, %c0_10] : memref<1x8x128xbf16, #tpu.memory_space<vmem>>, vector<1x8x128xbf16>
    %11 = vector.shape_cast %10 : vector<1x8x128xbf16> to vector<8x128xbf16>
    %12 = vector.broadcast %2 : bf16 to vector<8x128xbf16>
    %13 = arith.mulf %11, %12 : vector<8x128xbf16>
    %c0_11 = arith.constant 0 : index
    %c0_12 = arith.constant 0 : index
    %c0_13 = arith.constant 0 : index
    %14 = vector.load %arg4[%c0_11, %c0_12, %c0_13] : memref<1x8x128xbf16, #tpu.memory_space<vmem>>, vector<1x8x128xbf16>
    %15 = vector.shape_cast %14 : vector<1x8x128xbf16> to vector<8x128xbf16>
    %16 = vector.broadcast %5 : bf16 to vector<8x128xbf16>
    %17 = arith.mulf %15, %16 : vector<8x128xbf16>
    %c0_14 = arith.constant 0 : index
    %c0_15 = arith.constant 0 : index
    %c0_16 = arith.constant 0 : index
    %18 = vector.load %arg6[%c0_14, %c0_15, %c0_16] : memref<1x8x128xbf16, #tpu.memory_space<vmem>>, vector<1x8x128xbf16>
    %19 = vector.shape_cast %18 : vector<1x8x128xbf16> to vector<8x128xbf16>
    %20 = vector.broadcast %2 : bf16 to vector<8x128xbf16>
    %21 = arith.mulf %19, %20 : vector<8x128xbf16>
    %c0_17 = arith.constant 0 : index
    %c0_18 = arith.constant 0 : index
    %c0_19 = arith.constant 0 : index
    %22 = vector.load %arg7[%c0_17, %c0_18, %c0_19] : memref<1x8x128xbf16, #tpu.memory_space<vmem>>, vector<1x8x128xbf16>
    %23 = vector.shape_cast %22 : vector<1x8x128xbf16> to vector<8x128xbf16>
    %24 = vector.broadcast %5 : bf16 to vector<8x128xbf16>
    %25 = arith.mulf %23, %24 : vector<8x128xbf16>
    %26 = vector.extract_strided_slice %7 {offsets = [0, 0], sizes = [8, 128], strides = [1, 1]} : vector<8x256xbf16> to vector<8x128xbf16>
    %27 = tpu.concatenate %13, %26 in 1 : vector<8x128xbf16>, vector<8x128xbf16> -> vector<8x256xbf16>
    %28 = vector.extract_strided_slice %7 {offsets = [0, 128], sizes = [8, 128], strides = [1, 1]} : vector<8x256xbf16> to vector<8x128xbf16>
    %29 = tpu.concatenate %28, %17 in 1 : vector<8x128xbf16>, vector<8x128xbf16> -> vector<8x256xbf16>
    %30 = vector.extract_strided_slice %9 {offsets = [0, 0], sizes = [8, 128], strides = [1, 1]} : vector<8x256xbf16> to vector<8x128xbf16>
    %31 = tpu.concatenate %21, %30 in 1 : vector<8x128xbf16>, vector<8x128xbf16> -> vector<8x256xbf16>
    %32 = vector.extract_strided_slice %9 {offsets = [0, 128], sizes = [8, 128], strides = [1, 1]} : vector<8x256xbf16> to vector<8x128xbf16>
    %33 = tpu.concatenate %32, %25 in 1 : vector<8x128xbf16>, vector<8x128xbf16> -> vector<8x256xbf16>
    %34 = tpu.concatenate %27, %7, %29, %31, %9, %33 in 0 : vector<8x256xbf16>, vector<8x256xbf16>, vector<8x256xbf16>, vector<8x256xbf16>, vector<8x256xbf16>, vector<8x256xbf16> -> vector<48x256xbf16>
    %c4 = arith.constant 4 : index
    %c0_20 = arith.constant 0 : index
    %c0_21 = arith.constant 0 : index
    %35 = vector.load %arg8[%c4, %c0_20, %c0_21] : memref<9x8x48xbf16, #tpu.memory_space<vmem>>, vector<1x8x48xbf16>
    %36 = vector.shape_cast %35 : vector<1x8x48xbf16> to vector<8x48xbf16>
    %cst_22 = arith.constant dense<0.000000e+00> : vector<8x256xf32>
    %37 = tpu.matmul %36, %34, %cst_22 {dimension_numbers = #tpu.dot_dimension_numbers<[1], [0], [0], [1], [0, 0, 1, 1], [], []>} : vector<8x48xbf16>, vector<48x256xbf16>, vector<8x256xf32> -> vector<8x256xf32>
    %c0_23 = arith.constant 0 : index
    %c0_24 = arith.constant 0 : index
    %c0_25 = arith.constant 0 : index
    %38 = vector.load %arg8[%c0_23, %c0_24, %c0_25] : memref<9x8x48xbf16, #tpu.memory_space<vmem>>, vector<1x8x48xbf16>
    %39 = vector.shape_cast %38 : vector<1x8x48xbf16> to vector<8x48xbf16>
    %cst_26 = arith.constant dense<0.000000e+00> : vector<8x256xf32>
    %40 = tpu.matmul %39, %34, %cst_26 {dimension_numbers = #tpu.dot_dimension_numbers<[1], [0], [0], [1], [0, 0, 1, 1], [], []>} : vector<8x48xbf16>, vector<48x256xbf16>, vector<8x256xf32> -> vector<8x256xf32>
    %c17_i32 = arith.constant 17 : i32
    %41 = tpu.dynamic_rotate %40 by %c17_i32 dim 1 : vector<8x256xf32>, i32 -> vector<8x256xf32>
    %c0_27 = arith.constant 0 : index
    %c0_28 = arith.constant 0 : index
    %c0_29 = arith.constant 0 : index
    %42 = vector.load %arg9[%c0_27, %c0_28, %c0_29] : memref<9x1x256xf32, #tpu.memory_space<vmem>>, vector<1x1x256xf32>
    %43 = vector.shape_cast %42 : vector<1x1x256xf32> to vector<1x256xf32>
    %44 = vector.broadcast %43 : vector<1x256xf32> to vector<8x256xf32>
    %45 = arith.mulf %44, %41 : vector<8x256xf32>
    %46 = arith.addf %37, %45 : vector<8x256xf32>
    %c1 = arith.constant 1 : index
    %c0_30 = arith.constant 0 : index
    %c0_31 = arith.constant 0 : index
    %47 = vector.load %arg8[%c1, %c0_30, %c0_31] : memref<9x8x48xbf16, #tpu.memory_space<vmem>>, vector<1x8x48xbf16>
    %48 = vector.shape_cast %47 : vector<1x8x48xbf16> to vector<8x48xbf16>
    %cst_32 = arith.constant dense<0.000000e+00> : vector<8x256xf32>
    %49 = tpu.matmul %48, %34, %cst_32 {dimension_numbers = #tpu.dot_dimension_numbers<[1], [0], [0], [1], [0, 0, 1, 1], [], []>} : vector<8x48xbf16>, vector<48x256xbf16>, vector<8x256xf32> -> vector<8x256xf32>
    %c16_i32 = arith.constant 16 : i32
    %50 = tpu.dynamic_rotate %49 by %c16_i32 dim 1 : vector<8x256xf32>, i32 -> vector<8x256xf32>
    %c1_33 = arith.constant 1 : index
    %c0_34 = arith.constant 0 : index
    %c0_35 = arith.constant 0 : index
    %51 = vector.load %arg9[%c1_33, %c0_34, %c0_35] : memref<9x1x256xf32, #tpu.memory_space<vmem>>, vector<1x1x256xf32>
    %52 = vector.shape_cast %51 : vector<1x1x256xf32> to vector<1x256xf32>
    %53 = vector.broadcast %52 : vector<1x256xf32> to vector<8x256xf32>
    %54 = arith.mulf %53, %50 : vector<8x256xf32>
    %55 = arith.addf %46, %54 : vector<8x256xf32>
    %c2 = arith.constant 2 : index
    %c0_36 = arith.constant 0 : index
    %c0_37 = arith.constant 0 : index
    %56 = vector.load %arg8[%c2, %c0_36, %c0_37] : memref<9x8x48xbf16, #tpu.memory_space<vmem>>, vector<1x8x48xbf16>
    %57 = vector.shape_cast %56 : vector<1x8x48xbf16> to vector<8x48xbf16>
    %cst_38 = arith.constant dense<0.000000e+00> : vector<8x256xf32>
    %58 = tpu.matmul %57, %34, %cst_38 {dimension_numbers = #tpu.dot_dimension_numbers<[1], [0], [0], [1], [0, 0, 1, 1], [], []>} : vector<8x48xbf16>, vector<48x256xbf16>, vector<8x256xf32> -> vector<8x256xf32>
    %c15_i32 = arith.constant 15 : i32
    %59 = tpu.dynamic_rotate %58 by %c15_i32 dim 1 : vector<8x256xf32>, i32 -> vector<8x256xf32>
    %c2_39 = arith.constant 2 : index
    %c0_40 = arith.constant 0 : index
    %c0_41 = arith.constant 0 : index
    %60 = vector.load %arg9[%c2_39, %c0_40, %c0_41] : memref<9x1x256xf32, #tpu.memory_space<vmem>>, vector<1x1x256xf32>
    %61 = vector.shape_cast %60 : vector<1x1x256xf32> to vector<1x256xf32>
    %62 = vector.broadcast %61 : vector<1x256xf32> to vector<8x256xf32>
    %63 = arith.mulf %62, %59 : vector<8x256xf32>
    %64 = arith.addf %55, %63 : vector<8x256xf32>
    %c3 = arith.constant 3 : index
    %c0_42 = arith.constant 0 : index
    %c0_43 = arith.constant 0 : index
    %65 = vector.load %arg8[%c3, %c0_42, %c0_43] : memref<9x8x48xbf16, #tpu.memory_space<vmem>>, vector<1x8x48xbf16>
    %66 = vector.shape_cast %65 : vector<1x8x48xbf16> to vector<8x48xbf16>
    %cst_44 = arith.constant dense<0.000000e+00> : vector<8x256xf32>
    %67 = tpu.matmul %66, %34, %cst_44 {dimension_numbers = #tpu.dot_dimension_numbers<[1], [0], [0], [1], [0, 0, 1, 1], [], []>} : vector<8x48xbf16>, vector<48x256xbf16>, vector<8x256xf32> -> vector<8x256xf32>
    %c1_i32_45 = arith.constant 1 : i32
    %68 = tpu.dynamic_rotate %67 by %c1_i32_45 dim 1 : vector<8x256xf32>, i32 -> vector<8x256xf32>
    %c3_46 = arith.constant 3 : index
    %c0_47 = arith.constant 0 : index
    %c0_48 = arith.constant 0 : index
    %69 = vector.load %arg9[%c3_46, %c0_47, %c0_48] : memref<9x1x256xf32, #tpu.memory_space<vmem>>, vector<1x1x256xf32>
    %70 = vector.shape_cast %69 : vector<1x1x256xf32> to vector<1x256xf32>
    %71 = vector.broadcast %70 : vector<1x256xf32> to vector<8x256xf32>
    %72 = arith.mulf %71, %68 : vector<8x256xf32>
    %73 = arith.addf %64, %72 : vector<8x256xf32>
    %c5 = arith.constant 5 : index
    %c0_49 = arith.constant 0 : index
    %c0_50 = arith.constant 0 : index
    %74 = vector.load %arg8[%c5, %c0_49, %c0_50] : memref<9x8x48xbf16, #tpu.memory_space<vmem>>, vector<1x8x48xbf16>
    %75 = vector.shape_cast %74 : vector<1x8x48xbf16> to vector<8x48xbf16>
    %cst_51 = arith.constant dense<0.000000e+00> : vector<8x256xf32>
    %76 = tpu.matmul %75, %34, %cst_51 {dimension_numbers = #tpu.dot_dimension_numbers<[1], [0], [0], [1], [0, 0, 1, 1], [], []>} : vector<8x48xbf16>, vector<48x256xbf16>, vector<8x256xf32> -> vector<8x256xf32>
    %c255_i32 = arith.constant 255 : i32
    %77 = tpu.dynamic_rotate %76 by %c255_i32 dim 1 : vector<8x256xf32>, i32 -> vector<8x256xf32>
    %c5_52 = arith.constant 5 : index
    %c0_53 = arith.constant 0 : index
    %c0_54 = arith.constant 0 : index
    %78 = vector.load %arg9[%c5_52, %c0_53, %c0_54] : memref<9x1x256xf32, #tpu.memory_space<vmem>>, vector<1x1x256xf32>
    %79 = vector.shape_cast %78 : vector<1x1x256xf32> to vector<1x256xf32>
    %80 = vector.broadcast %79 : vector<1x256xf32> to vector<8x256xf32>
    %81 = arith.mulf %80, %77 : vector<8x256xf32>
    %82 = arith.addf %73, %81 : vector<8x256xf32>
    %c6 = arith.constant 6 : index
    %c0_55 = arith.constant 0 : index
    %c0_56 = arith.constant 0 : index
    %83 = vector.load %arg8[%c6, %c0_55, %c0_56] : memref<9x8x48xbf16, #tpu.memory_space<vmem>>, vector<1x8x48xbf16>
    %84 = vector.shape_cast %83 : vector<1x8x48xbf16> to vector<8x48xbf16>
    %cst_57 = arith.constant dense<0.000000e+00> : vector<8x256xf32>
    %85 = tpu.matmul %84, %34, %cst_57 {dimension_numbers = #tpu.dot_dimension_numbers<[1], [0], [0], [1], [0, 0, 1, 1], [], []>} : vector<8x48xbf16>, vector<48x256xbf16>, vector<8x256xf32> -> vector<8x256xf32>
    %c241_i32 = arith.constant 241 : i32
    %86 = tpu.dynamic_rotate %85 by %c241_i32 dim 1 : vector<8x256xf32>, i32 -> vector<8x256xf32>
    %c6_58 = arith.constant 6 : index
    %c0_59 = arith.constant 0 : index
    %c0_60 = arith.constant 0 : index
    %87 = vector.load %arg9[%c6_58, %c0_59, %c0_60] : memref<9x1x256xf32, #tpu.memory_space<vmem>>, vector<1x1x256xf32>
    %88 = vector.shape_cast %87 : vector<1x1x256xf32> to vector<1x256xf32>
    %89 = vector.broadcast %88 : vector<1x256xf32> to vector<8x256xf32>
    %90 = arith.mulf %89, %86 : vector<8x256xf32>
    %91 = arith.addf %82, %90 : vector<8x256xf32>
    %c7 = arith.constant 7 : index
    %c0_61 = arith.constant 0 : index
    %c0_62 = arith.constant 0 : index
    %92 = vector.load %arg8[%c7, %c0_61, %c0_62] : memref<9x8x48xbf16, #tpu.memory_space<vmem>>, vector<1x8x48xbf16>
    %93 = vector.shape_cast %92 : vector<1x8x48xbf16> to vector<8x48xbf16>
    %cst_63 = arith.constant dense<0.000000e+00> : vector<8x256xf32>
    %94 = tpu.matmul %93, %34, %cst_63 {dimension_numbers = #tpu.dot_dimension_numbers<[1], [0], [0], [1], [0, 0, 1, 1], [], []>} : vector<8x48xbf16>, vector<48x256xbf16>, vector<8x256xf32> -> vector<8x256xf32>
    %c240_i32 = arith.constant 240 : i32
    %95 = tpu.dynamic_rotate %94 by %c240_i32 dim 1 : vector<8x256xf32>, i32 -> vector<8x256xf32>
    %c7_64 = arith.constant 7 : index
    %c0_65 = arith.constant 0 : index
    %c0_66 = arith.constant 0 : index
    %96 = vector.load %arg9[%c7_64, %c0_65, %c0_66] : memref<9x1x256xf32, #tpu.memory_space<vmem>>, vector<1x1x256xf32>
    %97 = vector.shape_cast %96 : vector<1x1x256xf32> to vector<1x256xf32>
    %98 = vector.broadcast %97 : vector<1x256xf32> to vector<8x256xf32>
    %99 = arith.mulf %98, %95 : vector<8x256xf32>
    %100 = arith.addf %91, %99 : vector<8x256xf32>
    %c8 = arith.constant 8 : index
    %c0_67 = arith.constant 0 : index
    %c0_68 = arith.constant 0 : index
    %101 = vector.load %arg8[%c8, %c0_67, %c0_68] : memref<9x8x48xbf16, #tpu.memory_space<vmem>>, vector<1x8x48xbf16>
    %102 = vector.shape_cast %101 : vector<1x8x48xbf16> to vector<8x48xbf16>
    %cst_69 = arith.constant dense<0.000000e+00> : vector<8x256xf32>
    %103 = tpu.matmul %102, %34, %cst_69 {dimension_numbers = #tpu.dot_dimension_numbers<[1], [0], [0], [1], [0, 0, 1, 1], [], []>} : vector<8x48xbf16>, vector<48x256xbf16>, vector<8x256xf32> -> vector<8x256xf32>
    %c239_i32 = arith.constant 239 : i32
    %104 = tpu.dynamic_rotate %103 by %c239_i32 dim 1 : vector<8x256xf32>, i32 -> vector<8x256xf32>
    %c8_70 = arith.constant 8 : index
    %c0_71 = arith.constant 0 : index
    %c0_72 = arith.constant 0 : index
    %105 = vector.load %arg9[%c8_70, %c0_71, %c0_72] : memref<9x1x256xf32, #tpu.memory_space<vmem>>, vector<1x1x256xf32>
    %106 = vector.shape_cast %105 : vector<1x1x256xf32> to vector<1x256xf32>
    %107 = vector.broadcast %106 : vector<1x256xf32> to vector<8x256xf32>
    %108 = arith.mulf %107, %104 : vector<8x256xf32>
    %109 = arith.addf %100, %108 : vector<8x256xf32>
    %c0_73 = arith.constant 0 : index
    %c0_74 = arith.constant 0 : index
    %110 = vector.load %arg10[%c0_73, %c0_74] : memref<8x1xf32, #tpu.memory_space<vmem>>, vector<8x1xf32>
    %111 = vector.broadcast %110 : vector<8x1xf32> to vector<8x256xf32>
    %112 = arith.addf %109, %111 : vector<8x256xf32>
    %cst_75 = arith.constant 1.000000e-01 : f32
    %113 = vector.broadcast %cst_75 : f32 to vector<8x256xf32>
    %114 = arith.mulf %113, %112 : vector<8x256xf32>
    %115 = arith.maximumf %112, %114 : vector<8x256xf32>
    %c0_76 = arith.constant 0 : index
    %c0_77 = arith.constant 0 : index
    %c0_78 = arith.constant 0 : index
    %116 = vector.load %arg11[%c0_76, %c0_77, %c0_78] : memref<1x8x256xf32, #tpu.memory_space<vmem>>, vector<1x8x256xf32>
    %117 = vector.shape_cast %116 : vector<1x8x256xf32> to vector<8x256xf32>
    %118 = vector.shape_cast %115 : vector<8x256xf32> to vector<1x8x256xf32>
    tpu.vector_store %arg11[%c0_76, %c0_77, %c0_78], %118 {strides = array<i32>} : memref<1x8x256xf32, #tpu.memory_space<vmem>>, vector<1x8x256xf32>,
    return
  }
  func.func @transform_0(%arg0: i32, %arg1: i32) -> (i32, i32, i32) {
    %c0_i32 = arith.constant 0 : i32
    %c0_i32_0 = arith.constant 0 : i32
    return %arg0, %c0_i32, %arg1 : i32, i32, i32
  }
  func.func @transform_1(%arg0: i32, %arg1: i32) -> (i32, i32, i32) {
    %c2_i32 = arith.constant 2 : i32
    %0 = arith.muli %arg1, %c2_i32 : i32
    %c1_i32 = arith.constant 1 : i32
    %1 = arith.subi %0, %c1_i32 : i32
    %c0_i32 = arith.constant 0 : i32
    %2 = arith.maxsi %1, %c0_i32 : i32
    %c0_i32_0 = arith.constant 0 : i32
    %c0_i32_1 = arith.constant 0 : i32
    return %arg0, %c0_i32_0, %2 : i32, i32, i32
  }
  func.func @transform_2(%arg0: i32, %arg1: i32) -> (i32, i32, i32) {
    %c1_i32 = arith.constant 1 : i32
    %0 = arith.addi %arg1, %c1_i32 : i32
    %c2_i32 = arith.constant 2 : i32
    %1 = arith.muli %0, %c2_i32 : i32
    %c3_i32 = arith.constant 3 : i32
    %2 = arith.minsi %1, %c3_i32 : i32
    %c0_i32 = arith.constant 0 : i32
    %c0_i32_0 = arith.constant 0 : i32
    return %arg0, %c0_i32, %2 : i32, i32, i32
  }
  func.func @transform_3(%arg0: i32, %arg1: i32) -> (i32, i32, i32) {
    %c0_i32 = arith.constant 0 : i32
    %c0_i32_0 = arith.constant 0 : i32
    return %arg0, %c0_i32, %arg1 : i32, i32, i32
  }
  func.func @transform_4(%arg0: i32, %arg1: i32) -> (i32, i32, i32) {
    %c2_i32 = arith.constant 2 : i32
    %0 = arith.muli %arg1, %c2_i32 : i32
    %c1_i32 = arith.constant 1 : i32
    %1 = arith.subi %0, %c1_i32 : i32
    %c0_i32 = arith.constant 0 : i32
    %2 = arith.maxsi %1, %c0_i32 : i32
    %c0_i32_0 = arith.constant 0 : i32
    %c0_i32_1 = arith.constant 0 : i32
    return %arg0, %c0_i32_0, %2 : i32, i32, i32
  }
  func.func @transform_5(%arg0: i32, %arg1: i32) -> (i32, i32, i32) {
    %c1_i32 = arith.constant 1 : i32
    %0 = arith.addi %arg1, %c1_i32 : i32
    %c2_i32 = arith.constant 2 : i32
    %1 = arith.muli %0, %c2_i32 : i32
    %c3_i32 = arith.constant 3 : i32
    %2 = arith.minsi %1, %c3_i32 : i32
    %c0_i32 = arith.constant 0 : i32
    %c0_i32_0 = arith.constant 0 : i32
    return %arg0, %c0_i32, %2 : i32, i32, i32
  }
  func.func @transform_6(%arg0: i32, %arg1: i32) -> (i32, i32, i32) {
    %c0_i32 = arith.constant 0 : i32
    %c0_i32_0 = arith.constant 0 : i32
    %c0_i32_1 = arith.constant 0 : i32
    %c0_i32_2 = arith.constant 0 : i32
    return %c0_i32, %c0_i32_0, %c0_i32_1 : i32, i32, i32
  }
  func.func @transform_7(%arg0: i32, %arg1: i32) -> (i32, i32, i32) {
    %c0_i32 = arith.constant 0 : i32
    %c0_i32_0 = arith.constant 0 : i32
    %c0_i32_1 = arith.constant 0 : i32
    %c0_i32_2 = arith.constant 0 : i32
    return %c0_i32, %c0_i32_0, %c0_i32_1 : i32, i32, i32
  }
  func.func @transform_8(%arg0: i32, %arg1: i32) -> (i32, i32) {
    %c0_i32 = arith.constant 0 : i32
    %c0_i32_0 = arith.constant 0 : i32
    %c0_i32_1 = arith.constant 0 : i32
    return %c0_i32, %c0_i32_0 : i32, i32
  }
  func.func @transform_9(%arg0: i32, %arg1: i32) -> (i32, i32, i32) {
    %c0_i32 = arith.constant 0 : i32
    %c0_i32_0 = arith.constant 0 : i32
    return %arg0, %c0_i32, %arg1 : i32, i32, i32
  }
}

</mosaic_0001>

<bundles_post_ra>
// kernel: image_level_context.3
= control target key start
LH: loop header
LB: loop body
LE: loop exit
PB: predicated region body
PF: predicated region fallthrough
CT: control target
= control target key end

     0   :  { %s1576_s17 = smov 0   ;;  %s1578_s18 = smov 0   ;;  %s1734_s0 = inlined_call_operand.vmem [shape: bf16[2,8,512], index: 0, kind: input, shape index: {}]   ;;  %s1735_s1 = inlined_call_operand.vmem [shape: f32[2,32,1], index: 1, kind: input, shape index: {}]   ;;  %s1736_s2 = inlined_call_operand.vmem [shape: bf16[16,8], index: 2, kind: input, shape index: {}]   ;;  %s1737_s3 = inlined_call_operand.vmem [shape: f32[16,1], index: 3, kind: input, shape index: {}]   ;;  %s1738_s4 = inlined_call_operand.vmem [shape: bf16[16,16], index: 4, kind: input, shape index: {}]   ;;  %s1739_s5 = inlined_call_operand.vmem [shape: f32[16,1], index: 5, kind: input, shape index: {}]   ;;  %s1740_s6 = inlined_call_operand.vmem [shape: bf16[32,8], index: 6, kind: input, shape index: {}]   ;;  %s1741_s7 = inlined_call_operand.vmem [shape: bf16[16,16], index: 7, kind: input, shape index: {}]   ;;  %s1742_s8 = inlined_call_operand.vmem [shape: f32[16,1], index: 8, kind: input, shape index: {}]   ;;  %s1743_s9 = inlined_call_operand.vmem [shape: bf16[2,16,512], index: 9, kind: output, shape index: {0}]   ;;  %s1744_s10 = inlined_call_operand.vmem [shape: bf16[2,16,512], index: 10, kind: output, shape index: {1}]   ;;  %s1745_s11 = inlined_call_operand.vmem [shape: bf16[2,17,512], index: 11, kind: output, shape index: {2}]  }
   0x1   :  { %s1580_s19 = smov 0  }
   0x2 LB: > { %s34_s20 = sadd.s32 1, %s1508_s18  ;;  %p1388_p0 = scmp.ge.s32.totalorder %s1512_s19, 1  ;;  %s1512_s19 = sphi %s1580_s19, %s22_s19   ;;  %s1508_s18 = sphi %s1578_s18, %s1751_s18   ;;  %s1504_s17 = sphi %s1576_s17, %s1750_s17  }
   0x3   : > { %p36_p1 = scmp.ge.s32.totalorder %s34_s20, 2  ;;  %p377_p2 = scmp.lt.s32.totalorder %s1512_s19, 3 }
   0x5   : > { %s1753_s20 = smov (%p36_p1, %s34_s20), 0  ;;  %p378_p3 = pnand %p1388_p0, %p377_p2 }
   0x6   : > { %p449_p4 = scmp.lt.s32.totalorder (!%p378_p3), %s1504_s17, 1 }
   0x7   : > { %381 = sbr.rel (%p378_p3) target bundleno = 662 (0x296), region = 56 }
   0xc   : > { %vm1172_vm0 = vcmask 1040384   ;;  %vm1175_vm1 = vcmask 1044484   ;;  %vm1173_vm2 = vsmask.f32 256  ;;  %vm1176_vm3 = vsmask.f32 4352 }
   0xd   : > { %s1755_s17 = smov (!%p449_p4, %s1504_s17), 1  ;;  %vm1594_vm4 = vmand %vm1172_vm0, %vm1173_vm2  ;;  %v1514_v1 = vmov 0   ;;  %v498_v3 = vld [vmem:[%s1737_s3] sm:$0xff]  ;;  %v1515_v4 = vmov 1.0|1.0   ;;  %v499_v6 = vld [vmem:[%s1737_s3 + $0x8] sm:$0xff] }
   0xe   : > { %574 = vmatprep.mubr.bf16.mxu0 %v1514_v1  ;;  %617 = vmatprep.mubr.bf16.mxu1 %v1514_v1  ;;  %vm1600_vm5 = vmand %vm1175_vm1, %vm1176_vm3  ;;  %s1436_s23 = sshll.u32 %s1755_s17, 4  ;;  %s1452_s24 = smul.u32 48, %s1755_s17  ;;  %v1433_v5 = vcombine.low %v1515_v4, %v1515_v4  ;;  %vm529_vm7 = vcmask 1043456   ;;  %v1485_v15 = vld [vmem:[%s1736_s2] sm:$0xff]   ;;  %vm525_vm8 = vcmask 64512   ;;  %v651_v25 = vld [vmem:[%s1739_s5 + $0x8] sm:$0xff] }
   0xf   : > { %1479 = vset.pattern.permute.xlu0 %v1514_v1  ;;  %1480 = vset.pattern.permute.xlu1 %v1514_v1  ;;  %s456_s29 = scalar_lea.vmem %s1734_s0, %s1436_s23  ;;  %vm1178_vm6 = vmor %vm1600_vm5, %vm1594_vm4  ;;  %v650_v16 = vld [vmem:[%s1739_s5] sm:$0xff]  ;;  %s1636_s22 = sshll.u32 %s1755_s17, 5  ;;  %v990_v27 = vld [vmem:[%s1742_s8 + $0x8] sm:$0xff]  ;;  %vm667_vm9 = vcmask 130048  }
  0x10   : > { %502 = vperm.xlu0 %1479, %v498_v3   ;;  %s1622_s13 = scalar_lea.vmem %s1745_s11, %s1452_s24  ;;  %v494_v7 = vld [vmem:[%s456_s29] sm:$0xff]  ;;  %v495_v8 = vld [vmem:[%s456_s29 + $0x8] sm:$0xff]  ;;  %s462_s24 = scalar_lea.vmem %s1735_s1, %s1636_s22 }
  0x11   : > { %v1624_v9 = vcombine.high %v494_v7, %v494_v7  ;;  %v1179_v10 = vld [vmem:[%s1622_s13 + $0x20] sm:$0x11]  ;;  %v1182_v11 = vld [vmem:[%s1622_s13 + $0x28] sm:$0x11]  ;;  %v1628_v12 = vcombine.high %v495_v8, %v495_v8  ;;  %v1399_v13 = vcombine.low %v494_v7, %v494_v7  ;;  %v1401_v14 = vcombine.low %v495_v8, %v495_v8  ;;  %v807_v21 = vld [vmem:[%s462_s24 + $0x10] sm:$0xff]  ;;  %s1702_s25 = scalar_lea.vmem %s1743_s9, %s1636_s22  ;;  %s481_s29 = scalar_lea.vmem %s1744_s10, %s1636_s22 }
  0x12   : > { %v1180_v17 = vsel %vm1178_vm6, %v1433_v5, %v1179_v10  ;;  %v1183_v18 = vsel %vm1178_vm6, %v1433_v5, %v1182_v11  ;;  %v989_v22 = vld [vmem:[%s1742_s8] sm:$0xff]  ;;  %v806_v24 = vld [vmem:[%s462_s24 + $0x8] sm:$0xff]  ;;  %v808_v26 = vld [vmem:[%s462_s24 + $0x18] sm:$0xff] }
  0x13   : > { %1403 = vmatprep.subr.msk.bf16.mxu0 %vm529_vm7, %v1624_v9  ;;  %1181 = vst [vmem:[%s1622_s13 + $0x20] sm:$0x11] %v1180_v17  ;;  %1184 = vst [vmem:[%s1622_s13 + $0x28] sm:$0x11] %v1183_v18  ;;  %1405 = vmatprep.subr.msk.bf16.mxu1 %vm529_vm7, %v1628_v12  ;;  %v1645_v19 = vsel %vm529_vm7, %v1399_v13, 0  ;;  %v1648_v20 = vsel %vm529_vm7, %v1401_v14, 0 }
  0x14   : > { %507 = vperm.xlu0 %1479, %v499_v6   ;;  %557 = vmatpush1.bf16.msra.mxu0 %v1645_v19  ;;  %v805_v23 = vld [vmem:[%s462_s24] sm:$0xff]  ;;  %v1488_v5 = vld [vmem:[%s1740_s6 + $0x8] sm:$0xff]  }
  0x15   : > { %600 = vmatpush1.bf16.msra.mxu1 %v1648_v20  ;;  %811 = vperm.xlu1 %1480, %v805_v23   ;;  %v1486_v3 = vld [vmem:[%s1738_s4] sm:$0xff]  }
  0x16   : > { %v1487_v4 = vld [vmem:[%s1740_s6] sm:$0xff]  }
  0x17   : > { %1404 = vmatmul.mubr.msk.bf16.vlgmr.msra.gmra.mxu0 %vm525_vm8, %v1485_v15 }
  0x18   : > { %654 = vperm.xlu0 %1479, %v650_v16   ;;  %1406 = vmatmul.mubr.msk.bf16.vlgmr.msra.gmra.mxu1 %vm525_vm8, %v1485_v15 }
  0x19   : > { %703 = vmatprep.mubr.bf16.mxu0 %v1514_v1  ;;  %746 = vmatprep.mubr.bf16.mxu1 %v1514_v1 }
  0x1a   : > { %816 = vperm.xlu1 %1480, %v806_v24  }
  0x1c   : > { %821 = vperm.xlu0 %1479, %v807_v21  }
  0x1e   : > { %659 = vperm.xlu1 %1480, %v651_v25  }
  0x20   : > { %993 = vperm.xlu0 %1479, %v989_v22  }
  0x22   : > { %826 = vperm.xlu1 %1480, %v808_v26  }
  0x26   : > { %998 = vperm.xlu1 %1480, %v990_v27  }
  0x8b   : > { %v503_v28 = vpop.permute.xlu0 %502 }
  0x8f   : > { %v508_v39 = vpop.permute.xlu0 %507 }
  0x90   : > { %v812_v6 = vpop.permute.xlu1 %811 }
  0x93   : > { %v655_v7 = vpop.permute.xlu0 %654 }
  0x95   : > { %v1696_v8 = vpop.permute.xlu1 %816 }
  0x99   : > { %v660_v21 = vpop.permute.xlu1 %659 }
  0xd7   : > { %v576_v29 = vpop.f32.mrf.mxu0 }
  0xd8   : > { %v619_v30 = vpop.f32.mrf.mxu1  ;;  %v577_v31 = vadd.f32 %v576_v29, %v503_v28 }
  0xd9   : > { %v578_v32 = vpop.f32.mrf.mxu0  ;;  %v620_v36 = vadd.f32 %v619_v30, %v503_v28 }
  0xda   : > { %v621_v33 = vpop.f32.mrf.mxu1  ;;  %v579_v34 = vadd.f32 %v578_v32, %v503_v28  ;;  %v628_v40 = vmul.f32 0.1, %v577_v31 }
  0xdb   : > { %v622_v35 = vadd.f32 %v621_v33, %v503_v28  ;;  %v580_v37 = vpop.f32.mrf.mxu0  ;;  %v630_v49 = vmul.f32 0.1, %v620_v36 }
  0xdc   : > { %v623_v38 = vpop.f32.mrf.mxu1  ;;  %v581_v41 = vadd.f32 %v580_v37, %v508_v39  ;;  %v629_v45 = vmul.f32 0.1, %v579_v34  ;;  %v636_v60 = vmax.f32 %v577_v31, %v628_v40 }
  0xdd   : > { %v624_v42 = vadd.f32 %v623_v38, %v508_v39  ;;  %v582_v43 = vpop.f32.mrf.mxu0  ;;  %v631_v46 = vmul.f32 0.1, %v622_v35  ;;  %v638_v61 = vmax.f32 %v620_v36, %v630_v49 }
  0xde   : > { %v625_v44 = vpop.f32.mrf.mxu1  ;;  %v583_v47 = vadd.f32 %v582_v43, %v508_v39  ;;  %v632_v50 = vmul.f32 0.1, %v581_v41  ;;  %v637_v56 = vmax.f32 %v579_v34, %v629_v45 }
  0xdf   : > { %v626_v48 = vadd.f32 %v625_v44, %v508_v39  ;;  %v634_v51 = vmul.f32 0.1, %v624_v42  ;;  %v639_v57 = vmax.f32 %v622_v35, %v631_v46 }
  0xe0   : > { %v633_v52 = vmul.f32 0.1, %v583_v47  ;;  %v640_v54 = vmax.f32 %v581_v41, %v632_v50 }
  0xe1   : > { %v635_v53 = vmul.f32 0.1, %v626_v48  ;;  %v642_v55 = vmax.f32 %v624_v42, %v634_v51 }
  0xe2   : > { %v641_v58 = vmax.f32 %v583_v47, %v633_v52  ;;  %v646_v0 = vpack.c.bf16 %v640_v54, %v636_v60 }
  0xe3   : > { %v643_v59 = vmax.f32 %v626_v48, %v635_v53  ;;  %v648_v2 = vpack.c.bf16 %v642_v55, %v638_v61 }
  0xe4   : > { %v647_v62 = vpack.c.bf16 %v641_v58, %v637_v56 }
  0xe5   : > { %v649_v63 = vpack.c.bf16 %v643_v59, %v639_v57 }
  0xe6   : > { %685 = vmatprep.subr.bf16.mxu0 %v647_v62  ;;  %v822_v62 = vpop.permute.xlu0 %821 }
  0xe7   : > { %728 = vmatprep.subr.bf16.mxu1 %v649_v63  ;;  %686 = vmatpush1.bf16.msra.mxu0 %v646_v0 }
  0xe8   : > { %729 = vmatpush1.bf16.msra.mxu1 %v648_v2  ;;  %1416 = vmatprep.subr.msk.bf16.mxu0 %vm529_vm7, %v1624_v9 }
  0xe9   : > { %1419 = vmatprep.subr.msk.bf16.mxu1 %vm529_vm7, %v1628_v12 }
  0xea   : > { %1408 = vmatmul.mubr.msk.bf16.vlgmr.msra.gmra.mxu0 %vm667_vm9, %v1486_v3 }
  0xeb   : > { %1409 = vmatmul.mubr.msk.bf16.vlgmr.msra.gmra.mxu1 %vm667_vm9, %v1486_v3  ;;  %860 = vmatpush1.bf16.msra.mxu0 %v1645_v19 }
  0xec   : > { %913 = vmatpush1.bf16.msra.mxu1 %v1648_v20  ;;  %877 = vmatprep.mubr.bf16.mxu0 %v1514_v1 }
  0xed   : > { %930 = vmatprep.mubr.bf16.mxu1 %v1514_v1 }
  0xf2   : > { %1417 = vmatmul.mubr.msk.bf16.vlgmr.msra.gmra.mxu0 %vm525_vm8, %v1487_v4 }
  0xf3   : > { %1420 = vmatmul.mubr.msk.bf16.vlgmr.msra.gmra.mxu1 %vm525_vm8, %v1487_v4  ;;  %887 = vmatprep.mubr.bf16.mxu0 %v1514_v1 }
  0xf4   : > { %940 = vmatprep.mubr.bf16.mxu1 %v1514_v1 }
  0xfa   : > { %1418 = vmatmul.mubr.msk.bf16.gmra.mxu0 %vm525_vm8, %v1488_v5 }
  0xfb   : > { %1421 = vmatmul.mubr.msk.bf16.gmra.mxu1 %vm525_vm8, %v1488_v5  ;;  %1041 = vmatprep.mubr.bf16.mxu0 %v1514_v1 }
  0xfc   : > { %1084 = vmatprep.mubr.bf16.mxu1 %v1514_v1 }
 0x1aa   : > { %v705_v9 = vpop.f32.mrf.mxu0 }
 0x1ab   : > { %v748_v10 = vpop.f32.mrf.mxu1  ;;  %v706_v11 = vadd.f32 %v705_v9, %v655_v7 }
 0x1ac   : > { %v749_v12 = vadd.f32 %v748_v10, %v655_v7  ;;  %v707_v13 = vpop.f32.mrf.mxu0 }
 0x1ad   : > { %v750_v14 = vpop.f32.mrf.mxu1  ;;  %v757_v15 = vmul.f32 0.1, %v706_v11  ;;  %v708_v17 = vadd.f32 %v707_v13, %v655_v7 }
 0x1ae   : > { %v759_v16 = vmul.f32 0.1, %v749_v12  ;;  %v751_v18 = vadd.f32 %v750_v14, %v655_v7  ;;  %v709_v19 = vpop.f32.mrf.mxu0 }
 0x1af   : > { %v752_v20 = vpop.f32.mrf.mxu1  ;;  %v758_v22 = vmul.f32 0.1, %v708_v17  ;;  %v765_v23 = vmax.f32 %v706_v11, %v757_v15  ;;  %v710_v25 = vadd.f32 %v709_v19, %v660_v21  ;;  %v827_v19 = vpop.permute.xlu1 %826 }
 0x1b0   : > { %v760_v1 = vmul.f32 0.1, %v751_v18  ;;  %v767_v24 = vmax.f32 %v749_v12, %v759_v16  ;;  %v753_v26 = vadd.f32 %v752_v20, %v660_v21  ;;  %v711_v27 = vpop.f32.mrf.mxu0 }
 0x1b1   : > { %v754_v28 = vpop.f32.mrf.mxu1  ;;  %v766_v29 = vmax.f32 %v708_v17, %v758_v22  ;;  %v712_v31 = vadd.f32 %v711_v27, %v660_v21  ;;  %v761_v33 = vmul.f32 0.1, %v710_v25 }
 0x1b2   : > { %v768_v30 = vmax.f32 %v751_v18, %v760_v1  ;;  %v755_v32 = vadd.f32 %v754_v28, %v660_v21  ;;  %v763_v34 = vmul.f32 0.1, %v753_v26  ;;  %v879_v35 = vpop.f32.mrf.mxu0 }
 0x1b3   : > { %v932_v36 = vpop.f32.mrf.mxu1  ;;  %v1440_v37 = vpack.c.bf16 %v766_v29, %v765_v23  ;;  %v762_v39 = vmul.f32 0.1, %v712_v31  ;;  %v769_v41 = vmax.f32 %v710_v25, %v761_v33  ;;  %v880_v43 = vadd.f32 %v879_v35, %v812_v6 }
 0x1b4   : > { %v1441_v38 = vpack.c.bf16 %v768_v30, %v767_v24  ;;  %v764_v40 = vmul.f32 0.1, %v755_v32  ;;  %v771_v42 = vmax.f32 %v753_v26, %v763_v34  ;;  %v933_v44 = vadd.f32 %v932_v36, %v812_v6  ;;  %v881_v45 = vpop.f32.mrf.mxu0 }
 0x1b5   : > { %v934_v46 = vpop.f32.mrf.mxu1  ;;  %797 = vst [vmem:[%s1702_s25] sm:$0xff] %v1440_v37  ;;  %v770_v47 = vmax.f32 %v712_v31, %v762_v39  ;;  %v882_v49 = vadd.f32 %v881_v45, %v812_v6  ;;  %v951_v51 = vmul.f32 0.1, %v880_v43  ;;  %v1489_v45 = vld [vmem:[%s1741_s7] sm:$0xff]  }
 0x1b6   : > { %798 = vst [vmem:[%s1702_s25 + $0x8] sm:$0xff] %v1441_v38  ;;  %v772_v48 = vmax.f32 %v755_v32, %v764_v40  ;;  %v935_v50 = vadd.f32 %v934_v46, %v812_v6  ;;  %v883_v52 = vpop.f32.mrf.mxu0  ;;  %v953_v56 = vmul.f32 0.1, %v933_v44 }
 0x1b7   : > { %v936_v53 = vpop.f32.mrf.mxu1  ;;  %v1442_v54 = vpack.c.bf16 %v770_v47, %v769_v41  ;;  %v952_v57 = vmul.f32 0.1, %v882_v49  ;;  %v884_v58 = vadd.f32 %v883_v52, %v1696_v8  ;;  %v967_v3 = vmax.f32 %v880_v43, %v951_v51 }
 0x1b8   : > { %v1443_v55 = vpack.c.bf16 %v772_v48, %v771_v42  ;;  %v937_v59 = vadd.f32 %v936_v53, %v1696_v8  ;;  %v885_v60 = vpop.f32.mrf.mxu0  ;;  %v954_v63 = vmul.f32 0.1, %v935_v50  ;;  %v969_v13 = vmax.f32 %v933_v44, %v953_v56  ;;  %v994_v56 = vpop.permute.xlu0 %993 }
 0x1b9   : > { %v938_v61 = vpop.f32.mrf.mxu1  ;;  %799 = vst [vmem:[%s1702_s25 + $0x10] sm:$0xff] %v1442_v54  ;;  %v886_v0 = vadd.f32 %v885_v60, %v1696_v8  ;;  %v955_v4 = vmul.f32 0.1, %v884_v58  ;;  %v968_v14 = vmax.f32 %v882_v49, %v952_v57 }
 0x1ba   : > { %800 = vst [vmem:[%s1702_s25 + $0x18] sm:$0xff] %v1443_v55  ;;  %v939_v2 = vadd.f32 %v938_v61, %v1696_v8  ;;  %v957_v5 = vmul.f32 0.1, %v937_v59  ;;  %v889_v6 = vpop.f32.mrf.mxu0  ;;  %v970_v20 = vmax.f32 %v935_v50, %v954_v63 }
 0x1bb   : > { %v942_v7 = vpop.f32.mrf.mxu1  ;;  %v956_v9 = vmul.f32 0.1, %v886_v0  ;;  %v890_v11 = vadd.f32 %v889_v6, %v822_v62  ;;  %v971_v15 = vmax.f32 %v884_v58, %v955_v4  ;;  %v999_v6 = vpop.permute.xlu1 %998 }
 0x1bc   : > { %v958_v10 = vmul.f32 0.1, %v939_v2  ;;  %v943_v12 = vadd.f32 %v942_v7, %v822_v62  ;;  %v973_v16 = vmax.f32 %v937_v59, %v957_v5  ;;  %v891_v17 = vpop.f32.mrf.mxu0 }
 0x1bd   : > { %v944_v18 = vpop.f32.mrf.mxu1  ;;  %v972_v21 = vmax.f32 %v886_v0, %v956_v9  ;;  %v959_v8 = vmul.f32 0.1, %v890_v11  ;;  %v985_v1 = vpack.c.bf16 %v971_v15, %v967_v3  ;;  %v892_v24 = vadd.f32 %v891_v17, %v822_v62 }
 0x1be   : > { %v974_v22 = vmax.f32 %v939_v2, %v958_v10  ;;  %v961_v23 = vmul.f32 0.1, %v943_v12  ;;  %v945_v25 = vadd.f32 %v944_v18, %v822_v62  ;;  %v893_v26 = vpop.f32.mrf.mxu0  ;;  %v987_v28 = vpack.c.bf16 %v973_v16, %v969_v13 }
 0x1bf   : > { %v946_v27 = vpop.f32.mrf.mxu1  ;;  %v975_v29 = vmax.f32 %v890_v11, %v959_v8  ;;  %v894_v30 = vadd.f32 %v893_v26, %v827_v19  ;;  %v960_v32 = vmul.f32 0.1, %v892_v24  ;;  %v986_v36 = vpack.c.bf16 %v972_v21, %v968_v14 }
 0x1c0   : > { %v947_v31 = vadd.f32 %v946_v27, %v827_v19  ;;  %v962_v33 = vmul.f32 0.1, %v945_v25  ;;  %v895_v34 = vpop.f32.mrf.mxu0  ;;  %v988_v37 = vpack.c.bf16 %v974_v22, %v970_v20  ;;  %v977_v42 = vmax.f32 %v943_v12, %v961_v23 }
 0x1c1   : > { %v948_v35 = vpop.f32.mrf.mxu1  ;;  %v963_v38 = vmul.f32 0.1, %v894_v30  ;;  %v896_v40 = vadd.f32 %v895_v34, %v827_v19  ;;  %v976_v43 = vmax.f32 %v892_v24, %v960_v32  ;;  %1023 = vmatprep.subr.bf16.mxu0 %v986_v36 }
 0x1c2   : > { %v965_v39 = vmul.f32 0.1, %v947_v31  ;;  %v949_v41 = vadd.f32 %v948_v35, %v827_v19  ;;  %v978_v44 = vmax.f32 %v945_v25, %v962_v33  ;;  %1066 = vmatprep.subr.bf16.mxu1 %v988_v37  ;;  %1024 = vmatpush1.bf16.msra.mxu0 %v985_v1 }
 0x1c3   : > { %v964_v46 = vmul.f32 0.1, %v896_v40  ;;  %1067 = vmatpush1.bf16.msra.mxu1 %v987_v28  ;;  %v1448_v48 = vpack.c.bf16 %v976_v43, %v975_v29  ;;  %v979_v50 = vmax.f32 %v894_v30, %v963_v38 }
 0x1c4   : > { %v966_v47 = vmul.f32 0.1, %v949_v41  ;;  %v1449_v49 = vpack.c.bf16 %v978_v44, %v977_v42  ;;  %v981_v51 = vmax.f32 %v947_v31, %v965_v39 }
 0x1c5   : > { %v980_v52 = vmax.f32 %v896_v40, %v964_v46  ;;  %1168 = vst [vmem:[%s1622_s13] sm:$0xff] %v1448_v48  ;;  %1423 = vmatmul.mubr.msk.bf16.vlgmr.msra.gmra.mxu0 %vm667_vm9, %v1489_v45 }
 0x1c6   : > { %v982_v53 = vmax.f32 %v949_v41, %v966_v47  ;;  %1169 = vst [vmem:[%s1622_s13 + $0x8] sm:$0xff] %v1449_v49  ;;  %1424 = vmatmul.mubr.msk.bf16.vlgmr.msra.gmra.mxu1 %vm667_vm9, %v1489_v45 }
 0x1c7   : > { %v1450_v54 = vpack.c.bf16 %v980_v52, %v979_v50 }
 0x1c8   : > { %v1451_v55 = vpack.c.bf16 %v982_v53, %v981_v51 }
 0x1c9   : > { %1170 = vst [vmem:[%s1622_s13 + $0x10] sm:$0xff] %v1450_v54 }
 0x1ca   : > { %1171 = vst [vmem:[%s1622_s13 + $0x18] sm:$0xff] %v1451_v55 }
 0x285   : > { %v1043_v57 = vpop.f32.mrf.mxu0 }
 0x286   : > { %v1086_v58 = vpop.f32.mrf.mxu1  ;;  %v1044_v59 = vadd.f32 %v1043_v57, %v994_v56 }
 0x287   : > { %v1087_v60 = vadd.f32 %v1086_v58, %v994_v56  ;;  %v1045_v61 = vpop.f32.mrf.mxu0 }
 0x288   : > { %v1088_v62 = vpop.f32.mrf.mxu1  ;;  %v1095_v63 = vmul.f32 0.1, %v1044_v59  ;;  %v1046_v2 = vadd.f32 %v1045_v61, %v994_v56 }
 0x289   : > { %v1097_v0 = vmul.f32 0.1, %v1087_v60  ;;  %v1089_v3 = vadd.f32 %v1088_v62, %v994_v56  ;;  %v1047_v4 = vpop.f32.mrf.mxu0 }
 0x28a   : > { %v1090_v5 = vpop.f32.mrf.mxu1  ;;  %v1096_v7 = vmul.f32 0.1, %v1046_v2  ;;  %v1103_v10 = vmax.f32 %v1044_v59, %v1095_v63  ;;  %v1048_v12 = vadd.f32 %v1047_v4, %v999_v6 }
 0x28b   : > { %v1098_v9 = vmul.f32 0.1, %v1089_v3  ;;  %v1105_v11 = vmax.f32 %v1087_v60, %v1097_v0  ;;  %v1091_v13 = vadd.f32 %v1090_v5, %v999_v6  ;;  %v1049_v14 = vpop.f32.mrf.mxu0 }
 0x28c   : > { %v1092_v15 = vpop.f32.mrf.mxu1  ;;  %v1104_v16 = vmax.f32 %v1046_v2, %v1096_v7  ;;  %v1050_v18 = vadd.f32 %v1049_v14, %v999_v6  ;;  %v1099_v20 = vmul.f32 0.1, %v1048_v12 }
 0x28d   : > { %v1106_v17 = vmax.f32 %v1089_v3, %v1098_v9  ;;  %v1093_v19 = vadd.f32 %v1092_v15, %v999_v6  ;;  %v1101_v21 = vmul.f32 0.1, %v1091_v13 }
 0x28e   : > { %v1444_v22 = vpack.c.bf16 %v1104_v16, %v1103_v10  ;;  %v1100_v1 = vmul.f32 0.1, %v1050_v18  ;;  %v1107_v24 = vmax.f32 %v1048_v12, %v1099_v20 }
 0x28f   : > { %v1445_v8 = vpack.c.bf16 %v1106_v17, %v1105_v11  ;;  %v1102_v23 = vmul.f32 0.1, %v1093_v19  ;;  %v1109_v25 = vmax.f32 %v1091_v13, %v1101_v21 }
 0x290   : > { %1135 = vst [vmem:[%s481_s29] sm:$0xff] %v1444_v22  ;;  %v1108_v26 = vmax.f32 %v1050_v18, %v1100_v1 }
 0x291   : > { %1136 = vst [vmem:[%s481_s29 + $0x8] sm:$0xff] %v1445_v8  ;;  %v1110_v27 = vmax.f32 %v1093_v19, %v1102_v23 }
 0x292   : > { %v1446_v28 = vpack.c.bf16 %v1108_v26, %v1107_v24 }
 0x293   : > { %v1447_v29 = vpack.c.bf16 %v1110_v27, %v1109_v25 }
 0x294   : > { %1137 = vst [vmem:[%s481_s29 + $0x10] sm:$0xff] %v1446_v28 }
 0x295   : > { %1138 = vst [vmem:[%s481_s29 + $0x18] sm:$0xff] %v1447_v29 }
 0x296 PF: > { %s22_s19 = sadd.s32 1, %s1512_s19   ;;  %s1750_s17 = smov %s1508_s18 }
 0x297   : > { %p19_p5 = scmp.ge.s32.totalorder %s22_s19, 4   ;;  %s1751_s18 = smov %s1753_s20 }
 0x299   :  { %21 = sbr.rel (!%p19_p5) target bundleno = 2 (0x2), region = 113 }

// kernel: image_level_context.5
= control target key start
LH: loop header
LB: loop body
LE: loop exit
PB: predicated region body
PF: predicated region fallthrough
CT: control target
= control target key end

     0   :  { %s1781_s30 = smov 0   ;;  %s1783_s10 = smov 0   ;;  %s2066_s0 = inlined_call_operand.vmem [shape: bf16[2,8,512], index: 0, kind: input, shape index: {}, may-alias: {0,1,2}]   ;;  %s2067_s1 = inlined_call_operand.vmem [shape: bf16[2,8,512], index: 1, kind: input, shape index: {}, may-alias: {0,1,2}]   ;;  %s2068_s2 = inlined_call_operand.vmem [shape: bf16[2,8,512], index: 2, kind: input, shape index: {}, may-alias: {0,1,2}]   ;;  %s2069_s3 = inlined_call_operand.vmem [shape: bf16[2,8,512], index: 3, kind: input, shape index: {}, may-alias: {3,4,5}]   ;;  %s2070_s4 = inlined_call_operand.vmem [shape: bf16[2,8,512], index: 4, kind: input, shape index: {}, may-alias: {3,4,5}]   ;;  %s2071_s5 = inlined_call_operand.vmem [shape: bf16[2,8,512], index: 5, kind: input, shape index: {}, may-alias: {3,4,5}]   ;;  %s2072_s6 = inlined_call_operand.vmem [shape: bf16[9,8,48], index: 6, kind: input, shape index: {}]   ;;  %s2073_s7 = inlined_call_operand.vmem [shape: f32[9,1,256], index: 7, kind: input, shape index: {}]   ;;  %s2074_s8 = inlined_call_operand.vmem [shape: f32[8,1], index: 8, kind: input, shape index: {}]   ;;  %s2075_s9 = inlined_call_operand.vmem [shape: f32[2,8,512], index: 9, kind: output, shape index: {}]  }
   0x1   :  { %s1785_s11 = smov 0   ;;  %s1787_s12 = smov 0  }
   0x2   :  { %s1789_s13 = smov 0  }
   0x3 LB: > { %2079 = sst [smem:[#allocation2_spill]] %s1712_s11  ;;  %s28_s14 = sadd.s32 1, %s1712_s11  ;;  %s1720_s13 = sphi %s1789_s13, %s19_s13   ;;  %s1716_s12 = sphi %s1787_s12, %s2088_s12   ;;  %s1712_s11 = sphi %s1785_s11, %s2087_s11   ;;  %s1708_s10 = sphi %s1783_s10, %s2086_s10   ;;  %s1704_s30 = sphi %s1781_s30, %s2085_s30  }
   0x4   : > { %2080 = sst [smem:[#allocation3_spill]] %s1716_s12  ;;  %s31_s15 = sadd.s32 1, %s1716_s12 }
   0x5   : > { %2081 = sst [smem:[#allocation4_spill]] %s1720_s13  ;;  %p29_p0 = scmp.ge.s32.totalorder %s28_s14, 2 }
   0x6   : > { %p1542_p1 = scmp.ge.s32.totalorder %s1720_s13, 1  ;;  %p449_p2 = scmp.lt.s32.totalorder %s1720_s13, 5 }
   0x7   : > { %s2090_s14 = smov (%p29_p0, %s28_s14), 0  ;;  %s2092_s15 = smov (!%p29_p0, %s31_s15), %s1716_s12 }
   0x8   : > { %2082 = sst [smem:[#allocation5_spill]] %s2090_s14  ;;  %p450_p3 = pnand %p1542_p1, %p449_p2 }
   0x9   : > { %p33_p4 = scmp.ge.s32.totalorder %s2092_s15, 2  ;;  %s1543_s16 = sshll.u32 (!%p450_p3), %s1704_s30, 1 }
   0xa   : > { %453 = sbr.rel (%p450_p3) target bundleno = 431 (0x1af), region = 56  ;;  %p551_p5 = scmp.lt.s32.totalorder (!%p450_p3), %s1708_s10, 1 }
   0xb   : > { %s2094_s15 = smov (%p33_p4, %s2092_s15), 0  ;;  %p553_p6 = scmp.lt.s32.totalorder (!%p450_p3), %s1543_s16, 3 }
   0xc   : > { %2083 = sst [smem:[#allocation6_spill]] %s2094_s15  ;;  %s1623_s17 = sadd.s32 (!%p450_p3), 2, %s1543_s16 }
   0xd   : > { %p578_p7 = scmp.lt.s32.totalorder (!%p450_p3), %s1623_s17, 3  ;;  %p657_p8 = scmp.lt.s32.totalorder (!%p450_p3), %s1704_s30, 1 }
   0xe   : > { %s1547_s22 = sadd.s32 (!%p450_p3), 4294967295, %s1543_s16  ;;  %p645_p12 = scmp.gt.s32.totalorder (!%p450_p3), %s1704_s30, 0 }
   0xf   : > { %v1722_v0 = vmov 0   ;;  %s2096_s10 = smov (!%p551_p5, %s1708_s10), 1  ;;  %s2098_s17 = smov (!%p578_p7, %s1623_s17), 3  ;;  %vm703_vm0 = vcmask 1043456   ;;  %v729_v26 = vld [vmem:[%s2072_s6] sm:$0xf] }
  0x10   : > { %766 = vmatprep.mubr.bf16.mxu0 %v1722_v0  ;;  %833 = vmatprep.mubr.bf16.mxu1 %v1722_v0  ;;  %s554_s18 = scalar_select %p553_p6, %s1543_s16, 3  ;;  %vm730_vm1 = vcmask 392192   ;;  %v1586_v27 = vld [vmem:[%s2072_s6 + $0x10] sm:$0xf]  ;;  %v1589_v28 = vld [vmem:[%s2072_s6 + $0x4] sm:$0xf] }
  0x11   : > { %1677 = vset.pattern.permute.xlu0 %v1722_v0  ;;  %s1817_s19 = sshll.u32 %s2096_s10, 2  ;;  %s2100_s17 = smov (!%p578_p7, %s2098_s17), 3  ;;  %v1592_v29 = vld [vmem:[%s2072_s6 + $0x8] sm:$0xf]  ;;  %v1595_v30 = vld [vmem:[%s2072_s6 + $0xc] sm:$0xf] }
  0x12   : > { %s1820_s20 = sadd.s32 %s1817_s19, %s554_s18  ;;  %s585_s24 = sadd.s32 %s1817_s19, %s2100_s17  ;;  %v1598_v31 = vld [vmem:[%s2072_s6 + $0x14] sm:$0xf]  ;;  %v1601_v32 = vld [vmem:[%s2072_s6 + $0x18] sm:$0xf]  ;;  %v1604_v33 = vld [vmem:[%s2072_s6 + $0x1c] sm:$0xf] }
  0x13   : > { %s1545_s21 = sshll.u32 %s1820_s20, 2  ;;  %s1560_s25 = sshll.u32 %s585_s24, 2  ;;  %v1607_v34 = vld [vmem:[%s2072_s6 + $0x20] sm:$0xf] }
  0x14   : > { %s658_s23 = scalar_select %p657_p8, 1.0, 0.0 }
  0x15   : > { %s600_s28 = scalar_lea.vmem %s2069_s3, %s1545_s21  ;;  %p562_p9 = scmp.gt.s32.totalorder %s1547_s22, 0 }
  0x16   : > { %s661_s29 = sshrl.u32 %s658_s23, 16  ;;  %p660_p10 = scmp.ne.f32.partialorder %s658_s23, %s658_s23  ;;  %v670_v1 = vld [vmem:[%s600_s28] sm:$0xff] }
  0x17   : > { %s662_s10 = sand.u32 1, %s661_s29  ;;  %s629_s14 = scalar_lea.vmem %s2071_s5, %s1560_s25  ;;  %v1583_v5 = vcombine.high %v670_v1, %v670_v1  ;;  %v1585_v6 = vcombine.low %v670_v1, %v670_v1  ;;  %v697_v9 = vrot.slane %v670_v1, 4 }
  0x18   : > { %s663_s12 = sadd.s32 32767, %s662_s10  ;;  %s587_s17 = scalar_lea.vmem %s2068_s2, %s1560_s25  ;;  %v685_v2 = vld [vmem:[%s629_s14] sm:$0xf] }
  0x19   : > { %s664_s16 = sadd.s32 %s663_s12, %s658_s23  ;;  %p1548_p11 = scmp.lt.s32.totalorder %s1547_s22, 3  ;;  %v677_v3 = vld [vmem:[%s587_s17] sm:$0xf]  ;;  %v1839_v11 = vsel %vm703_vm0, %v1585_v6, %v1583_v5 }
  0x1a   : > { %s665_s24 = sand.u32 4294901760, %s664_s16  ;;  %s2104_s22 = smov (!%p562_p9, %s1547_s22), 0 }
  0x1b   : > { %s2102_s24 = smov (%p660_p10, %s665_s24), 2143289344  ;;  %s2106_s22 = smov (!%p1548_p11, %s2104_s22), 3 }
  0x1c   : > { %s668_s26 = sshrl.u32 %s2102_s24, 16  ;;  %s569_s12 = sadd.s32 %s2106_s22, %s1817_s19 }
  0x1d   : > { %s678_s27 = sshll.u32 %s668_s26, 16  ;;  %s1554_s30 = sshll.u32 %s569_s12, 2 }
  0x1e   : > { %s679_s29 = sor.u32 %s678_s27, %s668_s26  ;;  %s558_s23 = scalar_lea.vmem %s2066_s0, %s1545_s21 }
  0x1f   : > { %v680_v4 = vstv %s679_s29  ;;  %s646_s11 = scalar_select %p645_p12, 1.0, 0.0  ;;  %v669_v14 = vld [vmem:[%s558_s23] sm:$0xff] }
  0x20   : > { %v686_v7 = vmul.bf16 %v685_v2, %v680_v4  ;;  %v682_v8 = vmul.bf16 %v680_v4, %v677_v3  ;;  %s613_s18 = scalar_lea.vmem %s2070_s4, %s1554_s30  ;;  %s571_s27 = scalar_lea.vmem %s2067_s1, %s1554_s30  ;;  %v1582_v19 = vcombine.high %v669_v14, %v669_v14  ;;  %v1584_v22 = vcombine.low %v669_v14, %v669_v14 }
  0x21   : > { %s649_s13 = sshrl.u32 %s646_s11, 16  ;;  %p648_p13 = scmp.ne.f32.partialorder %s646_s11, %s646_s11  ;;  %v683_v15 = vld [vmem:[%s613_s18] sm:$0xf] }
  0x22   : > { %v702_v10 = vrot.slane %v686_v7, 4  ;;  %v1845_v13 = vsel %vm703_vm0, %v682_v8, %v697_v9  ;;  %s650_s14 = sand.u32 1, %s649_s13  ;;  %v671_v17 = vld [vmem:[%s571_s27] sm:$0xf]  ;;  %v1865_v23 = vsel %vm703_vm0, %v669_v14, %v1582_v19  ;;  %s1726_s12 = smov 1  }
  0x23   : > { %s651_s15 = sadd.s32 32767, %s650_s14  ;;  %s1727_s30 = smov 127  }
  0x24   : > { %v1842_v12 = vsel %vm703_vm0, %v1583_v5, %v702_v10  ;;  %s652_s25 = sadd.s32 %s651_s15, %s646_s11  ;;  %s1725_s11 = smov 15   ;;  %v1332_v5 = vld [vmem:[%s2074_s8] sm:$0xff] }
  0x25   : > { %744 = vmatprep.subr.bf16.mxu0 %v1842_v12  ;;  %811 = vmatprep.subr.bf16.mxu1 %v1842_v12  ;;  %s653_s16 = sand.u32 4294901760, %s652_s25  ;;  %s1728_s13 = smov 113  }
  0x26   : > { %745 = vmatpush1.bf16.msra.mxu0 %v1839_v11  ;;  %812 = vmatpush1.bf16.msra.mxu1 %v1839_v11  ;;  %s2108_s16 = smov (%p648_p13, %s653_s16), 2143289344  ;;  %s1729_s14 = smov 112  }
  0x27   : > { %746 = vmatprep.subr.bf16.mxu0 %v1845_v13  ;;  %813 = vmatprep.subr.bf16.mxu1 %v1845_v13  ;;  %s656_s17 = sshrl.u32 %s2108_s16, 16  ;;  %s1730_s15 = smov 111  }
  0x28   : > { %s672_s29 = sshll.u32 %s656_s17, 16 }
  0x29   : > { %s673_s21 = sor.u32 %s672_s29, %s656_s17  ;;  %s1723_s29 = smov 17  }
  0x2a   : > { %v674_v16 = vstv %s673_s21  ;;  %s1724_s21 = smov 16  }
  0x2b   : > { %v684_v18 = vmul.bf16 %v683_v15, %v674_v16  ;;  %v676_v21 = vmul.bf16 %v674_v16, %v671_v17 }
  0x2d   : > { %v696_v20 = vrot.slane %v684_v18, 4  ;;  %v1874_v25 = vsel %vm703_vm0, %v676_v21, %v1584_v22  ;;  %v784_v21 = vld [vmem:[%s2073_s7] sm:$0x3] }
  0x2f   : > { %v1868_v24 = vsel %vm703_vm0, %v1582_v19, %v696_v20 }
  0x30   : > { %747 = vmatpush1.bf16.msra.mxu0 %v1868_v24  ;;  %814 = vmatpush1.bf16.msra.mxu1 %v1868_v24 }
  0x31   : > { %748 = vmatprep.subr.bf16.mxu0 %v1865_v23  ;;  %815 = vmatprep.subr.bf16.mxu1 %v1865_v23 }
  0x34   : > { %749 = vmatpush1.bf16.msra.mxu0 %v1874_v25  ;;  %816 = vmatpush1.bf16.msra.mxu1 %v1874_v25 }
  0x35   : > { %857 = vmatprep.subr.bf16.mxu0 %v1842_v12  ;;  %927 = vmatprep.subr.bf16.mxu1 %v1842_v12 }
  0x37   : > { %1587 = vmatmul.mubr.msk.bf16.vlgmr.msra.gmra.mxu0 %vm730_vm1, %v729_v26  ;;  %1588 = vmatmul.mubr.msk.bf16.vlgmr.msra.gmra.mxu1 %vm730_vm1, %v1586_v27 }
  0x38   : > { %858 = vmatpush1.bf16.msra.mxu0 %v1839_v11  ;;  %928 = vmatpush1.bf16.msra.mxu1 %v1839_v11 }
  0x39   : > { %859 = vmatprep.subr.bf16.mxu0 %v1845_v13  ;;  %929 = vmatprep.subr.bf16.mxu1 %v1845_v13 }
  0x3a   : > { %879 = vmatprep.mubr.bf16.mxu0 %v1722_v0  ;;  %949 = vmatprep.mubr.bf16.mxu1 %v1722_v0 }
  0x3c   : > { %860 = vmatpush1.bf16.msra.mxu0 %v1868_v24  ;;  %930 = vmatpush1.bf16.msra.mxu1 %v1868_v24 }
  0x3d   : > { %861 = vmatprep.subr.bf16.mxu0 %v1865_v23  ;;  %931 = vmatprep.subr.bf16.mxu1 %v1865_v23 }
  0x40   : > { %862 = vmatpush1.bf16.msra.mxu0 %v1874_v25  ;;  %932 = vmatpush1.bf16.msra.mxu1 %v1874_v25 }
  0x41   : > { %997 = vmatprep.subr.bf16.mxu0 %v1842_v12  ;;  %1067 = vmatprep.subr.bf16.mxu1 %v1842_v12 }
  0x43   : > { %1590 = vmatmul.mubr.msk.bf16.vlgmr.msra.gmra.mxu0 %vm730_vm1, %v1589_v28  ;;  %1593 = vmatmul.mubr.msk.bf16.vlgmr.msra.gmra.mxu1 %vm730_vm1, %v1592_v29 }
  0x44   : > { %998 = vmatpush1.bf16.msra.mxu0 %v1839_v11  ;;  %1068 = vmatpush1.bf16.msra.mxu1 %v1839_v11 }
  0x45   : > { %999 = vmatprep.subr.bf16.mxu0 %v1845_v13  ;;  %1069 = vmatprep.subr.bf16.mxu1 %v1845_v13 }
  0x46   : > { %1019 = vmatprep.mubr.bf16.mxu0 %v1722_v0  ;;  %1089 = vmatprep.mubr.bf16.mxu1 %v1722_v0 }
  0x48   : > { %1000 = vmatpush1.bf16.msra.mxu0 %v1868_v24  ;;  %1070 = vmatpush1.bf16.msra.mxu1 %v1868_v24 }
  0x49   : > { %1001 = vmatprep.subr.bf16.mxu0 %v1865_v23  ;;  %1071 = vmatprep.subr.bf16.mxu1 %v1865_v23 }
  0x4c   : > { %1002 = vmatpush1.bf16.msra.mxu0 %v1874_v25  ;;  %1072 = vmatpush1.bf16.msra.mxu1 %v1874_v25 }
  0x4d   : > { %1137 = vmatprep.subr.bf16.mxu0 %v1842_v12  ;;  %1207 = vmatprep.subr.bf16.mxu1 %v1842_v12 }
  0x4f   : > { %1596 = vmatmul.mubr.msk.bf16.vlgmr.msra.gmra.mxu0 %vm730_vm1, %v1595_v30  ;;  %1599 = vmatmul.mubr.msk.bf16.vlgmr.msra.gmra.mxu1 %vm730_vm1, %v1598_v31  ;;  %v1597_v30 = vld [vmem:[%s2073_s7 + $0x6] sm:$0x3] }
  0x50   : > { %1138 = vmatpush1.bf16.msra.mxu0 %v1839_v11  ;;  %1208 = vmatpush1.bf16.msra.mxu1 %v1839_v11 }
  0x51   : > { %1139 = vmatprep.subr.bf16.mxu0 %v1845_v13  ;;  %1209 = vmatprep.subr.bf16.mxu1 %v1845_v13 }
  0x52   : > { %1159 = vmatprep.mubr.bf16.mxu0 %v1722_v0  ;;  %1229 = vmatprep.mubr.bf16.mxu1 %v1722_v0 }
  0x54   : > { %1140 = vmatpush1.bf16.msra.mxu0 %v1868_v24  ;;  %1210 = vmatpush1.bf16.msra.mxu1 %v1868_v24 }
  0x55   : > { %1141 = vmatprep.subr.bf16.mxu0 %v1865_v23  ;;  %1211 = vmatprep.subr.bf16.mxu1 %v1865_v23 }
  0x58   : > { %1142 = vmatpush1.bf16.msra.mxu0 %v1874_v25  ;;  %1212 = vmatpush1.bf16.msra.mxu1 %v1874_v25 }
  0x59   : > { %1277 = vmatprep.subr.bf16.mxu0 %v1842_v12  ;;  %v779_v12 = vlaneseq }
  0x5b   : > { %1602 = vmatmul.mubr.msk.bf16.vlgmr.msra.gmra.mxu0 %vm730_vm1, %v1601_v32  ;;  %1605 = vmatmul.mubr.msk.bf16.vlgmr.msra.gmra.mxu1 %vm730_vm1, %v1604_v33  ;;  %v787_v15 = vshrl.u32 %v779_v12, 7  ;;  %v1971_v17 = vand.u32 127, %v779_v12 }
  0x5c   : > { %1278 = vmatpush1.bf16.msra.mxu0 %v1839_v11  ;;  %1299 = vmatprep.mubr.bf16.mxu0 %v1722_v0 }
  0x5d   : > { %1279 = vmatprep.subr.bf16.mxu0 %v1845_v13  ;;  %v1973_v19 = vsub.s32 0, %v787_v15  ;;  %v1975_v20 = vsub.s32 1, %v787_v15  ;;  %vm781_vm2 = vcmp.lt.s32.totalorder %v1971_v17, 17  ;;  %vm892_vm3 = vcmp.lt.s32.totalorder %v1971_v17, 16 }
  0x5e   : > { %vm962_vm4 = vcmp.lt.s32.totalorder %v1971_v17, 15  ;;  %vm1032_vm5 = vcmp.lt.s32.totalorder %v1971_v17, 1  ;;  %vm1102_vm6 = vcmp.lt.s32.totalorder %v1971_v17, 127  ;;  %vm1172_vm7 = vcmp.lt.s32.totalorder %v1971_v17, 113 }
  0x5f   : > { %v793_v26 = vrot.slane %v784_v21, %v1975_v20  ;;  %vm1242_vm8 = vcmp.lt.s32.totalorder %v1971_v17, 112  ;;  %vm1312_vm9 = vcmp.lt.s32.totalorder %v1971_v17, 111 }
  0x60   : > { %1280 = vmatpush1.bf16.msra.mxu0 %v1868_v24  ;;  %v1594_v24 = vld [vmem:[%s2073_s7 + $0x4] sm:$0x3] }
  0x61   : > { %1281 = vmatprep.subr.bf16.mxu0 %v1865_v23  ;;  %v1591_v23 = vld [vmem:[%s2073_s7 + $0x2] sm:$0x3]  ;;  %v971_v33 = vrot.slane %v1594_v24, %v1973_v19 }
  0x62   : > { %v901_v31 = vrot.slane %v1591_v23, %v1973_v19  ;;  %v905_v32 = vrot.slane %v1591_v23, %v1975_v20 }
  0x64   : > { %1282 = vmatpush1.bf16.msra.mxu0 %v1874_v25  ;;  %v789_v25 = vrot.slane %v784_v21, %v1973_v19 }
  0x67   : > { %1608 = vmatmul.mubr.msk.bf16.vlgmr.msra.gmra.mxu0 %vm730_vm1, %v1607_v34  ;;  %v1600_v34 = vld [vmem:[%s2073_s7 + $0xa] sm:$0x3] }
  0xf7   : > { %v768_v35 = vpop.f32.mrf.mxu0  ;;  %v1964_v36 = vpop.f32.mrf.mxu1 }
  0xf8   : > { %775 = vrot.lane.b32.xlu0 %v768_v35, %s1723_s29 }
  0xf9   : > { %v770_v37 = vpop.f32.mrf.mxu0  ;;  %v1966_v38 = vpop.f32.mrf.mxu1 }
  0xfb   : > { %v772_v39 = vpop.f32.mrf.mxu0  ;;  %v839_v40 = vpop.f32.mrf.mxu1 }
  0xfc   : > { %777 = vrot.lane.b32.xlu0 %v770_v37, %s1723_s29  ;;  %v975_v40 = vrot.slane %v1594_v24, %v1975_v20 }
  0xfd   : > { %v773_v41 = vpop.f32.mrf.mxu0  ;;  %v840_v42 = vpop.f32.mrf.mxu1 }
 0x103   : > { %v881_v43 = vpop.f32.mrf.mxu0  ;;  %v951_v44 = vpop.f32.mrf.mxu1 }
 0x104   : > { %888 = vrot.lane.b32.xlu1 %v881_v43, %s1724_s21  ;;  %958 = vrot.lane.b32.xlu0 %v951_v44, %s1725_s11  ;;  %v1041_v43 = vrot.slane %v1597_v30, %v1973_v19  ;;  %v1045_v44 = vrot.slane %v1597_v30, %v1975_v20 }
 0x105   : > { %v883_v45 = vpop.f32.mrf.mxu0  ;;  %v953_v46 = vpop.f32.mrf.mxu1 }
 0x107   : > { %v885_v47 = vpop.f32.mrf.mxu0  ;;  %v955_v48 = vpop.f32.mrf.mxu1 }
 0x108   : > { %890 = vrot.lane.b32.xlu1 %v883_v45, %s1724_s21 }
 0x109   : > { %v886_v49 = vpop.f32.mrf.mxu0  ;;  %v956_v50 = vpop.f32.mrf.mxu1 }
 0x10a   : > { %v1111_v49 = vrot.slane %v1600_v34, %v1973_v19 }
 0x10c   : > { %960 = vrot.lane.b32.xlu1 %v953_v46, %s1725_s11  ;;  %v1603_v46 = vld [vmem:[%s2073_s7 + $0xc] sm:$0x3] }
 0x10f   : > { %v1021_v51 = vpop.f32.mrf.mxu0  ;;  %v1091_v52 = vpop.f32.mrf.mxu1 }
 0x110   : > { %1028 = vrot.lane.b32.xlu0 %v1021_v51, %s1726_s12 }
 0x111   : > { %v1023_v53 = vpop.f32.mrf.mxu0  ;;  %v1093_v54 = vpop.f32.mrf.mxu1 }
 0x112   : > { %1030 = vrot.lane.b32.xlu1 %v1023_v53, %s1726_s12  ;;  %v1606_v53 = vld [vmem:[%s2073_s7 + $0xe] sm:$0x3] }
 0x113   : > { %v1025_v55 = vpop.f32.mrf.mxu0  ;;  %v1095_v56 = vpop.f32.mrf.mxu1 }
 0x114   : > { %1098 = vrot.lane.b32.xlu0 %v1091_v52, %s1727_s30  ;;  %v1115_v52 = vrot.slane %v1600_v34, %v1975_v20  ;;  %v1181_v56 = vrot.slane %v1603_v46, %v1973_v19 }
 0x115   : > { %v1026_v57 = vpop.f32.mrf.mxu0  ;;  %v1096_v58 = vpop.f32.mrf.mxu1 }
 0x116   : > { %1100 = vrot.lane.b32.xlu1 %v1093_v54, %s1727_s30  ;;  %v1185_v57 = vrot.slane %v1603_v46, %v1975_v20 }
 0x11b   : > { %v1161_v59 = vpop.f32.mrf.mxu0  ;;  %v1231_v60 = vpop.f32.mrf.mxu1 }
 0x11c   : > { %1168 = vrot.lane.b32.xlu0 %v1161_v59, %s1728_s13 }
 0x11d   : > { %v1163_v61 = vpop.f32.mrf.mxu0  ;;  %v1233_v62 = vpop.f32.mrf.mxu1 }
 0x11e   : > { %1170 = vrot.lane.b32.xlu1 %v1163_v61, %s1728_s13 }
 0x11f   : > { %v1165_v63 = vpop.f32.mrf.mxu0  ;;  %v1235_v0 = vpop.f32.mrf.mxu1 }
 0x120   : > { %1238 = vrot.lane.b32.xlu0 %v1231_v60, %s1729_s14 }
 0x121   : > { %v1166_v1 = vpop.f32.mrf.mxu0  ;;  %v1236_v2 = vpop.f32.mrf.mxu1 }
 0x122   : > { %1240 = vrot.lane.b32.xlu1 %v1233_v62, %s1729_s14  ;;  %v1251_v1 = vrot.slane %v1606_v53, %v1973_v19  ;;  %s1581_s14 = sshll.u32 %s1820_s20, 3 }
 0x123   : > { %s642_s22 = scalar_lea.vmem %s2075_s9, %s1581_s14 }
 0x127   : > { %v1301_v3 = vpop.f32.mrf.mxu0 }
 0x128   : > { %1308 = vrot.lane.b32.xlu0 %v1301_v3, %s1730_s15 }
 0x129   : > { %v1303_v4 = vpop.f32.mrf.mxu0 }
 0x12a   : > { %1310 = vrot.lane.b32.xlu1 %v1303_v4, %s1730_s15 }
 0x12b   : > { %v1305_v6 = vpop.f32.mrf.mxu0 }
 0x12c   : > { %1335 = vperm.xlu0 %1677, %v1332_v5  }
 0x12d   : > { %v1306_v7 = vpop.f32.mrf.mxu0 }
 0x16a   : > { %v776_v9 = vpop.permute.xlu0 %775 }
 0x16e   : > { %v778_v11 = vpop.permute.xlu0 %777 }
 0x16f   : > { %v782_v28 = vsel %vm781_vm2, %v776_v9, %v778_v11  ;;  %v783_v29 = vsel %vm781_vm2, %v778_v11, %v776_v9 }
 0x170   : > { %v796_v41 = vmul.f32 %v789_v25, %v783_v29  ;;  %v797_v42 = vmul.f32 %v793_v26, %v782_v28 }
 0x172   : > { %v836_v58 = vadd.f32 %v1964_v36, %v796_v41  ;;  %v838_v59 = vadd.f32 %v1966_v38, %v797_v42  ;;  %v1609_v38 = vld [vmem:[%s2073_s7 + $0x10] sm:$0x3] }
 0x176   : > { %v889_v8 = vpop.permute.xlu1 %888  ;;  %v959_v13 = vpop.permute.xlu0 %958 }
 0x17a   : > { %v891_v10 = vpop.permute.xlu1 %890 }
 0x17b   : > { %v893_v37 = vsel %vm892_vm3, %v889_v8, %v891_v10  ;;  %v894_v39 = vsel %vm892_vm3, %v891_v10, %v889_v8  ;;  %v1255_v8 = vrot.slane %v1606_v53, %v1975_v20 }
 0x17c   : > { %v908_v50 = vmul.f32 %v901_v31, %v894_v39  ;;  %v909_v51 = vmul.f32 %v905_v32, %v893_v37 }
 0x17e   : > { %v961_v14 = vpop.permute.xlu1 %960  ;;  %v910_v2 = vadd.f32 %v908_v50, %v836_v58  ;;  %v911_v3 = vadd.f32 %v909_v51, %v838_v59 }
 0x17f   : > { %v963_v47 = vsel %vm962_vm4, %v959_v13, %v961_v14  ;;  %v964_v48 = vsel %vm962_vm4, %v961_v14, %v959_v13 }
 0x180   : > { %v978_v60 = vmul.f32 %v971_v33, %v964_v48  ;;  %v979_v61 = vmul.f32 %v975_v40, %v963_v47 }
 0x182   : > { %v1029_v18 = vpop.permute.xlu0 %1028  ;;  %v980_v9 = vadd.f32 %v978_v60, %v910_v2  ;;  %v981_v10 = vadd.f32 %v979_v61, %v911_v3 }
 0x184   : > { %v1031_v16 = vpop.permute.xlu1 %1030 }
 0x185   : > { %v1033_v54 = vsel %vm1032_vm5, %v1029_v18, %v1031_v16  ;;  %v1034_v55 = vsel %vm1032_vm5, %v1031_v16, %v1029_v18  ;;  %v1321_v16 = vrot.slane %v1609_v38, %v1973_v19  ;;  %v1325_v18 = vrot.slane %v1609_v38, %v1975_v20 }
 0x186   : > { %v1099_v27 = vpop.permute.xlu0 %1098  ;;  %v1048_v4 = vmul.f32 %v1041_v43, %v1034_v55  ;;  %v1049_v5 = vmul.f32 %v1045_v44, %v1033_v54 }
 0x188   : > { %v1101_v22 = vpop.permute.xlu1 %1100  ;;  %v1050_v21 = vadd.f32 %v1048_v4, %v980_v9 }
 0x189   : > { %v1103_v63 = vsel %vm1102_vm6, %v1099_v27, %v1101_v22  ;;  %v1104_v0 = vsel %vm1102_vm6, %v1101_v22, %v1099_v27  ;;  %v1051_v22 = vadd.f32 %v1049_v5, %v981_v10 }
 0x18a   : > { %v1118_v11 = vmul.f32 %v1111_v49, %v1103_v63  ;;  %v1119_v12 = vmul.f32 %v1115_v52, %v1104_v0 }
 0x18c   : > { %v1120_v28 = vadd.f32 %v1118_v11, %v1050_v21  ;;  %v1121_v29 = vadd.f32 %v1119_v12, %v1051_v22 }
 0x18e   : > { %v1169_v45 = vpop.permute.xlu0 %1168 }
 0x190   : > { %v1171_v35 = vpop.permute.xlu1 %1170 }
 0x191   : > { %v1173_v6 = vsel %vm1172_vm7, %v1169_v45, %v1171_v35  ;;  %v1174_v7 = vsel %vm1172_vm7, %v1171_v35, %v1169_v45 }
 0x192   : > { %v1239_v36 = vpop.permute.xlu0 %1238  ;;  %v1188_v23 = vmul.f32 %v1181_v56, %v1173_v6  ;;  %v1189_v24 = vmul.f32 %v1185_v57, %v1174_v7 }
 0x194   : > { %v1241_v62 = vpop.permute.xlu1 %1240  ;;  %v1190_v32 = vadd.f32 %v1188_v23, %v1120_v28  ;;  %v1191_v19 = vadd.f32 %v1189_v24, %v1121_v29 }
 0x195   : > { %v1243_v14 = vsel %vm1242_vm8, %v1239_v36, %v1241_v62  ;;  %v1244_v15 = vsel %vm1242_vm8, %v1241_v62, %v1239_v36 }
 0x196   : > { %v1258_v30 = vmul.f32 %v1251_v1, %v1243_v14  ;;  %v1259_v31 = vmul.f32 %v1255_v8, %v1244_v15 }
 0x198   : > { %v1260_v34 = vadd.f32 %v1258_v30, %v1190_v32  ;;  %v1261_v35 = vadd.f32 %v1259_v31, %v1191_v19 }
 0x19a   : > { %v1309_v25 = vpop.permute.xlu0 %1308 }
 0x19c   : > { %v1311_v13 = vpop.permute.xlu1 %1310 }
 0x19d   : > { %v1313_v26 = vsel %vm1312_vm9, %v1309_v25, %v1311_v13  ;;  %v1314_v27 = vsel %vm1312_vm9, %v1311_v13, %v1309_v25 }
 0x19e   : > { %v1328_v33 = vmul.f32 %v1321_v16, %v1313_v26  ;;  %v1329_v20 = vmul.f32 %v1325_v18, %v1314_v27 }
 0x1a0   : > { %v1330_v37 = vadd.f32 %v1328_v33, %v1260_v34  ;;  %v1331_v39 = vadd.f32 %v1329_v20, %v1261_v35 }
 0x1a7   : > { %v1336_v40 = vpop.permute.xlu0 %1335 }
 0x1a8   : > { %v1338_v41 = vadd.f32 %v1336_v40, %v1330_v37  ;;  %v1339_v42 = vadd.f32 %v1336_v40, %v1331_v39 }
 0x1aa   : > { %v1340_v43 = vmul.f32 0.1, %v1338_v41  ;;  %v1341_v44 = vmul.f32 0.1, %v1339_v42 }
 0x1ac   : > { %v1342_v17 = vmax.f32 %v1338_v41, %v1340_v43  ;;  %v1343_v45 = vmax.f32 %v1339_v42, %v1341_v44 }
 0x1ae   : > { %1344 = vst [vmem:[%s642_s22] sm:$0xff] %v1342_v17  ;;  %1345 = vst [vmem:[%s642_s22 + $0x8] sm:$0xff] %v1343_v45 }
 0x1af PF: > { %s2084_s23 = sld [smem:[#allocation4_spill]] }
 0x1b0   : > { %s2085_s30 = sld [smem:[#allocation2_spill]] }
 0x1b1   : > { %s2086_s10 = sld [smem:[#allocation3_spill]] }
 0x1b2   : > { %s2087_s11 = sld [smem:[#allocation5_spill]] }
 0x1b3   : > { %s2088_s12 = sld [smem:[#allocation6_spill]] }
 0x1b5   : > { %s19_s13 = sadd.s32 1, %s2084_s23  }
 0x1b6   : > { %p16_p0 = scmp.ge.s32.totalorder %s19_s13, 6  }
 0x1b8   :  { %18 = sbr.rel (!%p16_p0) target bundleno = 3 (0x3), region = 116 }

// kernel: image_level_context.4
= control target key start
LH: loop header
LB: loop body
LE: loop exit
PB: predicated region body
PF: predicated region fallthrough
CT: control target
= control target key end

     0   :  { %s3852_s18 = smov 0   ;;  %s3854_s19 = smov 0   ;;  %s5630_s0 = inlined_call_operand.vmem [shape: bf16[2,16,512], index: 0, kind: input, shape index: {}]   ;;  %s5631_s1 = inlined_call_operand.vmem [shape: bf16[2,16,512], index: 1, kind: input, shape index: {}]   ;;  %s5632_s2 = inlined_call_operand.vmem [shape: bf16[2,17,512], index: 2, kind: input, shape index: {}]   ;;  %s5633_s3 = inlined_call_operand.vmem [shape: bf16[8,16], index: 3, kind: input, shape index: {}]   ;;  %s5634_s4 = inlined_call_operand.vmem [shape: f32[8,1], index: 4, kind: input, shape index: {}]   ;;  %s5635_s5 = inlined_call_operand.vmem [shape: bf16[2,8,512], index: 5, kind: output, shape index: {}]  }
   0x1   :  { %s3856_s20 = smov 0  }
   0x2 LB: > { %s34_s21 = sadd.s32 1, %s3812_s19  ;;  %p3120_p0 = scmp.ge.s32.totalorder %s3816_s20, 1  ;;  %s3816_s20 = sphi %s3856_s20, %s15_s20   ;;  %s3812_s19 = sphi %s3854_s19, %s6540_s19   ;;  %s3808_s18 = sphi %s3852_s18, %s6539_s18  }
   0x3   : > { %p36_p1 = scmp.ge.s32.totalorder %s34_s21, 2  ;;  %p249_p2 = scmp.lt.s32.totalorder %s3816_s20, 3 }
   0x5   : > { %s6542_s21 = smov (%p36_p1, %s34_s21), 0  ;;  %p250_p3 = pnand %p3120_p0, %p249_p2 }
   0x7   : > { %253 = sbr.rel (%p250_p3) target bundleno = 1322 (0x52a), region = 40 }
   0xc   : > { %p304_p4 = scmp.lt.s32.totalorder %s3808_s18, 1  ;;  %v5636_v0 = vmov 0   ;;  %vm477_vm0 = vcmask 130048  }
   0xd   : > { %606 = vmatprep.mubr.bf16.mxu0 %v5636_v0  ;;  %959 = vmatprep.mubr.bf16.mxu1 %v5636_v0 }
   0xe   : > { %s6544_s18 = smov (!%p304_p4, %s3808_s18), 1 }
   0xf   : > { %s3214_s22 = sshll.u32 %s6544_s18, 5  ;;  %s3219_s29 = smul.u32 48, %s6544_s18 }
  0x10   : > { %s321_s25 = scalar_lea.vmem %s5631_s1, %s3214_s22  ;;  %s311_s28 = scalar_lea.vmem %s5630_s0, %s3214_s22 }
  0x11   : > { %v3249_v1 = vld [vmem:[%s321_s25] ss:$16 sps:$4 sm:$0xff]   ;;  %v3252_v2 = vld [vmem:[%s311_s28 + $0x4] ss:$16 sps:$4 sm:$0xff]   ;;  %v3254_v3 = vld [vmem:[%s311_s28 + $0xc] ss:$16 sps:$4 sm:$0xff]   ;;  %s5179_s7 = scalar_lea.vmem %s5632_s2, %s3219_s29 }
  0x12   : > { %393 = vxpose.xlu0.c.b16.start.end [1/1] (short) %v3249_v1, 128  ;;  %v3256_v4 = vld [vmem:[%s311_s28] ss:$16 sps:$4 sm:$0xff]   ;;  %v3257_v5 = vld [vmem:[%s311_s28 + $0x8] ss:$16 sps:$4 sm:$0xff]   ;;  %588 = vmatprep.subr.bf16.mxu0 %v3252_v2  ;;  %v3251_v7 = vld [vmem:[%s321_s25 + $0x4] ss:$16 sps:$4 sm:$0xff]  }
  0x13   : > { %v3258_v6 = vld [vmem:[%s321_s25 + $0x8] ss:$16 sps:$4 sm:$0xff]   ;;  %941 = vmatprep.subr.bf16.mxu1 %v3254_v3  ;;  %589 = vmatpush1.bf16.msra.mxu0 %v3256_v4  ;;  %v3260_v8 = vld [vmem:[%s321_s25 + $0xc] ss:$16 sps:$4 sm:$0xff]   ;;  %s3216_s12 = sshll.u32 %s6544_s18, 4 }
  0x14   : > { %942 = vmatpush1.bf16.msra.mxu1 %v3257_v5  ;;  %425 = vxpose.xlu1.c.b16.start.end [1/1] (short) %v3258_v6, 128  ;;  %s341_s15 = scalar_lea.vmem %s5635_s5, %s3216_s12 }
  0x2f   : > { %409 = vxpose.xlu0.c.b16.start.end [1/1] (short) %v3251_v7, 128 }
  0x31   : > { %441 = vxpose.xlu1.c.b16.start.end [1/1] (short) %v3260_v8, 128 }
  0x38   : > { %3248 = vset.pattern.permute.xlu0 %v5636_v0 }
  0x74   : > { %v401_v9 = vpop.trf.xlu0 }
  0x75   : > { %3136 = vmatmul.mubr.msk.bf16.vlgmr.msra.gmra.mxu0 %vm477_vm0, %v401_v9  ;;  %3168 = vmatmul.mubr.msk.bf16.vlgmr.msra.gmra.mxu1 %vm477_vm0, %v401_v9 }
  0x76   : > { %616 = vmatprep.mubr.bf16.mxu0 %v5636_v0  ;;  %969 = vmatprep.mubr.bf16.mxu1 %v5636_v0  ;;  %v433_v25 = vpop.trf.xlu1 }
  0x78   : > { %v402_v10 = vpop.trf.xlu0 }
  0x7a   : > { %v434_v26 = vpop.trf.xlu1 }
  0x7c   : > { %v403_v11 = vpop.trf.xlu0 }
  0x7d   : > { %3137 = vmatmul.mubr.msk.bf16.gmra.mxu0 %vm477_vm0, %v402_v10  ;;  %3169 = vmatmul.mubr.msk.bf16.gmra.mxu1 %vm477_vm0, %v402_v10 }
  0x7e   : > { %626 = vmatprep.mubr.bf16.mxu0 %v5636_v0  ;;  %979 = vmatprep.mubr.bf16.mxu1 %v5636_v0  ;;  %v435_v27 = vpop.trf.xlu1 }
  0x80   : > { %v404_v12 = vpop.trf.xlu0 }
  0x82   : > { %v436_v28 = vpop.trf.xlu1 }
  0x84   : > { %v405_v13 = vpop.trf.xlu0 }
  0x85   : > { %3138 = vmatmul.mubr.msk.bf16.gmra.mxu0 %vm477_vm0, %v403_v11  ;;  %3170 = vmatmul.mubr.msk.bf16.gmra.mxu1 %vm477_vm0, %v403_v11 }
  0x86   : > { %636 = vmatprep.mubr.bf16.mxu0 %v5636_v0  ;;  %989 = vmatprep.mubr.bf16.mxu1 %v5636_v0  ;;  %v437_v29 = vpop.trf.xlu1 }
  0x88   : > { %v406_v14 = vpop.trf.xlu0 }
  0x8a   : > { %v438_v30 = vpop.trf.xlu1 }
  0x8c   : > { %v407_v15 = vpop.trf.xlu0 }
  0x8d   : > { %3139 = vmatmul.mubr.msk.bf16.gmra.mxu0 %vm477_vm0, %v404_v12  ;;  %3171 = vmatmul.mubr.msk.bf16.gmra.mxu1 %vm477_vm0, %v404_v12 }
  0x8e   : > { %646 = vmatprep.mubr.bf16.mxu0 %v5636_v0  ;;  %999 = vmatprep.mubr.bf16.mxu1 %v5636_v0  ;;  %v439_v31 = vpop.trf.xlu1 }
  0x90   : > { %v408_v16 = vpop.trf.xlu0 }
  0x92   : > { %v440_v32 = vpop.trf.xlu1 }
  0x94   : > { %v417_v17 = vpop.trf.xlu0 }
  0x95   : > { %3140 = vmatmul.mubr.msk.bf16.gmra.mxu0 %vm477_vm0, %v405_v13  ;;  %3172 = vmatmul.mubr.msk.bf16.gmra.mxu1 %vm477_vm0, %v405_v13 }
  0x96   : > { %656 = vmatprep.mubr.bf16.mxu0 %v5636_v0  ;;  %1009 = vmatprep.mubr.bf16.mxu1 %v5636_v0  ;;  %v449_v33 = vpop.trf.xlu1 }
  0x98   : > { %v418_v18 = vpop.trf.xlu0 }
  0x9a   : > { %v450_v40 = vpop.trf.xlu1 }
  0x9c   : > { %v419_v19 = vpop.trf.xlu0 }
  0x9d   : > { %3141 = vmatmul.mubr.msk.bf16.gmra.mxu0 %vm477_vm0, %v406_v14  ;;  %3173 = vmatmul.mubr.msk.bf16.gmra.mxu1 %vm477_vm0, %v406_v14 }
  0x9e   : > { %666 = vmatprep.mubr.bf16.mxu0 %v5636_v0  ;;  %1019 = vmatprep.mubr.bf16.mxu1 %v5636_v0  ;;  %v451_v49 = vpop.trf.xlu1 }
  0xa0   : > { %v420_v20 = vpop.trf.xlu0 }
  0xa2   : > { %v452_v58 = vpop.trf.xlu1 }
  0xa4   : > { %v421_v21 = vpop.trf.xlu0 }
  0xa5   : > { %3142 = vmatmul.mubr.msk.bf16.gmra.mxu0 %vm477_vm0, %v407_v15  ;;  %3174 = vmatmul.mubr.msk.bf16.gmra.mxu1 %vm477_vm0, %v407_v15 }
  0xa6   : > { %676 = vmatprep.mubr.bf16.mxu0 %v5636_v0  ;;  %1029 = vmatprep.mubr.bf16.mxu1 %v5636_v0  ;;  %v453_v4 = vpop.trf.xlu1 }
  0xa8   : > { %v422_v22 = vpop.trf.xlu0 }
  0xaa   : > { %v454_v13 = vpop.trf.xlu1 }
  0xac   : > { %v423_v23 = vpop.trf.xlu0 }
  0xad   : > { %3143 = vmatmul.mubr.msk.bf16.gmra.mxu0 %vm477_vm0, %v408_v16  ;;  %3175 = vmatmul.mubr.msk.bf16.gmra.mxu1 %vm477_vm0, %v408_v16 }
  0xae   : > { %686 = vmatprep.mubr.bf16.mxu0 %v5636_v0  ;;  %1039 = vmatprep.mubr.bf16.mxu1 %v5636_v0 }
  0xb0   : > { %v424_v24 = vpop.trf.xlu0 }
  0xb5   : > { %3144 = vmatmul.mubr.msk.bf16.gmra.mxu0 %vm477_vm0, %v417_v17  ;;  %3176 = vmatmul.mubr.msk.bf16.gmra.mxu1 %vm477_vm0, %v417_v17 }
  0xb6   : > { %696 = vmatprep.mubr.bf16.mxu0 %v5636_v0  ;;  %1049 = vmatprep.mubr.bf16.mxu1 %v5636_v0 }
  0xbd   : > { %3145 = vmatmul.mubr.msk.bf16.gmra.mxu0 %vm477_vm0, %v418_v18  ;;  %3177 = vmatmul.mubr.msk.bf16.gmra.mxu1 %vm477_vm0, %v418_v18 }
  0xbe   : > { %706 = vmatprep.mubr.bf16.mxu0 %v5636_v0  ;;  %1059 = vmatprep.mubr.bf16.mxu1 %v5636_v0 }
  0xc5   : > { %3146 = vmatmul.mubr.msk.bf16.gmra.mxu0 %vm477_vm0, %v419_v19  ;;  %3178 = vmatmul.mubr.msk.bf16.gmra.mxu1 %vm477_vm0, %v419_v19 }
  0xc6   : > { %716 = vmatprep.mubr.bf16.mxu0 %v5636_v0  ;;  %1069 = vmatprep.mubr.bf16.mxu1 %v5636_v0 }
  0xcd   : > { %3147 = vmatmul.mubr.msk.bf16.gmra.mxu0 %vm477_vm0, %v420_v20  ;;  %3179 = vmatmul.mubr.msk.bf16.gmra.mxu1 %vm477_vm0, %v420_v20 }
  0xce   : > { %726 = vmatprep.mubr.bf16.mxu0 %v5636_v0  ;;  %1079 = vmatprep.mubr.bf16.mxu1 %v5636_v0 }
  0xd5   : > { %3148 = vmatmul.mubr.msk.bf16.gmra.mxu0 %vm477_vm0, %v421_v21  ;;  %3180 = vmatmul.mubr.msk.bf16.gmra.mxu1 %vm477_vm0, %v421_v21 }
  0xd6   : > { %736 = vmatprep.mubr.bf16.mxu0 %v5636_v0  ;;  %1089 = vmatprep.mubr.bf16.mxu1 %v5636_v0 }
  0xdd   : > { %3149 = vmatmul.mubr.msk.bf16.gmra.mxu0 %vm477_vm0, %v422_v22  ;;  %3181 = vmatmul.mubr.msk.bf16.gmra.mxu1 %vm477_vm0, %v422_v22  ;;  %v455_v22 = vpop.trf.xlu1 }
  0xde   : > { %746 = vmatprep.mubr.bf16.mxu0 %v5636_v0  ;;  %1099 = vmatprep.mubr.bf16.mxu1 %v5636_v0 }
  0xe5   : > { %3150 = vmatmul.mubr.msk.bf16.gmra.mxu0 %vm477_vm0, %v423_v23  ;;  %3182 = vmatmul.mubr.msk.bf16.gmra.mxu1 %vm477_vm0, %v423_v23 }
  0xe6   : > { %756 = vmatprep.mubr.bf16.mxu0 %v5636_v0  ;;  %1109 = vmatprep.mubr.bf16.mxu1 %v5636_v0 }
  0xed   : > { %3151 = vmatmul.mubr.msk.bf16.gmra.mxu0 %vm477_vm0, %v424_v24  ;;  %3183 = vmatmul.mubr.msk.bf16.gmra.mxu1 %vm477_vm0, %v424_v24 }
  0xee   : > { %766 = vmatprep.mubr.bf16.mxu0 %v5636_v0  ;;  %1119 = vmatprep.mubr.bf16.mxu1 %v5636_v0 }
  0xf5   : > { %3152 = vmatmul.mubr.msk.bf16.gmra.mxu0 %vm477_vm0, %v433_v25  ;;  %3184 = vmatmul.mubr.msk.bf16.gmra.mxu1 %vm477_vm0, %v433_v25 }
  0xf6   : > { %776 = vmatprep.mubr.bf16.mxu0 %v5636_v0  ;;  %1129 = vmatprep.mubr.bf16.mxu1 %v5636_v0 }
  0xfd   : > { %3153 = vmatmul.mubr.msk.bf16.gmra.mxu0 %vm477_vm0, %v434_v26  ;;  %3185 = vmatmul.mubr.msk.bf16.gmra.mxu1 %vm477_vm0, %v434_v26 }
  0xfe   : > { %786 = vmatprep.mubr.bf16.mxu0 %v5636_v0  ;;  %1139 = vmatprep.mubr.bf16.mxu1 %v5636_v0 }
 0x105   : > { %3154 = vmatmul.mubr.msk.bf16.gmra.mxu0 %vm477_vm0, %v435_v27  ;;  %3186 = vmatmul.mubr.msk.bf16.gmra.mxu1 %vm477_vm0, %v435_v27 }
 0x106   : > { %796 = vmatprep.mubr.bf16.mxu0 %v5636_v0  ;;  %1149 = vmatprep.mubr.bf16.mxu1 %v5636_v0 }
 0x10d   : > { %3155 = vmatmul.mubr.msk.bf16.gmra.mxu0 %vm477_vm0, %v436_v28  ;;  %3187 = vmatmul.mubr.msk.bf16.gmra.mxu1 %vm477_vm0, %v436_v28 }
 0x10e   : > { %806 = vmatprep.mubr.bf16.mxu0 %v5636_v0  ;;  %1159 = vmatprep.mubr.bf16.mxu1 %v5636_v0 }
 0x115   : > { %3156 = vmatmul.mubr.msk.bf16.gmra.mxu0 %vm477_vm0, %v437_v29  ;;  %3188 = vmatmul.mubr.msk.bf16.gmra.mxu1 %vm477_vm0, %v437_v29 }
 0x116   : > { %816 = vmatprep.mubr.bf16.mxu0 %v5636_v0  ;;  %1169 = vmatprep.mubr.bf16.mxu1 %v5636_v0 }
 0x11d   : > { %3157 = vmatmul.mubr.msk.bf16.gmra.mxu0 %vm477_vm0, %v438_v30  ;;  %3189 = vmatmul.mubr.msk.bf16.gmra.mxu1 %vm477_vm0, %v438_v30 }
 0x11e   : > { %826 = vmatprep.mubr.bf16.mxu0 %v5636_v0  ;;  %1179 = vmatprep.mubr.bf16.mxu1 %v5636_v0 }
 0x125   : > { %3158 = vmatmul.mubr.msk.bf16.gmra.mxu0 %vm477_vm0, %v439_v31  ;;  %3190 = vmatmul.mubr.msk.bf16.gmra.mxu1 %vm477_vm0, %v439_v31  ;;  %v456_v31 = vpop.trf.xlu1 }
 0x126   : > { %836 = vmatprep.mubr.bf16.mxu0 %v5636_v0  ;;  %1189 = vmatprep.mubr.bf16.mxu1 %v5636_v0 }
 0x12d   : > { %3159 = vmatmul.mubr.msk.bf16.gmra.mxu0 %vm477_vm0, %v440_v32  ;;  %3191 = vmatmul.mubr.msk.bf16.gmra.mxu1 %vm477_vm0, %v440_v32 }
 0x12e   : > { %846 = vmatprep.mubr.bf16.mxu0 %v5636_v0  ;;  %1199 = vmatprep.mubr.bf16.mxu1 %v5636_v0 }
 0x135   : > { %v3978_v34 = vpop.f32.mrf.mxu0  ;;  %3160 = vmatmul.mubr.msk.bf16.gmra.mxu0 %vm477_vm0, %v449_v33  ;;  %v3981_v35 = vpop.f32.mrf.mxu1  ;;  %3192 = vmatmul.mubr.msk.bf16.gmra.mxu1 %vm477_vm0, %v449_v33 }
 0x136   : > { %5899 = vst [vmem:[#allocation4_spill] sm:$0xff] %v3978_v34  ;;  %5900 = vst [vmem:[#allocation5_spill] sm:$0xff] %v3981_v35  ;;  %856 = vmatprep.mubr.bf16.mxu0 %v5636_v0  ;;  %1209 = vmatprep.mubr.bf16.mxu1 %v5636_v0 }
 0x137   : > { %v3986_v36 = vpop.f32.mrf.mxu0  ;;  %v3988_v37 = vpop.f32.mrf.mxu1 }
 0x138   : > { %5901 = vst [vmem:[#allocation6_spill] sm:$0xff] %v3986_v36  ;;  %5902 = vst [vmem:[#allocation7_spill] sm:$0xff] %v3988_v37 }
 0x139   : > { %v3990_v38 = vpop.f32.mrf.mxu0  ;;  %v3992_v39 = vpop.f32.mrf.mxu1 }
 0x13a   : > { %5903 = vst [vmem:[#allocation8_spill] sm:$0xff] %v3990_v38  ;;  %5904 = vst [vmem:[#allocation9_spill] sm:$0xff] %v3992_v39 }
 0x13b   : > { %v3994_v41 = vpop.f32.mrf.mxu0  ;;  %v3996_v42 = vpop.f32.mrf.mxu1 }
 0x13c   : > { %5905 = vst [vmem:[#allocation10_spill] sm:$0xff] %v3994_v41  ;;  %5906 = vst [vmem:[#allocation11_spill] sm:$0xff] %v3996_v42 }
 0x13d   : > { %v3998_v43 = vpop.f32.mrf.mxu0  ;;  %3161 = vmatmul.mubr.msk.bf16.gmra.mxu0 %vm477_vm0, %v450_v40  ;;  %v4001_v44 = vpop.f32.mrf.mxu1  ;;  %3193 = vmatmul.mubr.msk.bf16.gmra.mxu1 %vm477_vm0, %v450_v40 }
 0x13e   : > { %5907 = vst [vmem:[#allocation12_spill] sm:$0xff] %v3998_v43  ;;  %5908 = vst [vmem:[#allocation13_spill] sm:$0xff] %v4001_v44  ;;  %866 = vmatprep.mubr.bf16.mxu0 %v5636_v0  ;;  %1219 = vmatprep.mubr.bf16.mxu1 %v5636_v0 }
 0x13f   : > { %v4006_v45 = vpop.f32.mrf.mxu0  ;;  %v4008_v46 = vpop.f32.mrf.mxu1 }
 0x140   : > { %5909 = vst [vmem:[#allocation14_spill] sm:$0xff] %v4006_v45  ;;  %5910 = vst [vmem:[#allocation15_spill] sm:$0xff] %v4008_v46 }
 0x141   : > { %v4010_v47 = vpop.f32.mrf.mxu0  ;;  %v4012_v48 = vpop.f32.mrf.mxu1 }
 0x142   : > { %5911 = vst [vmem:[#allocation16_spill] sm:$0xff] %v4010_v47  ;;  %5912 = vst [vmem:[#allocation17_spill] sm:$0xff] %v4012_v48 }
 0x143   : > { %v4014_v50 = vpop.f32.mrf.mxu0  ;;  %v4016_v51 = vpop.f32.mrf.mxu1 }
 0x144   : > { %5913 = vst [vmem:[#allocation18_spill] sm:$0xff] %v4014_v50  ;;  %5914 = vst [vmem:[#allocation19_spill] sm:$0xff] %v4016_v51 }
 0x145   : > { %v4018_v52 = vpop.f32.mrf.mxu0  ;;  %3162 = vmatmul.mubr.msk.bf16.gmra.mxu0 %vm477_vm0, %v451_v49  ;;  %v4021_v53 = vpop.f32.mrf.mxu1  ;;  %3194 = vmatmul.mubr.msk.bf16.gmra.mxu1 %vm477_vm0, %v451_v49 }
 0x146   : > { %5915 = vst [vmem:[#allocation20_spill] sm:$0xff] %v4018_v52  ;;  %5916 = vst [vmem:[#allocation21_spill] sm:$0xff] %v4021_v53  ;;  %876 = vmatprep.mubr.bf16.mxu0 %v5636_v0  ;;  %1229 = vmatprep.mubr.bf16.mxu1 %v5636_v0 }
 0x147   : > { %v4026_v54 = vpop.f32.mrf.mxu0  ;;  %v4028_v55 = vpop.f32.mrf.mxu1 }
 0x148   : > { %5917 = vst [vmem:[#allocation22_spill] sm:$0xff] %v4026_v54  ;;  %5918 = vst [vmem:[#allocation23_spill] sm:$0xff] %v4028_v55 }
 0x149   : > { %v4030_v56 = vpop.f32.mrf.mxu0  ;;  %v4032_v57 = vpop.f32.mrf.mxu1 }
 0x14a   : > { %5919 = vst [vmem:[#allocation24_spill] sm:$0xff] %v4030_v56  ;;  %5920 = vst [vmem:[#allocation25_spill] sm:$0xff] %v4032_v57 }
 0x14b   : > { %v4034_v59 = vpop.f32.mrf.mxu0  ;;  %v4036_v60 = vpop.f32.mrf.mxu1 }
 0x14c   : > { %5921 = vst [vmem:[#allocation26_spill] sm:$0xff] %v4034_v59  ;;  %5922 = vst [vmem:[#allocation27_spill] sm:$0xff] %v4036_v60 }
 0x14d   : > { %v4038_v61 = vpop.f32.mrf.mxu0  ;;  %3163 = vmatmul.mubr.msk.bf16.gmra.mxu0 %vm477_vm0, %v452_v58  ;;  %v4041_v62 = vpop.f32.mrf.mxu1  ;;  %3195 = vmatmul.mubr.msk.bf16.gmra.mxu1 %vm477_vm0, %v452_v58 }
 0x14e   : > { %5923 = vst [vmem:[#allocation28_spill] sm:$0xff] %v4038_v61  ;;  %5924 = vst [vmem:[#allocation29_spill] sm:$0xff] %v4041_v62  ;;  %886 = vmatprep.mubr.bf16.mxu0 %v5636_v0  ;;  %1239 = vmatprep.mubr.bf16.mxu1 %v5636_v0 }
 0x14f   : > { %v4046_v63 = vpop.f32.mrf.mxu0  ;;  %v4048_v1 = vpop.f32.mrf.mxu1 }
 0x150   : > { %5925 = vst [vmem:[#allocation30_spill] sm:$0xff] %v4046_v63  ;;  %5926 = vst [vmem:[#allocation31_spill] sm:$0xff] %v4048_v1 }
 0x151   : > { %v4050_v2 = vpop.f32.mrf.mxu0  ;;  %v4052_v3 = vpop.f32.mrf.mxu1 }
 0x152   : > { %5927 = vst [vmem:[#allocation32_spill] sm:$0xff] %v4050_v2  ;;  %5928 = vst [vmem:[#allocation33_spill] sm:$0xff] %v4052_v3 }
 0x153   : > { %v4054_v5 = vpop.f32.mrf.mxu0  ;;  %v4056_v6 = vpop.f32.mrf.mxu1 }
 0x154   : > { %5929 = vst [vmem:[#allocation34_spill] sm:$0xff] %v4054_v5  ;;  %5930 = vst [vmem:[#allocation35_spill] sm:$0xff] %v4056_v6 }
 0x155   : > { %v4058_v7 = vpop.f32.mrf.mxu0  ;;  %3164 = vmatmul.mubr.msk.bf16.gmra.mxu0 %vm477_vm0, %v453_v4  ;;  %v4061_v8 = vpop.f32.mrf.mxu1  ;;  %3196 = vmatmul.mubr.msk.bf16.gmra.mxu1 %vm477_vm0, %v453_v4 }
 0x156   : > { %5931 = vst [vmem:[#allocation36_spill] sm:$0xff] %v4058_v7  ;;  %5932 = vst [vmem:[#allocation37_spill] sm:$0xff] %v4061_v8  ;;  %896 = vmatprep.mubr.bf16.mxu0 %v5636_v0  ;;  %1249 = vmatprep.mubr.bf16.mxu1 %v5636_v0 }
 0x157   : > { %v4066_v9 = vpop.f32.mrf.mxu0  ;;  %v4068_v10 = vpop.f32.mrf.mxu1 }
 0x158   : > { %5933 = vst [vmem:[#allocation38_spill] sm:$0xff] %v4066_v9  ;;  %5934 = vst [vmem:[#allocation39_spill] sm:$0xff] %v4068_v10 }
 0x159   : > { %v4070_v11 = vpop.f32.mrf.mxu0  ;;  %v4072_v12 = vpop.f32.mrf.mxu1 }
 0x15a   : > { %5935 = vst [vmem:[#allocation40_spill] sm:$0xff] %v4070_v11  ;;  %5936 = vst [vmem:[#allocation41_spill] sm:$0xff] %v4072_v12 }
 0x15b   : > { %v4074_v14 = vpop.f32.mrf.mxu0  ;;  %v4076_v15 = vpop.f32.mrf.mxu1 }
 0x15c   : > { %5937 = vst [vmem:[#allocation42_spill] sm:$0xff] %v4074_v14  ;;  %5938 = vst [vmem:[#allocation43_spill] sm:$0xff] %v4076_v15 }
 0x15d   : > { %v4078_v16 = vpop.f32.mrf.mxu0  ;;  %3165 = vmatmul.mubr.msk.bf16.gmra.mxu0 %vm477_vm0, %v454_v13  ;;  %v4081_v17 = vpop.f32.mrf.mxu1  ;;  %3197 = vmatmul.mubr.msk.bf16.gmra.mxu1 %vm477_vm0, %v454_v13 }
 0x15e   : > { %5939 = vst [vmem:[#allocation44_spill] sm:$0xff] %v4078_v16  ;;  %5940 = vst [vmem:[#allocation45_spill] sm:$0xff] %v4081_v17  ;;  %906 = vmatprep.mubr.bf16.mxu0 %v5636_v0  ;;  %1259 = vmatprep.mubr.bf16.mxu1 %v5636_v0 }
 0x15f   : > { %v4086_v18 = vpop.f32.mrf.mxu0  ;;  %v4088_v19 = vpop.f32.mrf.mxu1 }
 0x160   : > { %5941 = vst [vmem:[#allocation46_spill] sm:$0xff] %v4086_v18  ;;  %5942 = vst [vmem:[#allocation47_spill] sm:$0xff] %v4088_v19 }
 0x161   : > { %v4090_v20 = vpop.f32.mrf.mxu0  ;;  %v4092_v21 = vpop.f32.mrf.mxu1 }
 0x162   : > { %5943 = vst [vmem:[#allocation48_spill] sm:$0xff] %v4090_v20  ;;  %5944 = vst [vmem:[#allocation49_spill] sm:$0xff] %v4092_v21 }
 0x163   : > { %v4094_v23 = vpop.f32.mrf.mxu0  ;;  %v4096_v24 = vpop.f32.mrf.mxu1 }
 0x164   : > { %5945 = vst [vmem:[#allocation50_spill] sm:$0xff] %v4094_v23  ;;  %5946 = vst [vmem:[#allocation51_spill] sm:$0xff] %v4096_v24 }
 0x165   : > { %v4098_v25 = vpop.f32.mrf.mxu0  ;;  %3166 = vmatmul.mubr.msk.bf16.gmra.mxu0 %vm477_vm0, %v455_v22  ;;  %v4101_v26 = vpop.f32.mrf.mxu1  ;;  %3198 = vmatmul.mubr.msk.bf16.gmra.mxu1 %vm477_vm0, %v455_v22 }
 0x166   : > { %5947 = vst [vmem:[#allocation52_spill] sm:$0xff] %v4098_v25  ;;  %5948 = vst [vmem:[#allocation53_spill] sm:$0xff] %v4101_v26  ;;  %916 = vmatprep.mubr.bf16.mxu0 %v5636_v0  ;;  %1269 = vmatprep.mubr.bf16.mxu1 %v5636_v0 }
 0x167   : > { %v4106_v27 = vpop.f32.mrf.mxu0  ;;  %v4108_v28 = vpop.f32.mrf.mxu1 }
 0x168   : > { %5949 = vst [vmem:[#allocation54_spill] sm:$0xff] %v4106_v27  ;;  %5950 = vst [vmem:[#allocation55_spill] sm:$0xff] %v4108_v28 }
 0x169   : > { %v4110_v29 = vpop.f32.mrf.mxu0  ;;  %v4112_v30 = vpop.f32.mrf.mxu1 }
 0x16a   : > { %5951 = vst [vmem:[#allocation56_spill] sm:$0xff] %v4110_v29  ;;  %5952 = vst [vmem:[#allocation57_spill] sm:$0xff] %v4112_v30 }
 0x16b   : > { %v4114_v32 = vpop.f32.mrf.mxu0  ;;  %v4116_v33 = vpop.f32.mrf.mxu1 }
 0x16c   : > { %5953 = vst [vmem:[#allocation58_spill] sm:$0xff] %v4114_v32  ;;  %5954 = vst [vmem:[#allocation59_spill] sm:$0xff] %v4116_v33 }
 0x16d   : > { %v4118_v40 = vpop.f32.mrf.mxu0  ;;  %3167 = vmatmul.mubr.msk.bf16.gmra.mxu0 %vm477_vm0, %v456_v31  ;;  %v4121_v49 = vpop.f32.mrf.mxu1  ;;  %3199 = vmatmul.mubr.msk.bf16.gmra.mxu1 %vm477_vm0, %v456_v31 }
 0x16e   : > { %5955 = vst [vmem:[#allocation60_spill] sm:$0xff] %v4118_v40  ;;  %5956 = vst [vmem:[#allocation61_spill] sm:$0xff] %v4121_v49 }
 0x16f   : > { %v4124_v58 = vpop.f32.mrf.mxu0  ;;  %v4126_v4 = vpop.f32.mrf.mxu1 }
 0x170   : > { %5957 = vst [vmem:[#allocation62_spill] sm:$0xff] %v4124_v58  ;;  %5958 = vst [vmem:[#allocation63_spill] sm:$0xff] %v4126_v4 }
 0x171   : > { %v4128_v13 = vpop.f32.mrf.mxu0  ;;  %v4130_v22 = vpop.f32.mrf.mxu1 }
 0x172   : > { %5959 = vst [vmem:[#allocation64_spill] sm:$0xff] %v4128_v13  ;;  %5960 = vst [vmem:[#allocation65_spill] sm:$0xff] %v4130_v22 }
 0x173   : > { %v4132_v0 = vpop.f32.mrf.mxu0  ;;  %v4134_v32 = vpop.f32.mrf.mxu1 }
 0x174   : > { %5961 = vst [vmem:[#allocation66_spill] sm:$0xff] %v4132_v0  ;;  %5962 = vst [vmem:[#allocation67_spill] sm:$0xff] %v4134_v32 }
 0x175   : > { %v4136_v33 = vpop.f32.mrf.mxu0  ;;  %v4138_v40 = vpop.f32.mrf.mxu1 }
 0x176   : > { %5963 = vst [vmem:[#allocation68_spill] sm:$0xff] %v4136_v33  ;;  %5964 = vst [vmem:[#allocation69_spill] sm:$0xff] %v4138_v40 }
 0x177   : > { %v4140_v30 = vpop.f32.mrf.mxu0  ;;  %v4142_v49 = vpop.f32.mrf.mxu1 }
 0x178   : > { %5965 = vst [vmem:[#allocation70_spill] sm:$0xff] %v4140_v30  ;;  %5966 = vst [vmem:[#allocation71_spill] sm:$0xff] %v4142_v49 }
 0x179   : > { %v4144_v31 = vpop.f32.mrf.mxu0  ;;  %v4146_v58 = vpop.f32.mrf.mxu1 }
 0x17a   : > { %5967 = vst [vmem:[#allocation72_spill] sm:$0xff] %v4144_v31  ;;  %5968 = vst [vmem:[#allocation73_spill] sm:$0xff] %v4146_v58 }
 0x17b   : > { %v4148_v4 = vpop.f32.mrf.mxu0  ;;  %v4150_v13 = vpop.f32.mrf.mxu1 }
 0x17c   : > { %5969 = vst [vmem:[#allocation74_spill] sm:$0xff] %v4148_v4  ;;  %5970 = vst [vmem:[#allocation75_spill] sm:$0xff] %v4150_v13 }
 0x17d   : > { %v4152_v22 = vpop.f32.mrf.mxu0  ;;  %v4154_v0 = vpop.f32.mrf.mxu1 }
 0x17e   : > { %5971 = vst [vmem:[#allocation76_spill] sm:$0xff] %v4152_v22  ;;  %5972 = vst [vmem:[#allocation77_spill] sm:$0xff] %v4154_v0 }
 0x17f   : > { %v4156_v32 = vpop.f32.mrf.mxu0  ;;  %v4158_v33 = vpop.f32.mrf.mxu1 }
 0x180   : > { %5973 = vst [vmem:[#allocation78_spill] sm:$0xff] %v4156_v32  ;;  %5974 = vst [vmem:[#allocation79_spill] sm:$0xff] %v4158_v33 }
 0x181   : > { %v4160_v40 = vpop.f32.mrf.mxu0  ;;  %v4162_v30 = vpop.f32.mrf.mxu1 }
 0x182   : > { %5975 = vst [vmem:[#allocation80_spill] sm:$0xff] %v4160_v40  ;;  %5976 = vst [vmem:[#allocation81_spill] sm:$0xff] %v4162_v30 }
 0x183   : > { %v4164_v49 = vpop.f32.mrf.mxu0  ;;  %v4166_v31 = vpop.f32.mrf.mxu1 }
 0x184   : > { %5977 = vst [vmem:[#allocation82_spill] sm:$0xff] %v4164_v49  ;;  %5978 = vst [vmem:[#allocation83_spill] sm:$0xff] %v4166_v31 }
 0x185   : > { %v4168_v58 = vpop.f32.mrf.mxu0  ;;  %v4170_v4 = vpop.f32.mrf.mxu1 }
 0x186   : > { %5979 = vst [vmem:[#allocation84_spill] sm:$0xff] %v4168_v58  ;;  %5980 = vst [vmem:[#allocation85_spill] sm:$0xff] %v4170_v4 }
 0x187   : > { %v4172_v13 = vpop.f32.mrf.mxu0  ;;  %v4174_v22 = vpop.f32.mrf.mxu1 }
 0x188   : > { %5981 = vst [vmem:[#allocation86_spill] sm:$0xff] %v4172_v13  ;;  %5982 = vst [vmem:[#allocation87_spill] sm:$0xff] %v4174_v22 }
 0x189   : > { %v4176_v0 = vpop.f32.mrf.mxu0  ;;  %v4178_v32 = vpop.f32.mrf.mxu1 }
 0x18a   : > { %5983 = vst [vmem:[#allocation88_spill] sm:$0xff] %v4176_v0  ;;  %5984 = vst [vmem:[#allocation89_spill] sm:$0xff] %v4178_v32 }
 0x18b   : > { %v4180_v33 = vpop.f32.mrf.mxu0  ;;  %v4182_v40 = vpop.f32.mrf.mxu1 }
 0x18c   : > { %5985 = vst [vmem:[#allocation90_spill] sm:$0xff] %v4180_v33  ;;  %5986 = vst [vmem:[#allocation91_spill] sm:$0xff] %v4182_v40 }
 0x18d   : > { %v4184_v30 = vpop.f32.mrf.mxu0  ;;  %v4186_v49 = vpop.f32.mrf.mxu1 }
 0x18e   : > { %5987 = vst [vmem:[#allocation92_spill] sm:$0xff] %v4184_v30  ;;  %5988 = vst [vmem:[#allocation93_spill] sm:$0xff] %v4186_v49 }
 0x18f   : > { %v4188_v31 = vpop.f32.mrf.mxu0  ;;  %v4190_v58 = vpop.f32.mrf.mxu1 }
 0x190   : > { %5989 = vst [vmem:[#allocation94_spill] sm:$0xff] %v4188_v31  ;;  %5990 = vst [vmem:[#allocation95_spill] sm:$0xff] %v4190_v58 }
 0x191   : > { %v4192_v4 = vpop.f32.mrf.mxu0  ;;  %v4194_v13 = vpop.f32.mrf.mxu1 }
 0x192   : > { %5991 = vst [vmem:[#allocation96_spill] sm:$0xff] %v4192_v4  ;;  %5992 = vst [vmem:[#allocation97_spill] sm:$0xff] %v4194_v13 }
 0x193   : > { %v4196_v22 = vpop.f32.mrf.mxu0  ;;  %v4198_v0 = vpop.f32.mrf.mxu1 }
 0x194   : > { %5993 = vst [vmem:[#allocation98_spill] sm:$0xff] %v4196_v22  ;;  %5994 = vst [vmem:[#allocation99_spill] sm:$0xff] %v4198_v0 }
 0x195   : > { %v4200_v32 = vpop.f32.mrf.mxu0  ;;  %v4202_v33 = vpop.f32.mrf.mxu1 }
 0x196   : > { %5995 = vst [vmem:[#allocation100_spill] sm:$0xff] %v4200_v32  ;;  %5996 = vst [vmem:[#allocation101_spill] sm:$0xff] %v4202_v33 }
 0x197   : > { %v4204_v40 = vpop.f32.mrf.mxu0  ;;  %v4206_v30 = vpop.f32.mrf.mxu1 }
 0x198   : > { %5997 = vst [vmem:[#allocation102_spill] sm:$0xff] %v4204_v40  ;;  %5998 = vst [vmem:[#allocation103_spill] sm:$0xff] %v4206_v30 }
 0x199   : > { %v4208_v49 = vpop.f32.mrf.mxu0  ;;  %v4210_v31 = vpop.f32.mrf.mxu1 }
 0x19a   : > { %5999 = vst [vmem:[#allocation104_spill] sm:$0xff] %v4208_v49  ;;  %6000 = vst [vmem:[#allocation105_spill] sm:$0xff] %v4210_v31 }
 0x19b   : > { %v4212_v58 = vpop.f32.mrf.mxu0  ;;  %v4214_v4 = vpop.f32.mrf.mxu1 }
 0x19c   : > { %6001 = vst [vmem:[#allocation106_spill] sm:$0xff] %v4212_v58  ;;  %6002 = vst [vmem:[#allocation107_spill] sm:$0xff] %v4214_v4 }
 0x19d   : > { %v4216_v13 = vpop.f32.mrf.mxu0  ;;  %v4218_v22 = vpop.f32.mrf.mxu1 }
 0x19e   : > { %6003 = vst [vmem:[#allocation108_spill] sm:$0xff] %v4216_v13  ;;  %6004 = vst [vmem:[#allocation109_spill] sm:$0xff] %v4218_v22 }
 0x19f   : > { %v4220_v0 = vpop.f32.mrf.mxu0  ;;  %v4222_v32 = vpop.f32.mrf.mxu1 }
 0x1a0   : > { %6005 = vst [vmem:[#allocation110_spill] sm:$0xff] %v4220_v0  ;;  %6006 = vst [vmem:[#allocation111_spill] sm:$0xff] %v4222_v32 }
 0x1a1   : > { %v4224_v33 = vpop.f32.mrf.mxu0  ;;  %v4226_v40 = vpop.f32.mrf.mxu1 }
 0x1a2   : > { %6007 = vst [vmem:[#allocation112_spill] sm:$0xff] %v4224_v33  ;;  %6008 = vst [vmem:[#allocation113_spill] sm:$0xff] %v4226_v40 }
 0x1a3   : > { %v4228_v30 = vpop.f32.mrf.mxu0  ;;  %v4230_v49 = vpop.f32.mrf.mxu1 }
 0x1a4   : > { %6009 = vst [vmem:[#allocation114_spill] sm:$0xff] %v4228_v30  ;;  %6010 = vst [vmem:[#allocation115_spill] sm:$0xff] %v4230_v49 }
 0x1a5   : > { %v4232_v31 = vpop.f32.mrf.mxu0  ;;  %v4234_v58 = vpop.f32.mrf.mxu1 }
 0x1a6   : > { %6011 = vst [vmem:[#allocation116_spill] sm:$0xff] %v4232_v31  ;;  %6012 = vst [vmem:[#allocation117_spill] sm:$0xff] %v4234_v58 }
 0x1a7   : > { %v4236_v4 = vpop.f32.mrf.mxu0  ;;  %v4238_v13 = vpop.f32.mrf.mxu1 }
 0x1a8   : > { %6013 = vst [vmem:[#allocation118_spill] sm:$0xff] %v4236_v4  ;;  %6014 = vst [vmem:[#allocation119_spill] sm:$0xff] %v4238_v13 }
 0x1a9   : > { %v4240_v22 = vpop.f32.mrf.mxu0  ;;  %v4242_v0 = vpop.f32.mrf.mxu1 }
 0x1aa   : > { %6015 = vst [vmem:[#allocation120_spill] sm:$0xff] %v4240_v22  ;;  %6016 = vst [vmem:[#allocation121_spill] sm:$0xff] %v4242_v0 }
 0x1ab   : > { %v4244_v32 = vpop.f32.mrf.mxu0  ;;  %v4246_v33 = vpop.f32.mrf.mxu1 }
 0x1ac   : > { %6017 = vst [vmem:[#allocation122_spill] sm:$0xff] %v4244_v32  ;;  %6018 = vst [vmem:[#allocation123_spill] sm:$0xff] %v4246_v33 }
 0x1ad   : > { %v4248_v40 = vpop.f32.mrf.mxu0  ;;  %v4250_v30 = vpop.f32.mrf.mxu1 }
 0x1ae   : > { %6019 = vst [vmem:[#allocation124_spill] sm:$0xff] %v4248_v40  ;;  %6020 = vst [vmem:[#allocation125_spill] sm:$0xff] %v4250_v30  ;;  %v1281_v40 = vmax.f32 %v3978_v34, %v3990_v38 }
 0x1af   : > { %v4252_v49 = vpop.f32.mrf.mxu0  ;;  %v4254_v31 = vpop.f32.mrf.mxu1 }
 0x1b0   : > { %6021 = vst [vmem:[#allocation126_spill] sm:$0xff] %v4252_v49  ;;  %6022 = vst [vmem:[#allocation127_spill] sm:$0xff] %v4254_v31  ;;  %v1419_v49 = vmax.f32 %v3981_v35, %v3992_v39  ;;  %v1350_v31 = vmax.f32 %v3986_v36, %v3994_v41 }
 0x1b1   : > { %v4256_v58 = vpop.f32.mrf.mxu0  ;;  %v4258_v4 = vpop.f32.mrf.mxu1 }
 0x1b2   : > { %6023 = vst [vmem:[#allocation128_spill] sm:$0xff] %v4256_v58  ;;  %6024 = vst [vmem:[#allocation129_spill] sm:$0xff] %v4258_v4 }
 0x1b3   : > { %v4260_v13 = vpop.f32.mrf.mxu0  ;;  %v4262_v22 = vpop.f32.mrf.mxu1 }
 0x1b4   : > { %6025 = vst [vmem:[#allocation130_spill] sm:$0xff] %v4260_v13  ;;  %6026 = vst [vmem:[#allocation131_spill] sm:$0xff] %v4262_v22  ;;  %v1488_v22 = vmax.f32 %v3988_v37, %v3996_v42  ;;  %v1351_v13 = vmax.f32 %v1350_v31, %v4006_v45 }
 0x1b5   : > { %v4264_v0 = vpop.f32.mrf.mxu0  ;;  %v4266_v32 = vpop.f32.mrf.mxu1 }
 0x1b6   : > { %6027 = vst [vmem:[#allocation132_spill] sm:$0xff] %v4264_v0  ;;  %6028 = vst [vmem:[#allocation133_spill] sm:$0xff] %v4266_v32  ;;  %v1282_v0 = vmax.f32 %v1281_v40, %v3998_v43  ;;  %v1420_v32 = vmax.f32 %v1419_v49, %v4001_v44  ;;  %v1489_v39 = vmax.f32 %v1488_v22, %v4008_v46 }
 0x1b7   : > { %v4274_v58 = vpop.f32.mrf.mxu0  ;;  %v4276_v4 = vpop.f32.mrf.mxu1  ;;  %v1352_v36 = vmax.f32 %v1351_v13, %v4014_v50 }
 0x1b8   : > { %6029 = vst [vmem:[#allocation134_spill] sm:$0xff] %v4274_v58  ;;  %6030 = vst [vmem:[#allocation135_spill] sm:$0xff] %v4276_v4  ;;  %v1283_v41 = vmax.f32 %v1282_v0, %v4010_v47  ;;  %v1421_v35 = vmax.f32 %v1420_v32, %v4012_v48  ;;  %v1490_v40 = vmax.f32 %v1489_v39, %v4016_v51  ;;  %v5729_v48 = vlaneseq }
 0x1b9   : > { %v4283_v38 = vpop.f32.mrf.mxu0  ;;  %v4285_v34 = vpop.f32.mrf.mxu1  ;;  %v1353_v44 = vmax.f32 %v1352_v36, %v4026_v54 }
 0x1ba   : > { %6031 = vst [vmem:[#allocation136_spill] sm:$0xff] %v4283_v38  ;;  %6032 = vst [vmem:[#allocation137_spill] sm:$0xff] %v4285_v34  ;;  %v1284_v49 = vmax.f32 %v1283_v41, %v4018_v52  ;;  %v1422_v31 = vmax.f32 %v1421_v35, %v4021_v53  ;;  %v1491_v0 = vmax.f32 %v1490_v40, %v4028_v55  ;;  %vm4319_vm1 = vcmp.lt.s32.totalorder %v5729_v48, 512 }
 0x1bb   : > { %v4291_v4 = vpop.f32.mrf.mxu0  ;;  %v4293_v42 = vpop.f32.mrf.mxu1  ;;  %v1354_v41 = vmax.f32 %v1353_v44, %v4034_v59 }
 0x1bc   : > { %6033 = vst [vmem:[#allocation138_spill] sm:$0xff] %v4291_v4  ;;  %6034 = vst [vmem:[#allocation139_spill] sm:$0xff] %v4293_v42  ;;  %v1285_v32 = vmax.f32 %v1284_v49, %v4030_v56  ;;  %v1423_v13 = vmax.f32 %v1422_v31, %v4032_v57  ;;  %v1492_v35 = vmax.f32 %v1491_v0, %v4036_v60  ;;  %v6041_v49 = vmov 0 }
 0x1bd   : > { %v4299_v45 = vpop.f32.mrf.mxu0  ;;  %v4301_v22 = vpop.f32.mrf.mxu1  ;;  %v6042_v49 = vsel %vm4319_vm1, 4294967295, %v6041_v49  ;;  %v1355_v31 = vmax.f32 %v1354_v41, %v4046_v63 }
 0x1be   : > { %6035 = vst [vmem:[#allocation140_spill] sm:$0xff] %v4299_v45  ;;  %6036 = vst [vmem:[#allocation141_spill] sm:$0xff] %v4301_v22  ;;  %v1286_v36 = vmax.f32 %v1285_v32, %v4038_v61  ;;  %v1424_v53 = vmax.f32 %v1423_v13, %v4041_v62  ;;  %v1493_v57 = vmax.f32 %v1492_v35, %v4048_v1  ;;  %v3819_v32 = vmov -inf  }
 0x1bf   : > { %v4306_v50 = vpop.f32.mrf.mxu0  ;;  %v4308_v39 = vpop.f32.mrf.mxu1  ;;  %6043 = vst [vmem:[#allocation146_spill] sm:$0xff] %v6042_v49  ;;  %352 = vst.msk [vmem:[#allocation2] sm:$0xf] %vm4319_vm1, %v3819_v32  ;;  %v1356_v48 = vmax.f32 %v1355_v31, %v4054_v5 }
 0x1c0   : > { %6037 = vst [vmem:[#allocation142_spill] sm:$0xff] %v4306_v50  ;;  %6038 = vst [vmem:[#allocation143_spill] sm:$0xff] %v4308_v39  ;;  %v1287_v44 = vmax.f32 %v1286_v36, %v4050_v2  ;;  %v1425_v0 = vmax.f32 %v1424_v53, %v4052_v3  ;;  %v1494_v61 = vmax.f32 %v1493_v57, %v4056_v6 }
 0x1c1   : > { %v4314_v54 = vpop.f32.mrf.mxu0  ;;  %v4316_v40 = vpop.f32.mrf.mxu1  ;;  %v1357_v53 = vmax.f32 %v1356_v48, %v4066_v9 }
 0x1c2   : > { %6039 = vst [vmem:[#allocation144_spill] sm:$0xff] %v4314_v54  ;;  %6040 = vst [vmem:[#allocation145_spill] sm:$0xff] %v4316_v40  ;;  %v1288_v41 = vmax.f32 %v1287_v44, %v4058_v7  ;;  %v1426_v35 = vmax.f32 %v1425_v0, %v4061_v8  ;;  %v1495_v32 = vmax.f32 %v1494_v61, %v4068_v10 }
 0x1c3   : > { %v4329_v13 = vpop.f32.mrf.mxu0  ;;  %v4331_v62 = vpop.f32.mrf.mxu1  ;;  %v1358_v57 = vmax.f32 %v1357_v53, %v4074_v14 }
 0x1c4   : > { %6044 = vst [vmem:[#allocation147_spill] sm:$0xff] %v4329_v13  ;;  %6045 = vst [vmem:[#allocation148_spill] sm:$0xff] %v4331_v62  ;;  %v1289_v3 = vmax.f32 %v1288_v41, %v4070_v11  ;;  %v1427_v2 = vmax.f32 %v1426_v35, %v4072_v12  ;;  %v1496_v44 = vmax.f32 %v1495_v32, %v4076_v15 }
 0x1c5   : > { %v4337_v1 = vpop.f32.mrf.mxu0  ;;  %v4339_v36 = vpop.f32.mrf.mxu1  ;;  %v1359_v61 = vmax.f32 %v1358_v57, %v4086_v18 }
 0x1c6   : > { %6046 = vst [vmem:[#allocation149_spill] sm:$0xff] %v4337_v1  ;;  %6047 = vst [vmem:[#allocation150_spill] sm:$0xff] %v4339_v36  ;;  %v1290_v0 = vmax.f32 %v1289_v3, %v4078_v16  ;;  %v1428_v8 = vmax.f32 %v1427_v2, %v4081_v17  ;;  %v1497_v41 = vmax.f32 %v1496_v44, %v4088_v19 }
 0x1c7   : > { %v4345_v63 = vpop.f32.mrf.mxu0  ;;  %v4347_v31 = vpop.f32.mrf.mxu1  ;;  %v1360_v3 = vmax.f32 %v1359_v61, %v4094_v23 }
 0x1c8   : > { %6048 = vst [vmem:[#allocation151_spill] sm:$0xff] %v4345_v63  ;;  %6049 = vst [vmem:[#allocation152_spill] sm:$0xff] %v4347_v31  ;;  %v1291_v35 = vmax.f32 %v1290_v0, %v4090_v20  ;;  %v1429_v12 = vmax.f32 %v1428_v8, %v4092_v21  ;;  %v1498_v2 = vmax.f32 %v1497_v41, %v4096_v24  ;;  %v6056_v21 = vld [vmem:[#allocation57_spill] sm:$0xff]  ;;  %v6059_v41 = vld [vmem:[#allocation58_spill] sm:$0xff] }
 0x1c9   : > { %v4353_v7 = vpop.f32.mrf.mxu0  ;;  %v4355_v48 = vpop.f32.mrf.mxu1  ;;  %v1361_v44 = vmax.f32 %v1360_v3, %v4106_v27  ;;  %v6060_v24 = vld [vmem:[#allocation59_spill] sm:$0xff]  ;;  %v6062_v20 = vld [vmem:[#allocation61_spill] sm:$0xff] }
 0x1ca   : > { %6050 = vst [vmem:[#allocation153_spill] sm:$0xff] %v4353_v7  ;;  %6051 = vst [vmem:[#allocation154_spill] sm:$0xff] %v4355_v48  ;;  %v1292_v32 = vmax.f32 %v1291_v35, %v4098_v25  ;;  %v1430_v17 = vmax.f32 %v1429_v12, %v4101_v26  ;;  %v1499_v8 = vmax.f32 %v1498_v2, %v4108_v28  ;;  %v6061_v26 = vld [vmem:[#allocation60_spill] sm:$0xff]  ;;  %v6065_v2 = vld [vmem:[#allocation62_spill] sm:$0xff] }
 0x1cb   : > { %v4361_v10 = vpop.f32.mrf.mxu0  ;;  %v4363_v53 = vpop.f32.mrf.mxu1  ;;  %v1362_v35 = vmax.f32 %v1361_v44, %v6059_v41  ;;  %v6066_v28 = vld [vmem:[#allocation63_spill] sm:$0xff]  ;;  %v6074_v27 = vld [vmem:[#allocation69_spill] sm:$0xff] }
 0x1cc   : > { %6052 = vst [vmem:[#allocation155_spill] sm:$0xff] %v4361_v10  ;;  %6053 = vst [vmem:[#allocation156_spill] sm:$0xff] %v4363_v53  ;;  %v1293_v0 = vmax.f32 %v1292_v32, %v4110_v29  ;;  %v1431_v19 = vmax.f32 %v1430_v17, %v6056_v21  ;;  %v1500_v12 = vmax.f32 %v1499_v8, %v6060_v24  ;;  %v6067_v21 = vld [vmem:[#allocation64_spill] sm:$0xff]  ;;  %v6068_v29 = vld [vmem:[#allocation65_spill] sm:$0xff] }
 0x1cd   : > { %v4369_v15 = vpop.f32.mrf.mxu0  ;;  %v4371_v57 = vpop.f32.mrf.mxu1  ;;  %v1363_v32 = vmax.f32 %v1362_v35, %v6065_v2  ;;  %v6071_v8 = vld [vmem:[#allocation66_spill] sm:$0xff]  ;;  %v6072_v24 = vld [vmem:[#allocation67_spill] sm:$0xff]  ;;  %v6080_v2 = vld [vmem:[#allocation73_spill] sm:$0xff] }
 0x1ce   : > { %6054 = vst [vmem:[#allocation157_spill] sm:$0xff] %v4369_v15  ;;  %6055 = vst [vmem:[#allocation158_spill] sm:$0xff] %v4371_v57  ;;  %v1294_v14 = vmax.f32 %v1293_v0, %v6061_v26  ;;  %v1432_v16 = vmax.f32 %v1431_v19, %v6062_v20  ;;  %v1501_v17 = vmax.f32 %v1500_v12, %v6066_v28  ;;  %v6073_v20 = vld [vmem:[#allocation68_spill] sm:$0xff]  ;;  %v6077_v12 = vld [vmem:[#allocation70_spill] sm:$0xff] }
 0x1cf   : > { %v4377_v11 = vpop.f32.mrf.mxu0  ;;  %v4379_v61 = vpop.f32.mrf.mxu1  ;;  %v1364_v0 = vmax.f32 %v1363_v32, %v6071_v8  ;;  %v6078_v28 = vld [vmem:[#allocation71_spill] sm:$0xff]  ;;  %v6086_v8 = vld [vmem:[#allocation77_spill] sm:$0xff] }
 0x1d0   : > { %6057 = vst [vmem:[#allocation159_spill] sm:$0xff] %v4377_v11  ;;  %6058 = vst [vmem:[#allocation160_spill] sm:$0xff] %v4379_v61  ;;  %v1295_v23 = vmax.f32 %v1294_v14, %v6067_v21  ;;  %v1433_v25 = vmax.f32 %v1432_v16, %v6068_v29  ;;  %v1502_v19 = vmax.f32 %v1501_v17, %v6072_v24  ;;  %v6079_v29 = vld [vmem:[#allocation72_spill] sm:$0xff]  ;;  %v6083_v17 = vld [vmem:[#allocation74_spill] sm:$0xff] }
 0x1d1   : > { %v4385_v9 = vpop.f32.mrf.mxu0  ;;  %v4387_v3 = vpop.f32.mrf.mxu1  ;;  %v1365_v14 = vmax.f32 %v1364_v0, %v6077_v12  ;;  %v6092_v12 = vld [vmem:[#allocation81_spill] sm:$0xff] }
 0x1d2   : > { %6063 = vst [vmem:[#allocation161_spill] sm:$0xff] %v4385_v9  ;;  %6064 = vst [vmem:[#allocation162_spill] sm:$0xff] %v4387_v3  ;;  %v1296_v41 = vmax.f32 %v1295_v23, %v6073_v20  ;;  %v1434_v26 = vmax.f32 %v1433_v25, %v6074_v27  ;;  %v1503_v16 = vmax.f32 %v1502_v19, %v6078_v28  ;;  %v6084_v20 = vld [vmem:[#allocation75_spill] sm:$0xff]  ;;  %v6085_v27 = vld [vmem:[#allocation76_spill] sm:$0xff] }
 0x1d3   : > { %v4393_v18 = vpop.f32.mrf.mxu0  ;;  %v4395_v44 = vpop.f32.mrf.mxu1  ;;  %v1366_v23 = vmax.f32 %v1365_v14, %v6083_v17  ;;  %v6089_v19 = vld [vmem:[#allocation78_spill] sm:$0xff]  ;;  %v6090_v28 = vld [vmem:[#allocation79_spill] sm:$0xff]  ;;  %v6098_v17 = vld [vmem:[#allocation85_spill] sm:$0xff] }
 0x1d4   : > { %6069 = vst [vmem:[#allocation163_spill] sm:$0xff] %v4393_v18  ;;  %6070 = vst [vmem:[#allocation164_spill] sm:$0xff] %v4395_v44  ;;  %v1297_v21 = vmax.f32 %v1296_v41, %v6079_v29  ;;  %v1435_v5 = vmax.f32 %v1434_v26, %v6080_v2  ;;  %v1504_v25 = vmax.f32 %v1503_v16, %v6084_v20  ;;  %v6091_v2 = vld [vmem:[#allocation80_spill] sm:$0xff]  ;;  %v6095_v16 = vld [vmem:[#allocation82_spill] sm:$0xff] }
 0x1d5   : > { %v4401_v6 = vpop.f32.mrf.mxu0  ;;  %v4403_v35 = vpop.f32.mrf.mxu1  ;;  %v1367_v41 = vmax.f32 %v1366_v23, %v6089_v19  ;;  %v6096_v20 = vld [vmem:[#allocation83_spill] sm:$0xff]  ;;  %v6104_v19 = vld [vmem:[#allocation89_spill] sm:$0xff] }
 0x1d6   : > { %6075 = vst [vmem:[#allocation165_spill] sm:$0xff] %v4401_v6  ;;  %6076 = vst [vmem:[#allocation166_spill] sm:$0xff] %v4403_v35  ;;  %v1298_v24 = vmax.f32 %v1297_v21, %v6085_v27  ;;  %v1436_v59 = vmax.f32 %v1435_v5, %v6086_v8  ;;  %v1505_v26 = vmax.f32 %v1504_v25, %v6090_v28  ;;  %v6097_v8 = vld [vmem:[#allocation84_spill] sm:$0xff]  ;;  %v6101_v25 = vld [vmem:[#allocation86_spill] sm:$0xff] }
 0x1d7   : > { %v4409_v60 = vpop.f32.mrf.mxu0  ;;  %v4411_v32 = vpop.f32.mrf.mxu1  ;;  %v1368_v21 = vmax.f32 %v1367_v41, %v6095_v16  ;;  %v6102_v28 = vld [vmem:[#allocation87_spill] sm:$0xff]  ;;  %v6110_v16 = vld [vmem:[#allocation93_spill] sm:$0xff] }
 0x1d8   : > { %6081 = vst [vmem:[#allocation167_spill] sm:$0xff] %v4409_v60  ;;  %6082 = vst [vmem:[#allocation168_spill] sm:$0xff] %v4411_v32  ;;  %v1299_v29 = vmax.f32 %v1298_v24, %v6091_v2  ;;  %v1437_v55 = vmax.f32 %v1436_v59, %v6092_v12  ;;  %v1506_v5 = vmax.f32 %v1505_v26, %v6096_v20  ;;  %v6103_v12 = vld [vmem:[#allocation88_spill] sm:$0xff]  ;;  %v6107_v26 = vld [vmem:[#allocation90_spill] sm:$0xff] }
 0x1d9   : > { %v4417_v56 = vpop.f32.mrf.mxu0  ;;  %v4419_v0 = vpop.f32.mrf.mxu1  ;;  %v1369_v24 = vmax.f32 %v1368_v21, %v6101_v25  ;;  %v6108_v20 = vld [vmem:[#allocation91_spill] sm:$0xff]  ;;  %v6116_v25 = vld [vmem:[#allocation97_spill] sm:$0xff] }
 0x1da   : > { %6087 = vst [vmem:[#allocation169_spill] sm:$0xff] %v4417_v56  ;;  %6088 = vst [vmem:[#allocation170_spill] sm:$0xff] %v4419_v0  ;;  %v1300_v27 = vmax.f32 %v1299_v29, %v6097_v8  ;;  %v1438_v51 = vmax.f32 %v1437_v55, %v6098_v17  ;;  %v1507_v59 = vmax.f32 %v1506_v5, %v6102_v28  ;;  %v6109_v17 = vld [vmem:[#allocation92_spill] sm:$0xff]  ;;  %v6113_v5 = vld [vmem:[#allocation94_spill] sm:$0xff] }
 0x1db   : > { %v4425_v52 = vpop.f32.mrf.mxu0  ;;  %v4427_v14 = vpop.f32.mrf.mxu1  ;;  %v1370_v29 = vmax.f32 %v1369_v24, %v6107_v26  ;;  %v6114_v28 = vld [vmem:[#allocation95_spill] sm:$0xff] }
 0x1dc   : > { %6093 = vst [vmem:[#allocation171_spill] sm:$0xff] %v4425_v52  ;;  %6094 = vst [vmem:[#allocation172_spill] sm:$0xff] %v4427_v14  ;;  %v1301_v2 = vmax.f32 %v1300_v27, %v6103_v12  ;;  %v1439_v46 = vmax.f32 %v1438_v51, %v6104_v19  ;;  %v1508_v55 = vmax.f32 %v1507_v59, %v6108_v20  ;;  %v6115_v19 = vld [vmem:[#allocation96_spill] sm:$0xff]  ;;  %v6119_v59 = vld [vmem:[#allocation98_spill] sm:$0xff] }
 0x1dd   : > { %v4433_v47 = vpop.f32.mrf.mxu0  ;;  %v4435_v23 = vpop.f32.mrf.mxu1  ;;  %v1371_v27 = vmax.f32 %v1370_v29, %v6113_v5  ;;  %v6120_v20 = vld [vmem:[#allocation99_spill] sm:$0xff]  ;;  %v6128_v5 = vld [vmem:[#allocation105_spill] sm:$0xff] }
 0x1de   : > { %6099 = vst [vmem:[#allocation173_spill] sm:$0xff] %v4433_v47  ;;  %6100 = vst [vmem:[#allocation174_spill] sm:$0xff] %v4435_v23  ;;  %v1302_v8 = vmax.f32 %v1301_v2, %v6109_v17  ;;  %v1440_v37 = vmax.f32 %v1439_v46, %v6110_v16  ;;  %v1509_v51 = vmax.f32 %v1508_v55, %v6114_v28  ;;  %v6121_v16 = vld [vmem:[#allocation100_spill] sm:$0xff]  ;;  %v6122_v17 = vld [vmem:[#allocation101_spill] sm:$0xff] }
 0x1df   : > { %v4441_v43 = vpop.f32.mrf.mxu0  ;;  %v4443_v41 = vpop.f32.mrf.mxu1  ;;  %v1372_v2 = vmax.f32 %v1371_v27, %v6119_v59  ;;  %v6125_v55 = vld [vmem:[#allocation102_spill] sm:$0xff]  ;;  %v6126_v28 = vld [vmem:[#allocation103_spill] sm:$0xff] }
 0x1e0   : > { %6105 = vst [vmem:[#allocation175_spill] sm:$0xff] %v4441_v43  ;;  %6106 = vst [vmem:[#allocation176_spill] sm:$0xff] %v4443_v41  ;;  %v1303_v12 = vmax.f32 %v1302_v8, %v6115_v19  ;;  %v1441_v41 = vmax.f32 %v1440_v37, %v6116_v25  ;;  %v1510_v46 = vmax.f32 %v1509_v51, %v6120_v20  ;;  %v6127_v25 = vld [vmem:[#allocation104_spill] sm:$0xff]  ;;  %v6131_v51 = vld [vmem:[#allocation106_spill] sm:$0xff] }
 0x1e1   : > { %v4449_v49 = vpop.f32.mrf.mxu0  ;;  %v4451_v21 = vpop.f32.mrf.mxu1  ;;  %v1373_v8 = vmax.f32 %v1372_v2, %v6125_v55  ;;  %v6132_v20 = vld [vmem:[#allocation107_spill] sm:$0xff]  ;;  %v6140_v55 = vld [vmem:[#allocation113_spill] sm:$0xff] }
 0x1e2   : > { %6111 = vst [vmem:[#allocation177_spill] sm:$0xff] %v4449_v49  ;;  %6112 = vst [vmem:[#allocation178_spill] sm:$0xff] %v4451_v21  ;;  %v1304_v26 = vmax.f32 %v1303_v12, %v6121_v16  ;;  %v1442_v21 = vmax.f32 %v1441_v41, %v6122_v17  ;;  %v1511_v37 = vmax.f32 %v1510_v46, %v6126_v28  ;;  %v6133_v17 = vld [vmem:[#allocation108_spill] sm:$0xff]  ;;  %v6134_v16 = vld [vmem:[#allocation109_spill] sm:$0xff] }
 0x1e3   : > { %v4457_v43 = vpop.f32.mrf.mxu0  ;;  %v4459_v24 = vpop.f32.mrf.mxu1  ;;  %v1374_v12 = vmax.f32 %v1373_v8, %v6131_v51  ;;  %v6137_v46 = vld [vmem:[#allocation110_spill] sm:$0xff]  ;;  %v6138_v28 = vld [vmem:[#allocation111_spill] sm:$0xff] }
 0x1e4   : > { %6117 = vst [vmem:[#allocation179_spill] sm:$0xff] %v4457_v43  ;;  %6118 = vst [vmem:[#allocation180_spill] sm:$0xff] %v4459_v24  ;;  %v1305_v19 = vmax.f32 %v1304_v26, %v6127_v25  ;;  %v1443_v24 = vmax.f32 %v1442_v21, %v6128_v5  ;;  %v1512_v41 = vmax.f32 %v1511_v37, %v6132_v20  ;;  %v6139_v5 = vld [vmem:[#allocation112_spill] sm:$0xff]  ;;  %v6143_v37 = vld [vmem:[#allocation114_spill] sm:$0xff] }
 0x1e5   : > { %v4465_v49 = vpop.f32.mrf.mxu0  ;;  %v4467_v29 = vpop.f32.mrf.mxu1  ;;  %v1375_v26 = vmax.f32 %v1374_v12, %v6137_v46  ;;  %v6144_v20 = vld [vmem:[#allocation115_spill] sm:$0xff]  ;;  %v6151_v46 = vld [vmem:[#allocation121_spill] sm:$0xff] }
 0x1e6   : > { %6123 = vst [vmem:[#allocation181_spill] sm:$0xff] %v4465_v49  ;;  %6124 = vst [vmem:[#allocation182_spill] sm:$0xff] %v4467_v29  ;;  %v1306_v59 = vmax.f32 %v1305_v19, %v6133_v17  ;;  %v1444_v29 = vmax.f32 %v1443_v24, %v6134_v16  ;;  %v1513_v21 = vmax.f32 %v1512_v41, %v6138_v28  ;;  %v6145_v16 = vld [vmem:[#allocation116_spill] sm:$0xff]  ;;  %v6146_v17 = vld [vmem:[#allocation117_spill] sm:$0xff] }
 0x1e7   : > { %v4473_v43 = vpop.f32.mrf.mxu0  ;;  %v4475_v27 = vpop.f32.mrf.mxu1  ;;  %v1376_v19 = vmax.f32 %v1375_v26, %v6143_v37  ;;  %v6148_v41 = vld [vmem:[#allocation118_spill] sm:$0xff]  ;;  %v6149_v28 = vld [vmem:[#allocation119_spill] sm:$0xff] }
 0x1e8   : > { %6129 = vst [vmem:[#allocation183_spill] sm:$0xff] %v4473_v43  ;;  %6130 = vst [vmem:[#allocation184_spill] sm:$0xff] %v4475_v27  ;;  %v1307_v25 = vmax.f32 %v1306_v59, %v6139_v5  ;;  %v1445_v27 = vmax.f32 %v1444_v29, %v6140_v55  ;;  %v1514_v24 = vmax.f32 %v1513_v21, %v6144_v20  ;;  %v6150_v55 = vld [vmem:[#allocation120_spill] sm:$0xff]  ;;  %v6154_v21 = vld [vmem:[#allocation122_spill] sm:$0xff] }
 0x1e9   : > { %v4481_v49 = vpop.f32.mrf.mxu0  ;;  %v4483_v2 = vpop.f32.mrf.mxu1  ;;  %v1377_v59 = vmax.f32 %v1376_v19, %v6148_v41  ;;  %v6161_v41 = vld [vmem:[#allocation129_spill] sm:$0xff] }
 0x1ea   : > { %6135 = vst [vmem:[#allocation185_spill] sm:$0xff] %v4481_v49  ;;  %6136 = vst [vmem:[#allocation186_spill] sm:$0xff] %v4483_v2  ;;  %v1308_v51 = vmax.f32 %v1307_v25, %v6145_v16  ;;  %v1446_v2 = vmax.f32 %v1445_v27, %v6146_v17  ;;  %v1515_v29 = vmax.f32 %v1514_v24, %v6149_v28  ;;  %v6155_v17 = vld [vmem:[#allocation124_spill] sm:$0xff]  ;;  %v6158_v24 = vld [vmem:[#allocation126_spill] sm:$0xff] }
 0x1eb   : > { %v4489_v43 = vpop.f32.mrf.mxu0  ;;  %v4491_v8 = vpop.f32.mrf.mxu1  ;;  %v1378_v25 = vmax.f32 %v1377_v59, %v6154_v21  ;;  %v6159_v28 = vld [vmem:[#allocation127_spill] sm:$0xff] }
 0x1ec   : > { %6141 = vst [vmem:[#allocation187_spill] sm:$0xff] %v4489_v43  ;;  %6142 = vst [vmem:[#allocation188_spill] sm:$0xff] %v4491_v8  ;;  %v1309_v5 = vmax.f32 %v1308_v51, %v6150_v55  ;;  %v1447_v8 = vmax.f32 %v1446_v2, %v6151_v46  ;;  %v1516_v27 = vmax.f32 %v1515_v29, %v4246_v33  ;;  %v6160_v46 = vld [vmem:[#allocation128_spill] sm:$0xff]  ;;  %v6163_v29 = vld [vmem:[#allocation130_spill] sm:$0xff] }
 0x1ed   : > { %v4497_v49 = vpop.f32.mrf.mxu0  ;;  %v4499_v12 = vpop.f32.mrf.mxu1  ;;  %v1379_v51 = vmax.f32 %v1378_v25, %v6158_v24  ;;  %v6164_v33 = vld [vmem:[#allocation131_spill] sm:$0xff] }
 0x1ee   : > { %6147 = vst [vmem:[#allocation189_spill] sm:$0xff] %v4499_v12  ;;  %v1310_v20 = vmax.f32 %v1309_v5, %v6155_v17  ;;  %v1448_v37 = vmax.f32 %v1447_v8, %v4250_v30  ;;  %v1517_v2 = vmax.f32 %v1516_v27, %v6159_v28  ;;  %v6165_v30 = vld [vmem:[#allocation132_spill] sm:$0xff]  ;;  %v6166_v17 = vld [vmem:[#allocation133_spill] sm:$0xff]  ;;  %v6169_v27 = vld [vmem:[#allocation135_spill] sm:$0xff] }
 0x1ef   : > { %v4505_v43 = vpop.f32.mrf.mxu0  ;;  %v4507_v26 = vpop.f32.mrf.mxu1  ;;  %v1380_v5 = vmax.f32 %v1379_v51, %v6163_v29 }
 0x1f0   : > { %6152 = vst [vmem:[#allocation190_spill] sm:$0xff] %v4505_v43  ;;  %6153 = vst [vmem:[#allocation191_spill] sm:$0xff] %v4507_v26  ;;  %v1311_v55 = vmax.f32 %v1310_v20, %v6160_v46  ;;  %v1449_v26 = vmax.f32 %v1448_v37, %v6161_v41  ;;  %v1518_v8 = vmax.f32 %v1517_v2, %v6164_v33 }
 0x1f1   : > { %v4513_v16 = vpop.f32.mrf.mxu0  ;;  %v4515_v19 = vpop.f32.mrf.mxu1  ;;  %v1381_v20 = vmax.f32 %v1380_v5, %v4274_v58  ;;  %v6199_v58 = vld [vmem:[#allocation182_spill] sm:$0xff] }
 0x1f2   : > { %6156 = vst [vmem:[#allocation192_spill] sm:$0xff] %v4513_v16  ;;  %6157 = vst [vmem:[#allocation193_spill] sm:$0xff] %v4515_v19  ;;  %v1312_v21 = vmax.f32 %v1311_v55, %v6165_v30  ;;  %v1450_v19 = vmax.f32 %v1449_v26, %v6166_v17  ;;  %v1519_v37 = vmax.f32 %v1518_v8, %v6169_v27 }
 0x1f3   : > { %v4521_v43 = vpop.f32.mrf.mxu0  ;;  %v4523_v59 = vpop.f32.mrf.mxu1  ;;  %v1382_v55 = vmax.f32 %v1381_v20, %v4291_v4  ;;  %v6193_v4 = vld [vmem:[#allocation178_spill] sm:$0xff] }
 0x1f4   : > { %6162 = vst [vmem:[#allocation126_spill] sm:$0xff] %v4523_v59  ;;  %v1313_v41 = vmax.f32 %v1312_v21, %v4283_v38  ;;  %v1451_v28 = vmax.f32 %v1450_v19, %v4285_v34  ;;  %v1520_v26 = vmax.f32 %v1519_v37, %v4293_v42 }
 0x1f5   : > { %v4529_v16 = vpop.f32.mrf.mxu0  ;;  %v4531_v25 = vpop.f32.mrf.mxu1  ;;  %v1383_v21 = vmax.f32 %v1382_v55, %v4306_v50 }
 0x1f6   : > { %6167 = vst [vmem:[#allocation130_spill] sm:$0xff] %v4529_v16  ;;  %6168 = vst [vmem:[#allocation131_spill] sm:$0xff] %v4531_v25  ;;  %v1314_v2 = vmax.f32 %v1313_v41, %v4299_v45  ;;  %v1452_v17 = vmax.f32 %v1451_v28, %v4301_v22  ;;  %v1521_v19 = vmax.f32 %v1520_v26, %v4308_v39 }
 0x1f7   : > { %v4537_v46 = vpop.f32.mrf.mxu0  ;;  %v4539_v51 = vpop.f32.mrf.mxu1  ;;  %v1384_v41 = vmax.f32 %v1383_v21, %v4329_v13 }
 0x1f8   : > { %6170 = vst [vmem:[#allocation194_spill] sm:$0xff] %v4537_v46  ;;  %6171 = vst [vmem:[#allocation195_spill] sm:$0xff] %v4539_v51  ;;  %v1315_v8 = vmax.f32 %v1314_v2, %v4314_v54  ;;  %v1453_v34 = vmax.f32 %v1452_v17, %v4316_v40  ;;  %v1522_v28 = vmax.f32 %v1521_v19, %v4331_v62 }
 0x1f9   : > { %v4545_v30 = vpop.f32.mrf.mxu0  ;;  %v4547_v5 = vpop.f32.mrf.mxu1  ;;  %v1385_v26 = vmax.f32 %v1384_v41, %v4345_v63 }
 0x1fa   : > { %6172 = vst [vmem:[#allocation196_spill] sm:$0xff] %v4545_v30  ;;  %6173 = vst [vmem:[#allocation197_spill] sm:$0xff] %v4547_v5  ;;  %v1316_v37 = vmax.f32 %v1315_v8, %v4337_v1  ;;  %v1454_v42 = vmax.f32 %v1453_v34, %v4339_v36  ;;  %v1523_v17 = vmax.f32 %v1522_v28, %v4347_v31 }
 0x1fb   : > { %v4553_v27 = vpop.f32.mrf.mxu0  ;;  %v4555_v20 = vpop.f32.mrf.mxu1  ;;  %v1386_v19 = vmax.f32 %v1385_v26, %v4361_v10  ;;  %v6205_v10 = vld [vmem:[#allocation186_spill] sm:$0xff] }
 0x1fc   : > { %6174 = vst [vmem:[#allocation198_spill] sm:$0xff] %v4553_v27  ;;  %6175 = vst [vmem:[#allocation199_spill] sm:$0xff] %v4555_v20  ;;  %v1317_v2 = vmax.f32 %v1316_v37, %v4353_v7  ;;  %v1455_v40 = vmax.f32 %v1454_v42, %v4355_v48  ;;  %v1524_v34 = vmax.f32 %v1523_v17, %v4363_v53 }
 0x1fd   : > { %v4561_v22 = vpop.f32.mrf.mxu0  ;;  %v4563_v55 = vpop.f32.mrf.mxu1  ;;  %v1387_v28 = vmax.f32 %v1386_v19, %v4377_v11 }
 0x1fe   : > { %6176 = vst [vmem:[#allocation200_spill] sm:$0xff] %v4561_v22  ;;  %6177 = vst [vmem:[#allocation201_spill] sm:$0xff] %v4563_v55  ;;  %v1318_v8 = vmax.f32 %v1317_v2, %v4369_v15  ;;  %v1456_v62 = vmax.f32 %v1455_v40, %v4371_v57  ;;  %v1525_v42 = vmax.f32 %v1524_v34, %v4379_v61 }
 0x1ff   : > { %v4569_v39 = vpop.f32.mrf.mxu0  ;;  %v4571_v21 = vpop.f32.mrf.mxu1  ;;  %v1388_v17 = vmax.f32 %v1387_v28, %v4393_v18 }
 0x200   : > { %6178 = vst [vmem:[#allocation202_spill] sm:$0xff] %v4569_v39  ;;  %6179 = vst [vmem:[#allocation203_spill] sm:$0xff] %v4571_v21  ;;  %v1319_v37 = vmax.f32 %v1318_v8, %v4385_v9  ;;  %v1457_v48 = vmax.f32 %v1456_v62, %v4387_v3  ;;  %v1526_v40 = vmax.f32 %v1525_v42, %v4395_v44 }
 0x201   : > { %v4577_v36 = vpop.f32.mrf.mxu0  ;;  %v4579_v41 = vpop.f32.mrf.mxu1  ;;  %v1389_v34 = vmax.f32 %v1388_v17, %v4409_v60  ;;  %v6328_v60 = vld [vmem:[#allocation61_spill] sm:$0xff] }
 0x202   : > { %6180 = vst [vmem:[#allocation204_spill] sm:$0xff] %v4577_v36  ;;  %6181 = vst [vmem:[#allocation205_spill] sm:$0xff] %v4579_v41  ;;  %v1320_v2 = vmax.f32 %v1319_v37, %v4401_v6  ;;  %v1458_v53 = vmax.f32 %v1457_v48, %v4403_v35  ;;  %v1527_v62 = vmax.f32 %v1526_v40, %v4411_v32  ;;  %v6190_v40 = vld [vmem:[#allocation175_spill] sm:$0xff]  ;;  %v6191_v32 = vld [vmem:[#allocation176_spill] sm:$0xff] }
 0x203   : > { %v4585_v31 = vpop.f32.mrf.mxu0  ;;  %v4587_v26 = vpop.f32.mrf.mxu1  ;;  %v1390_v42 = vmax.f32 %v1389_v34, %v4425_v52  ;;  %v6215_v6 = vld [vmem:[#allocation193_spill] sm:$0xff] }
 0x204   : > { %6182 = vst [vmem:[#allocation206_spill] sm:$0xff] %v4585_v31  ;;  %6183 = vst [vmem:[#allocation207_spill] sm:$0xff] %v4587_v26  ;;  %v1321_v8 = vmax.f32 %v1320_v2, %v4417_v56  ;;  %v1459_v3 = vmax.f32 %v1458_v53, %v4419_v0  ;;  %v1528_v48 = vmax.f32 %v1527_v62, %v4427_v14  ;;  %v6192_v0 = vld [vmem:[#allocation177_spill] sm:$0xff]  ;;  %v6196_v62 = vld [vmem:[#allocation179_spill] sm:$0xff] }
 0x205   : > { %v4593_v57 = vpop.f32.mrf.mxu0  ;;  %v4595_v19 = vpop.f32.mrf.mxu1  ;;  %v1391_v2 = vmax.f32 %v1390_v42, %v6190_v40  ;;  %v6197_v14 = vld [vmem:[#allocation180_spill] sm:$0xff] }
 0x206   : > { %6184 = vst [vmem:[#allocation208_spill] sm:$0xff] %v4593_v57  ;;  %6185 = vst [vmem:[#allocation209_spill] sm:$0xff] %v4595_v19  ;;  %v1322_v37 = vmax.f32 %v1321_v8, %v4433_v47  ;;  %v1460_v44 = vmax.f32 %v1459_v3, %v4435_v23  ;;  %v1529_v53 = vmax.f32 %v1528_v48, %v6191_v32  ;;  %v6198_v23 = vld [vmem:[#allocation181_spill] sm:$0xff]  ;;  %v6202_v48 = vld [vmem:[#allocation183_spill] sm:$0xff] }
 0x207   : > { %v4601_v61 = vpop.f32.mrf.mxu0  ;;  %v4603_v28 = vpop.f32.mrf.mxu1  ;;  %v1392_v8 = vmax.f32 %v1391_v2, %v6196_v62  ;;  %v6203_v32 = vld [vmem:[#allocation184_spill] sm:$0xff]  ;;  %v6329_v62 = vld [vmem:[#allocation63_spill] sm:$0xff] }
 0x208   : > { %6186 = vst [vmem:[#allocation210_spill] sm:$0xff] %v4601_v61  ;;  %6187 = vst [vmem:[#allocation211_spill] sm:$0xff] %v4603_v28  ;;  %v1323_v38 = vmax.f32 %v1322_v37, %v6192_v0  ;;  %v1461_v54 = vmax.f32 %v1460_v44, %v6193_v4  ;;  %v1530_v3 = vmax.f32 %v1529_v53, %v6197_v14  ;;  %v6204_v4 = vld [vmem:[#allocation185_spill] sm:$0xff]  ;;  %v6208_v53 = vld [vmem:[#allocation187_spill] sm:$0xff] }
 0x209   : > { %v4609_v35 = vpop.f32.mrf.mxu0  ;;  %v4611_v17 = vpop.f32.mrf.mxu1  ;;  %v1393_v37 = vmax.f32 %v1392_v8, %v6202_v48  ;;  %v6209_v14 = vld [vmem:[#allocation188_spill] sm:$0xff] }
 0x20a   : > { %6188 = vst [vmem:[#allocation212_spill] sm:$0xff] %v4609_v35  ;;  %6189 = vst [vmem:[#allocation213_spill] sm:$0xff] %v4611_v17  ;;  %v1324_v13 = vmax.f32 %v1323_v38, %v6198_v23  ;;  %v1462_v7 = vmax.f32 %v1461_v54, %v6199_v58  ;;  %v1531_v44 = vmax.f32 %v1530_v3, %v6203_v32  ;;  %v6212_v3 = vld [vmem:[#allocation190_spill] sm:$0xff]  ;;  %v6213_v32 = vld [vmem:[#allocation191_spill] sm:$0xff] }
 0x20b   : > { %v4617_v45 = vpop.f32.mrf.mxu0  ;;  %v4619_v34 = vpop.f32.mrf.mxu1  ;;  %v1394_v38 = vmax.f32 %v1393_v37, %v6208_v53 }
 0x20c   : > { %6194 = vst [vmem:[#allocation175_spill] sm:$0xff] %v4617_v45  ;;  %6195 = vst [vmem:[#allocation214_spill] sm:$0xff] %v4619_v34  ;;  %v1325_v50 = vmax.f32 %v1324_v13, %v6204_v4  ;;  %v1463_v9 = vmax.f32 %v1462_v7, %v6205_v10  ;;  %v1532_v54 = vmax.f32 %v1531_v44, %v6209_v14  ;;  %v6214_v10 = vld [vmem:[#allocation192_spill] sm:$0xff] }
 0x20d   : > { %v4625_v1 = vpop.f32.mrf.mxu0  ;;  %v4627_v42 = vpop.f32.mrf.mxu1  ;;  %v1395_v13 = vmax.f32 %v1394_v38, %v6212_v3 }
 0x20e   : > { %6200 = vst [vmem:[#allocation181_spill] sm:$0xff] %v4625_v1  ;;  %6201 = vst [vmem:[#allocation215_spill] sm:$0xff] %v4627_v42  ;;  %v1326_v58 = vmax.f32 %v1325_v50, %v4497_v49  ;;  %v1464_v63 = vmax.f32 %v1463_v9, %v4499_v12  ;;  %v1533_v7 = vmax.f32 %v1532_v54, %v6213_v32 }
 0x20f   : > { %v4633_v15 = vpop.f32.mrf.mxu0  ;;  %v4635_v2 = vpop.f32.mrf.mxu1  ;;  %v1396_v50 = vmax.f32 %v1395_v13, %v4521_v43 }
 0x210   : > { %6206 = vst [vmem:[#allocation183_spill] sm:$0xff] %v4633_v15  ;;  %6207 = vst [vmem:[#allocation216_spill] sm:$0xff] %v4635_v2  ;;  %v1327_v56 = vmax.f32 %v1326_v58, %v6214_v10  ;;  %v1465_v11 = vmax.f32 %v1464_v63, %v6215_v6  ;;  %v1534_v9 = vmax.f32 %v1533_v7, %v4523_v59 }
 0x211   : > { %v4641_v18 = vpop.f32.mrf.mxu0  ;;  %v4643_v8 = vpop.f32.mrf.mxu1  ;;  %v1397_v58 = vmax.f32 %v1396_v50, %v4537_v46 }
 0x212   : > { %6210 = vst [vmem:[#allocation187_spill] sm:$0xff] %v4641_v18  ;;  %6211 = vst [vmem:[#allocation217_spill] sm:$0xff] %v4643_v8  ;;  %v1328_v44 = vmax.f32 %v1327_v56, %v4529_v16  ;;  %v1466_v14 = vmax.f32 %v1465_v11, %v4531_v25  ;;  %v1535_v63 = vmax.f32 %v1534_v9, %v4539_v51 }
 0x213   : > { %v4649_v52 = vpop.f32.mrf.mxu0  ;;  %v4651_v37 = vpop.f32.mrf.mxu1  ;;  %v1398_v56 = vmax.f32 %v1397_v58, %v4553_v27  ;;  %v3820_v27 = vmov 1966171168  }
 0x214   : > { %6216 = vst [vmem:[#allocation190_spill] sm:$0xff] %v4649_v52  ;;  %6217 = vst [vmem:[#allocation192_spill] sm:$0xff] %v4651_v37  ;;  %v1329_v54 = vmax.f32 %v1328_v44, %v4545_v30  ;;  %v1467_v6 = vmax.f32 %v1466_v14, %v4547_v5  ;;  %v1536_v11 = vmax.f32 %v1535_v63, %v4555_v20 }
 0x215   : > { %v4657_v12 = vpop.f32.mrf.mxu0  ;;  %v4659_v38 = vpop.f32.mrf.mxu1  ;;  %v1399_v9 = vmax.f32 %v1398_v56, %v4569_v39 }
 0x216   : > { %6218 = vst [vmem:[#allocation218_spill] sm:$0xff] %v4657_v12  ;;  %6219 = vst [vmem:[#allocation219_spill] sm:$0xff] %v4659_v38  ;;  %v1330_v7 = vmax.f32 %v1329_v54, %v4561_v22  ;;  %v1468_v25 = vmax.f32 %v1467_v6, %v4563_v55  ;;  %v1537_v14 = vmax.f32 %v1536_v11, %v4571_v21 }
 0x217   : > { %v4665_v32 = vpop.f32.mrf.mxu0  ;;  %v4667_v13 = vpop.f32.mrf.mxu1  ;;  %v1400_v63 = vmax.f32 %v1399_v9, %v4585_v31 }
 0x218   : > { %6220 = vst [vmem:[#allocation220_spill] sm:$0xff] %v4665_v32  ;;  %6221 = vst [vmem:[#allocation221_spill] sm:$0xff] %v4667_v13  ;;  %v1331_v44 = vmax.f32 %v1330_v7, %v4577_v36  ;;  %v1469_v5 = vmax.f32 %v1468_v25, %v4579_v41  ;;  %v1538_v6 = vmax.f32 %v1537_v14, %v4587_v26 }
 0x219   : > { %v4673_v59 = vpop.f32.mrf.mxu0  ;;  %v4675_v50 = vpop.f32.mrf.mxu1  ;;  %v1401_v11 = vmax.f32 %v1400_v63, %v4601_v61 }
 0x21a   : > { %6222 = vst [vmem:[#allocation222_spill] sm:$0xff] %v4673_v59  ;;  %6223 = vst [vmem:[#allocation223_spill] sm:$0xff] %v4675_v50  ;;  %v1332_v54 = vmax.f32 %v1331_v44, %v4593_v57  ;;  %v1470_v20 = vmax.f32 %v1469_v5, %v4595_v19  ;;  %v1539_v25 = vmax.f32 %v1538_v6, %v4603_v28  ;;  %v6250_v57 = vlaneseq }
 0x21b   : > { %v4681_v51 = vpop.f32.mrf.mxu0  ;;  %v4683_v58 = vpop.f32.mrf.mxu1  ;;  %v1402_v14 = vmax.f32 %v1401_v11, %v4617_v45 }
 0x21c   : > { %6224 = vst [vmem:[#allocation224_spill] sm:$0xff] %v4681_v51  ;;  %6225 = vst [vmem:[#allocation225_spill] sm:$0xff] %v4683_v58  ;;  %v1333_v7 = vmax.f32 %v1332_v54, %v4609_v35  ;;  %v1471_v41 = vmax.f32 %v1470_v20, %v4611_v17  ;;  %v1540_v5 = vmax.f32 %v1539_v25, %v4619_v34  ;;  %v4784_v39 = vshrl.u32 %v6250_v57, 7 }
 0x21d   : > { %v4689_v55 = vpop.f32.mrf.mxu0  ;;  %v4691_v56 = vpop.f32.mrf.mxu1  ;;  %v1403_v6 = vmax.f32 %v1402_v14, %v4633_v15 }
 0x21e   : > { %6226 = vst [vmem:[#allocation226_spill] sm:$0xff] %v4689_v55  ;;  %6227 = vst [vmem:[#allocation227_spill] sm:$0xff] %v4691_v56  ;;  %v1334_v44 = vmax.f32 %v1333_v7, %v4625_v1  ;;  %v1472_v26 = vmax.f32 %v1471_v41, %v4627_v42  ;;  %v1541_v20 = vmax.f32 %v1540_v5, %v4635_v2 }
 0x21f   : > { %v4697_v21 = vpop.f32.mrf.mxu0  ;;  %v4699_v9 = vpop.f32.mrf.mxu1  ;;  %v1404_v25 = vmax.f32 %v1403_v6, %v4649_v52 }
 0x220   : > { %6228 = vst [vmem:[#allocation228_spill] sm:$0xff] %v4697_v21  ;;  %6229 = vst [vmem:[#allocation229_spill] sm:$0xff] %v4699_v9  ;;  %v1335_v54 = vmax.f32 %v1334_v44, %v4641_v18  ;;  %v1473_v17 = vmax.f32 %v1472_v26, %v4643_v8  ;;  %v1542_v41 = vmax.f32 %v1541_v20, %v4651_v37 }
 0x221   : > { %v4705_v19 = vpop.f32.mrf.mxu0  ;;  %v4707_v63 = vpop.f32.mrf.mxu1  ;;  %v1405_v5 = vmax.f32 %v1404_v25, %v4665_v32 }
 0x222   : > { %6230 = vst [vmem:[#allocation230_spill] sm:$0xff] %v4705_v19  ;;  %6231 = vst [vmem:[#allocation231_spill] sm:$0xff] %v4707_v63  ;;  %v1336_v7 = vmax.f32 %v1335_v54, %v4657_v12  ;;  %v1474_v34 = vmax.f32 %v1473_v17, %v4659_v38  ;;  %v1543_v26 = vmax.f32 %v1542_v41, %v4667_v13 }
 0x223   : > { %v4713_v28 = vpop.f32.mrf.mxu0  ;;  %v4715_v11 = vpop.f32.mrf.mxu1  ;;  %v1406_v20 = vmax.f32 %v1405_v5, %v4681_v51 }
 0x224   : > { %6232 = vst [vmem:[#allocation232_spill] sm:$0xff] %v4713_v28  ;;  %6233 = vst [vmem:[#allocation233_spill] sm:$0xff] %v4715_v11  ;;  %v1337_v44 = vmax.f32 %v1336_v7, %v4673_v59  ;;  %v1475_v8 = vmax.f32 %v1474_v34, %v4675_v50  ;;  %v1544_v17 = vmax.f32 %v1543_v26, %v4683_v58 }
 0x225   : > { %v4721_v42 = vpop.f32.mrf.mxu0  ;;  %v4723_v14 = vpop.f32.mrf.mxu1  ;;  %v1407_v41 = vmax.f32 %v1406_v20, %v4697_v21 }
 0x226   : > { %6234 = vst [vmem:[#allocation234_spill] sm:$0xff] %v4721_v42  ;;  %6235 = vst [vmem:[#allocation235_spill] sm:$0xff] %v4723_v14  ;;  %v1338_v54 = vmax.f32 %v1337_v44, %v4689_v55  ;;  %v1476_v37 = vmax.f32 %v1475_v8, %v4691_v56  ;;  %v1545_v34 = vmax.f32 %v1544_v17, %v4699_v9 }
 0x227   : > { %v4729_v2 = vpop.f32.mrf.mxu0  ;;  %v4731_v6 = vpop.f32.mrf.mxu1  ;;  %v1408_v26 = vmax.f32 %v1407_v41, %v4713_v28 }
 0x228   : > { %6236 = vst [vmem:[#allocation236_spill] sm:$0xff] %v4729_v2  ;;  %6237 = vst [vmem:[#allocation237_spill] sm:$0xff] %v4731_v6  ;;  %v1339_v7 = vmax.f32 %v1338_v54, %v4705_v19  ;;  %v1477_v50 = vmax.f32 %v1476_v37, %v4707_v63  ;;  %v1546_v8 = vmax.f32 %v1545_v34, %v4715_v11 }
 0x229   : > { %v4737_v38 = vpop.f32.mrf.mxu0  ;;  %v4739_v25 = vpop.f32.mrf.mxu1  ;;  %v1409_v17 = vmax.f32 %v1408_v26, %v4729_v2 }
 0x22a   : > { %6238 = vst [vmem:[#allocation238_spill] sm:$0xff] %v4737_v38  ;;  %6239 = vst [vmem:[#allocation239_spill] sm:$0xff] %v4739_v25  ;;  %v1340_v44 = vmax.f32 %v1339_v7, %v4721_v42  ;;  %v1478_v58 = vmax.f32 %v1477_v50, %v4723_v14  ;;  %v1547_v37 = vmax.f32 %v1546_v8, %v4731_v6 }
 0x22b   : > { %v4745_v13 = vpop.f32.mrf.mxu0  ;;  %v4747_v5 = vpop.f32.mrf.mxu1 }
 0x22c   : > { %6240 = vst [vmem:[#allocation240_spill] sm:$0xff] %v4745_v13  ;;  %6241 = vst [vmem:[#allocation241_spill] sm:$0xff] %v4747_v5  ;;  %v1341_v54 = vmax.f32 %v1340_v44, %v4737_v38  ;;  %v1479_v63 = vmax.f32 %v1478_v58, %v4739_v25  ;;  %v1410_v34 = vmax.f32 %v1409_v17, %v4745_v13 }
 0x22d   : > { %v4753_v56 = vpop.f32.mrf.mxu0  ;;  %v4755_v20 = vpop.f32.mrf.mxu1  ;;  %v1548_v50 = vmax.f32 %v1547_v37, %v4747_v5 }
 0x22e   : > { %6242 = vst [vmem:[#allocation242_spill] sm:$0xff] %v4753_v56  ;;  %6243 = vst [vmem:[#allocation243_spill] sm:$0xff] %v4755_v20  ;;  %v1342_v7 = vmax.f32 %v1341_v54, %v4753_v56  ;;  %v1480_v11 = vmax.f32 %v1479_v63, %v4755_v20 }
 0x22f   : > { %v4761_v9 = vpop.f32.mrf.mxu0  ;;  %v4763_v41 = vpop.f32.mrf.mxu1 }
 0x230   : > { %6244 = vst [vmem:[#allocation244_spill] sm:$0xff] %v4761_v9  ;;  %6245 = vst [vmem:[#allocation245_spill] sm:$0xff] %v4763_v41  ;;  %v1411_v8 = vmax.f32 %v1410_v34, %v4761_v9  ;;  %v1549_v58 = vmax.f32 %v1548_v50, %v4763_v41  ;;  %v1564_v50 = vunpack.c.l.s4 %v3820_v27 }
 0x231   : > { %v4769_v14 = vpop.f32.mrf.mxu0  ;;  %v4771_v26 = vpop.f32.mrf.mxu1 }
 0x232   : > { %6246 = vst [vmem:[#allocation246_spill] sm:$0xff] %v4769_v14  ;;  %6247 = vst [vmem:[#allocation247_spill] sm:$0xff] %v4771_v26  ;;  %v1343_v44 = vmax.f32 %v1342_v7, %v4769_v14  ;;  %v1481_v25 = vmax.f32 %v1480_v11, %v4771_v26  ;;  %v1565_v35 = vunpack.c.0.s8 %v1564_v50  ;;  %v1280_v50 = vld [vmem:[#allocation2] sm:$0xf] }
 0x233   : > { %v4777_v6 = vpop.f32.mrf.mxu0  ;;  %v4779_v17 = vpop.f32.mrf.mxu1 }
 0x234   : > { %6248 = vst [vmem:[#allocation248_spill] sm:$0xff] %v4777_v6  ;;  %6249 = vst [vmem:[#allocation249_spill] sm:$0xff] %v4779_v17  ;;  %v1344_v37 = vrot.slane %v1343_v44, 4  ;;  %v1482_v54 = vrot.slane %v1481_v25, 4  ;;  %v1412_v63 = vmax.f32 %v1411_v8, %v4777_v6  ;;  %v1550_v5 = vmax.f32 %v1549_v58, %v4779_v17 }
 0x235   : > { %v1568_v27 = vsub.s32 %v1565_v35, %v4784_v39  ;;  %v5873_v35 = vsub.s32 3, %v4784_v39 }
 0x236   : > { %v1345_v20 = vmax.f32 %v1343_v44, %v1344_v37  ;;  %v1483_v30 = vmax.f32 %v1481_v25, %v1482_v54  ;;  %v1413_v16 = vrot.slane %v1412_v63, 4  ;;  %v1551_v34 = vrot.slane %v1550_v5, 4 }
 0x238   : > { %v1346_v41 = vrot.slane %v1345_v20, 2  ;;  %v1484_v7 = vrot.slane %v1483_v30, 2  ;;  %v1414_v36 = vmax.f32 %v1412_v63, %v1413_v16  ;;  %v1552_v11 = vmax.f32 %v1550_v5, %v1551_v34 }
 0x23a   : > { %v1347_v26 = vmax.f32 %v1345_v20, %v1346_v41  ;;  %v1485_v22 = vmax.f32 %v1483_v30, %v1484_v7  ;;  %v1415_v46 = vrot.slane %v1414_v36, 2  ;;  %v1553_v31 = vrot.slane %v1552_v11, 2 }
 0x23c   : > { %v1348_v8 = vrot.slane %v1347_v26, 1  ;;  %v1486_v58 = vrot.slane %v1485_v22, 1  ;;  %v1416_v44 = vmax.f32 %v1414_v36, %v1415_v46  ;;  %v1554_v25 = vmax.f32 %v1552_v11, %v1553_v31 }
 0x23d   : > { %v4790_v36 = vsub.s32 0, %v4784_v39  ;;  %v5875_v31 = vsub.s32 1, %v4784_v39 }
 0x23e   : > { %v1417_v37 = vrot.slane %v1416_v44, 1  ;;  %v1555_v54 = vrot.slane %v1554_v25, 1  ;;  %v1349_v17 = vmax.f32 %v1347_v26, %v1348_v8  ;;  %v1487_v45 = vmax.f32 %v1485_v22, %v1486_v58  ;;  %v6253_v8 = vld [vmem:[#allocation6_spill] sm:$0xff] }
 0x23f   : > { %v5874_v22 = vsub.s32 2, %v4784_v39 }
 0x240   : > { %v1418_v16 = vmax.f32 %v1416_v44, %v1417_v37  ;;  %v1556_v5 = vmax.f32 %v1554_v25, %v1555_v54  ;;  %v6254_v44 = vld [vmem:[#allocation5_spill] sm:$0xff]  ;;  %v6255_v54 = vld [vmem:[#allocation7_spill] sm:$0xff] }
 0x242   : > { %v1561_v20 = vcombine.low %v1349_v17, %v1418_v16  ;;  %v1562_v30 = vcombine.low %v1487_v45, %v1556_v5  ;;  %v6252_v17 = vld [vmem:[#allocation4_spill] sm:$0xff] }
 0x243   : > { %v6256_v16 = vld [vmem:[#allocation8_spill] sm:$0xff] }
 0x244   : > { %v1569_v41 = vrot.slane %v1561_v20, %v1568_v27  ;;  %v1576_v63 = vrot.slane %v1562_v30, %v1568_v27  ;;  %v6257_v30 = vld [vmem:[#allocation10_spill] sm:$0xff] }
 0x246   : > { %v1577_v34 = vcombine.low %v1569_v41, %v1576_v63 }
 0x248   : > { %v1584_v57 = vrot.slane %v1577_v34, %v1568_v27  ;;  %v6258_v34 = vld [vmem:[#allocation9_spill] sm:$0xff] }
 0x24a   : > { %v1586_v7 = vmax.f32 %v1280_v50, %v1584_v57 }
 0x24c   : > { %v1587_v18 = vsub.f32 %v1280_v50, %v1586_v7  ;;  %2824 = vst.msk [vmem:[#allocation2] sm:$0xf] %vm4319_vm1, %v1586_v7  ;;  %v4796_v45 = vrot.slane %v1586_v7, %v4790_v36  ;;  %v4800_v46 = vrot.slane %v1586_v7, %v5875_v31  ;;  %v4804_v1 = vrot.slane %v1586_v7, %v5874_v22 }
 0x24d   : > { %v4808_v26 = vrot.slane %v1586_v7, %v5873_v35  ;;  %v6259_v7 = vld [vmem:[#allocation11_spill] sm:$0xff] }
 0x24e   : > { %v1611_v11 = vsub.f32 %v6252_v17, %v4796_v45  ;;  %v1612_v58 = vsub.f32 %v6253_v8, %v4800_v46  ;;  %v1613_v25 = vsub.f32 %v6254_v44, %v4804_v1  ;;  %v1588_v37 = vmul.f32 1.442695, %v1587_v18  ;;  %v6260_v8 = vld [vmem:[#allocation12_spill] sm:$0xff] }
 0x24f   : > { %v1614_v27 = vsub.f32 %v6255_v54, %v4808_v26  ;;  %v1615_v5 = vsub.f32 %v6256_v16, %v4796_v45  ;;  %v1616_v41 = vsub.f32 %v6257_v30, %v4800_v46  ;;  %v1617_v50 = vsub.f32 %v6258_v34, %v4804_v1 }
 0x250   : > { %v1867_v20 = vmul.f32 1.442695, %v1611_v11  ;;  %v1869_v63 = vmul.f32 1.442695, %v1612_v58  ;;  %v1871_v57 = vmul.f32 1.442695, %v1613_v25  ;;  %3271 = vpow2.f32 %v1588_v37 }
 0x251   : > { %v1618_v17 = vsub.f32 %v6259_v7, %v4808_v26  ;;  %v1873_v18 = vmul.f32 1.442695, %v1614_v27  ;;  %v1619_v44 = vsub.f32 %v6260_v8, %v4796_v45  ;;  %v1875_v54 = vmul.f32 1.442695, %v1615_v5  ;;  %v6261_v11 = vld [vmem:[#allocation14_spill] sm:$0xff]  ;;  %v6262_v58 = vld [vmem:[#allocation13_spill] sm:$0xff] }
 0x252   : > { %3273 = vpow2.f32 %v1867_v20  ;;  %v1620_v16 = vsub.f32 %v6261_v11, %v4800_v46  ;;  %v1877_v30 = vmul.f32 1.442695, %v1616_v41  ;;  %v1621_v35 = vsub.f32 %v6262_v58, %v4804_v1  ;;  %v6263_v37 = vld [vmem:[#allocation15_spill] sm:$0xff]  ;;  %v6264_v7 = vld [vmem:[#allocation16_spill] sm:$0xff]  ;;  %v6265_v20 = vld [vmem:[#allocation18_spill] sm:$0xff] }
 0x253   : > { %3275 = vpow2.f32 %v1869_v63  ;;  %v1879_v25 = vmul.f32 1.442695, %v1617_v50  ;;  %v1622_v34 = vsub.f32 %v6263_v37, %v4808_v26  ;;  %v1881_v27 = vmul.f32 1.442695, %v1618_v17  ;;  %v6266_v63 = vld [vmem:[#allocation17_spill] sm:$0xff] }
 0x254   : > { %3277 = vpow2.f32 %v1871_v57  ;;  %v1623_v8 = vsub.f32 %v6264_v7, %v4796_v45  ;;  %v1883_v5 = vmul.f32 1.442695, %v1619_v44  ;;  %v1624_v11 = vsub.f32 %v6265_v20, %v4800_v46  ;;  %v6267_v57 = vld [vmem:[#allocation19_spill] sm:$0xff] }
 0x255   : > { %3279 = vpow2.f32 %v1873_v18  ;;  %v1885_v41 = vmul.f32 1.442695, %v1620_v16  ;;  %v1625_v58 = vsub.f32 %v6266_v63, %v4804_v1  ;;  %v1887_v50 = vmul.f32 1.442695, %v1621_v35  ;;  %v6268_v18 = vld [vmem:[#allocation20_spill] sm:$0xff] }
 0x256   : > { %3281 = vpow2.f32 %v1875_v54  ;;  %v1626_v37 = vsub.f32 %v6267_v57, %v4808_v26  ;;  %v1889_v17 = vmul.f32 1.442695, %v1622_v34  ;;  %v1627_v7 = vsub.f32 %v6268_v18, %v4796_v45  ;;  %v6269_v54 = vld [vmem:[#allocation22_spill] sm:$0xff] }
 0x257   : > { %3283 = vpow2.f32 %v1877_v30  ;;  %v1891_v44 = vmul.f32 1.442695, %v1623_v8  ;;  %v1628_v20 = vsub.f32 %v6269_v54, %v4800_v46  ;;  %v1893_v16 = vmul.f32 1.442695, %v1624_v11  ;;  %v6270_v30 = vld [vmem:[#allocation21_spill] sm:$0xff]  ;;  %v6273_v11 = vld [vmem:[#allocation26_spill] sm:$0xff] }
 0x258   : > { %3285 = vpow2.f32 %v1879_v25  ;;  %v1629_v63 = vsub.f32 %v6270_v30, %v4804_v1  ;;  %v1895_v35 = vmul.f32 1.442695, %v1625_v58  ;;  %v6271_v25 = vld [vmem:[#allocation23_spill] sm:$0xff]  ;;  %v1897_v34 = vmul.f32 1.442695, %v1626_v37  ;;  %v6274_v30 = vld [vmem:[#allocation25_spill] sm:$0xff] }
 0x259   : > { %3287 = vpow2.f32 %v1881_v27  ;;  %v1630_v57 = vsub.f32 %v6271_v25, %v4808_v26  ;;  %v1899_v18 = vmul.f32 1.442695, %v1627_v7 }
 0x25a   : > { %3289 = vpow2.f32 %v1883_v5  ;;  %v6272_v5 = vld [vmem:[#allocation24_spill] sm:$0xff]  ;;  %v1903_v37 = vmul.f32 1.442695, %v1629_v63 }
 0x25b   : > { %3291 = vpow2.f32 %v1885_v41  ;;  %v1631_v8 = vsub.f32 %v6272_v5, %v4796_v45  ;;  %v1632_v41 = vsub.f32 %v6273_v11, %v4800_v46  ;;  %v6276_v5 = vld [vmem:[#allocation27_spill] sm:$0xff]  ;;  %v1905_v7 = vmul.f32 1.442695, %v1630_v57  ;;  %v6278_v11 = vld [vmem:[#allocation28_spill] sm:$0xff] }
 0x25c   : > { %3293 = vpow2.f32 %v1887_v50  ;;  %v1901_v50 = vmul.f32 1.442695, %v1628_v20 }
 0x25d   : > { %3295 = vpow2.f32 %v1889_v17  ;;  %v4850_v27 = vpop.eup %3271  ;;  %v1633_v17 = vsub.f32 %v6274_v30, %v4804_v1  ;;  %v1907_v20 = vmul.f32 1.442695, %v1631_v8  ;;  %v6279_v30 = vld [vmem:[#allocation30_spill] sm:$0xff]  ;;  %v1909_v63 = vmul.f32 1.442695, %v1632_v41 }
 0x25e   : > { %3297 = vpow2.f32 %v1891_v44  ;;  %v1634_v44 = vsub.f32 %v6276_v5, %v4808_v26  ;;  %v6280_v5 = vld [vmem:[#allocation29_spill] sm:$0xff] }
 0x25f   : > { %v4854_v54 = vpop.eup %3273  ;;  %3299 = vpow2.f32 %v1893_v16  ;;  %v1635_v16 = vsub.f32 %v6278_v11, %v4796_v45  ;;  %v1911_v57 = vmul.f32 1.442695, %v1633_v17  ;;  %v6282_v11 = vld [vmem:[#allocation31_spill] sm:$0xff] }
 0x260   : > { %v4858_v58 = vpop.eup %3275  ;;  %3301 = vpow2.f32 %v1895_v35  ;;  %v1636_v35 = vsub.f32 %v6279_v30, %v4800_v46  ;;  %v1913_v8 = vmul.f32 1.442695, %v1634_v44  ;;  %v6284_v30 = vld [vmem:[#allocation32_spill] sm:$0xff] }
 0x261   : > { %v4862_v25 = vpop.eup %3277  ;;  %3303 = vpow2.f32 %v1897_v34  ;;  %v1637_v34 = vsub.f32 %v6280_v5, %v4804_v1  ;;  %v1915_v41 = vmul.f32 1.442695, %v1635_v16  ;;  %v6285_v5 = vld [vmem:[#allocation34_spill] sm:$0xff] }
 0x262   : > { %6275 = vst [vmem:[#allocation146_spill] sm:$0xff] %v4862_v25  ;;  %v4866_v22 = vpop.eup %3279  ;;  %3305 = vpow2.f32 %v1899_v18  ;;  %v1638_v18 = vsub.f32 %v6282_v11, %v4808_v26  ;;  %v1917_v17 = vmul.f32 1.442695, %v1636_v35  ;;  %v6286_v11 = vld [vmem:[#allocation33_spill] sm:$0xff] }
 0x263   : > { %6277 = vst [vmem:[#allocation4_spill] sm:$0xff] %v4866_v22  ;;  %v4870_v31 = vpop.eup %3281  ;;  %3307 = vpow2.f32 %v1901_v50  ;;  %v1639_v50 = vsub.f32 %v6284_v30, %v4796_v45  ;;  %v1919_v44 = vmul.f32 1.442695, %v1637_v34  ;;  %v6288_v30 = vld [vmem:[#allocation35_spill] sm:$0xff] }
 0x264   : > { %v4874_v61 = vpop.eup %3283  ;;  %3309 = vpow2.f32 %v1903_v37  ;;  %v1640_v37 = vsub.f32 %v6285_v5, %v4800_v46  ;;  %v1921_v16 = vmul.f32 1.442695, %v1638_v18  ;;  %v6290_v5 = vld [vmem:[#allocation60_spill] sm:$0xff] }
 0x265   : > { %v4878_v52 = vpop.eup %3285  ;;  %3311 = vpow2.f32 %v1905_v7  ;;  %v1641_v7 = vsub.f32 %v6286_v11, %v4804_v1  ;;  %v1923_v35 = vmul.f32 1.442695, %v1639_v50  ;;  %v6291_v11 = vld [vmem:[#allocation62_spill] sm:$0xff] }
 0x266   : > { %6281 = vst [vmem:[#allocation6_spill] sm:$0xff] %v4878_v52  ;;  %v4882_v59 = vpop.eup %3287  ;;  %3313 = vpow2.f32 %v1907_v20  ;;  %v1642_v20 = vsub.f32 %v6288_v30, %v4808_v26  ;;  %v1925_v34 = vmul.f32 1.442695, %v1640_v37  ;;  %v6292_v30 = vld [vmem:[#allocation64_spill] sm:$0xff] }
 0x267   : > { %6283 = vst [vmem:[#allocation5_spill] sm:$0xff] %v4882_v59  ;;  %v4886_v12 = vpop.eup %3289  ;;  %3315 = vpow2.f32 %v1909_v63  ;;  %v1667_v63 = vsub.f32 %v6290_v5, %v4796_v45  ;;  %v1927_v18 = vmul.f32 1.442695, %v1641_v7  ;;  %v6294_v5 = vld [vmem:[#allocation66_spill] sm:$0xff] }
 0x268   : > { %v4890_v15 = vpop.eup %3291  ;;  %3317 = vpow2.f32 %v1911_v57  ;;  %v1668_v57 = vsub.f32 %v6291_v11, %v4800_v46  ;;  %v1929_v50 = vmul.f32 1.442695, %v1642_v20  ;;  %v6296_v11 = vld [vmem:[#allocation54_spill] sm:$0xff] }
 0x269   : > { %v4894_v51 = vpop.eup %3293  ;;  %3319 = vpow2.f32 %v1913_v8  ;;  %v1671_v8 = vsub.f32 %v6292_v30, %v4796_v45  ;;  %v1979_v37 = vmul.f32 1.442695, %v1667_v63  ;;  %v6297_v30 = vld [vmem:[#allocation58_spill] sm:$0xff] }
 0x26a   : > { %6287 = vst [vmem:[#allocation7_spill] sm:$0xff] %v4894_v51  ;;  %v4898_v19 = vpop.eup %3295  ;;  %3321 = vpow2.f32 %v1915_v41  ;;  %v1672_v41 = vsub.f32 %v6294_v5, %v4800_v46  ;;  %v1981_v7 = vmul.f32 1.442695, %v1668_v57  ;;  %v6298_v5 = vld [vmem:[#allocation46_spill] sm:$0xff] }
 0x26b   : > { %6289 = vst [vmem:[#allocation8_spill] sm:$0xff] %v4898_v19  ;;  %v4902_v55 = vpop.eup %3297  ;;  %3323 = vpow2.f32 %v1917_v17  ;;  %v1660_v17 = vsub.f32 %v6296_v11, %v4800_v46  ;;  %v1987_v20 = vmul.f32 1.442695, %v1671_v8  ;;  %v6300_v11 = vld [vmem:[#allocation52_spill] sm:$0xff] }
 0x26c   : > { %v4906_v32 = vpop.eup %3299  ;;  %3325 = vpow2.f32 %v1919_v44  ;;  %v1664_v44 = vsub.f32 %v6297_v30, %v4800_v46  ;;  %v1989_v63 = vmul.f32 1.442695, %v1672_v41  ;;  %v6302_v30 = vld [vmem:[#allocation56_spill] sm:$0xff] }
 0x26d   : > { %v4910_v28 = vpop.eup %3301  ;;  %3327 = vpow2.f32 %v1921_v16  ;;  %v1652_v16 = vsub.f32 %v6298_v5, %v4800_v46  ;;  %v1965_v57 = vmul.f32 1.442695, %v1660_v17  ;;  %v6303_v5 = vld [vmem:[#allocation50_spill] sm:$0xff] }
 0x26e   : > { %6293 = vst [vmem:[#allocation10_spill] sm:$0xff] %v4910_v28  ;;  %v4914_v38 = vpop.eup %3303  ;;  %3329 = vpow2.f32 %v1923_v35  ;;  %v1659_v35 = vsub.f32 %v6300_v11, %v4796_v45  ;;  %v1973_v8 = vmul.f32 1.442695, %v1664_v44  ;;  %v6304_v11 = vld [vmem:[#allocation38_spill] sm:$0xff] }
 0x26f   : > { %6295 = vst [vmem:[#allocation9_spill] sm:$0xff] %v4914_v38  ;;  %v4918_v42 = vpop.eup %3305  ;;  %3331 = vpow2.f32 %v1925_v34  ;;  %v1663_v34 = vsub.f32 %v6302_v30, %v4796_v45  ;;  %v1949_v41 = vmul.f32 1.442695, %v1652_v16  ;;  %v6306_v30 = vld [vmem:[#allocation44_spill] sm:$0xff] }
 0x270   : > { %v4922_v21 = vpop.eup %3307  ;;  %3333 = vpow2.f32 %v1927_v18  ;;  %v1656_v18 = vsub.f32 %v6303_v5, %v4800_v46  ;;  %v1651_v17 = vsub.f32 %v6306_v30, %v4796_v45  ;;  %v6308_v5 = vld [vmem:[#allocation48_spill] sm:$0xff] }
 0x271   : > { %v4926_v6 = vpop.eup %3309  ;;  %3335 = vpow2.f32 %v1929_v50  ;;  %v1644_v50 = vsub.f32 %v6304_v11, %v4800_v46  ;;  %v1655_v44 = vsub.f32 %v6308_v5, %v4796_v45  ;;  %v6309_v11 = vld [vmem:[#allocation42_spill] sm:$0xff]  ;;  %v6310_v30 = vld [vmem:[#allocation36_spill] sm:$0xff]  ;;  %v6312_v5 = vld [vmem:[#allocation37_spill] sm:$0xff] }
 0x272   : > { %6299 = vst [vmem:[#allocation11_spill] sm:$0xff] %v4926_v6  ;;  %v4930_v14 = vpop.eup %3311  ;;  %3337 = vpow2.f32 %v1979_v37  ;;  %v1963_v37 = vmul.f32 1.442695, %v1659_v35  ;;  %v1648_v16 = vsub.f32 %v6309_v11, %v4800_v46  ;;  %v1643_v35 = vsub.f32 %v6310_v30, %v4796_v45  ;;  %v6314_v11 = vld [vmem:[#allocation40_spill] sm:$0xff]  ;;  %v6315_v30 = vld [vmem:[#allocation39_spill] sm:$0xff] }
 0x273   : > { %6301 = vst [vmem:[#allocation12_spill] sm:$0xff] %v4930_v14  ;;  %v4934_v9 = vpop.eup %3313  ;;  %3339 = vpow2.f32 %v1981_v7  ;;  %v1971_v7 = vmul.f32 1.442695, %v1663_v34  ;;  %v1947_v34 = vmul.f32 1.442695, %v1651_v17  ;;  %v6321_v6 = vld [vmem:[#allocation47_spill] sm:$0xff] }
 0x274   : > { %v4938_v56 = vpop.eup %3315  ;;  %3341 = vpow2.f32 %v1987_v20  ;;  %v1957_v20 = vmul.f32 1.442695, %v1656_v18  ;;  %v1647_v18 = vsub.f32 %v6314_v11, %v4796_v45  ;;  %v6318_v11 = vld [vmem:[#allocation43_spill] sm:$0xff] }
 0x275   : > { %v4942_v13 = vpop.eup %3317  ;;  %3343 = vpow2.f32 %v1989_v63  ;;  %v1933_v63 = vmul.f32 1.442695, %v1644_v50  ;;  %v1646_v50 = vsub.f32 %v6315_v30, %v4808_v26  ;;  %v6320_v30 = vld [vmem:[#allocation45_spill] sm:$0xff] }
 0x276   : > { %6305 = vst [vmem:[#allocation14_spill] sm:$0xff] %v4942_v13  ;;  %v4946_v2 = vpop.eup %3319  ;;  %3345 = vpow2.f32 %v1965_v57  ;;  %v1645_v57 = vsub.f32 %v6312_v5, %v4804_v1  ;;  %v6316_v5 = vld [vmem:[#allocation41_spill] sm:$0xff] }
 0x277   : > { %6307 = vst [vmem:[#allocation13_spill] sm:$0xff] %v4946_v2  ;;  %v4950_v52 = vpop.eup %3321  ;;  %3347 = vpow2.f32 %v1973_v8  ;;  %v1955_v8 = vmul.f32 1.442695, %v1655_v44  ;;  %v1649_v17 = vsub.f32 %v6316_v5, %v4804_v1  ;;  %v1650_v44 = vsub.f32 %v6318_v11, %v4808_v26  ;;  %v6322_v2 = vld [vmem:[#allocation49_spill] sm:$0xff]  ;;  %v6323_v11 = vld [vmem:[#allocation51_spill] sm:$0xff] }
 0x278   : > { %v4954_v25 = vpop.eup %3323  ;;  %3349 = vpow2.f32 %v1949_v41  ;;  %v1941_v41 = vmul.f32 1.442695, %v1648_v16  ;;  %v1653_v16 = vsub.f32 %v6320_v30, %v4804_v1  ;;  %v1654_v5 = vsub.f32 %v6321_v6, %v4808_v26 }
 0x279   : > { %v4958_v59 = vpop.eup %3325  ;;  %3351 = vpow2.f32 %v1963_v37  ;;  %v1931_v37 = vmul.f32 1.442695, %v1643_v35  ;;  %v1937_v35 = vmul.f32 1.442695, %v1646_v50  ;;  %v1657_v14 = vsub.f32 %v6322_v2, %v4804_v1 }
 0x27a   : > { %6311 = vst [vmem:[#allocation15_spill] sm:$0xff] %v4958_v59  ;;  %v4962_v22 = vpop.eup %3327  ;;  %3353 = vpow2.f32 %v1971_v7  ;;  %v1935_v7 = vmul.f32 1.442695, %v1645_v57  ;;  %v1943_v57 = vmul.f32 1.442695, %v1649_v17  ;;  %v6326_v17 = vld [vmem:[#allocation57_spill] sm:$0xff] }
 0x27b   : > { %6313 = vst [vmem:[#allocation16_spill] sm:$0xff] %v4962_v22  ;;  %v4966_v28 = vpop.eup %3329  ;;  %3355 = vpow2.f32 %v1957_v20  ;;  %v1939_v20 = vmul.f32 1.442695, %v1647_v18  ;;  %v1945_v30 = vmul.f32 1.442695, %v1650_v44  ;;  %v1665_v22 = vsub.f32 %v6326_v17, %v4804_v1 }
 0x27c   : > { %v4970_v51 = vpop.eup %3331  ;;  %3357 = vpow2.f32 %v1933_v63  ;;  %v1951_v6 = vmul.f32 1.442695, %v1653_v16  ;;  %v1953_v2 = vmul.f32 1.442695, %v1654_v5  ;;  %v1959_v44 = vmul.f32 1.442695, %v1657_v14 }
 0x27d   : > { %v4974_v38 = vpop.eup %3333  ;;  %3359 = vpow2.f32 %v1947_v34  ;;  %v1670_v17 = vsub.f32 %v6329_v62, %v4808_v26 }
 0x27e   : > { %6317 = vst [vmem:[#allocation18_spill] sm:$0xff] %v4974_v38  ;;  %v4978_v19 = vpop.eup %3335  ;;  %3361 = vpow2.f32 %v1955_v8  ;;  %v1658_v38 = vsub.f32 %v6323_v11, %v4808_v26  ;;  %v6324_v8 = vld [vmem:[#allocation53_spill] sm:$0xff]  ;;  %v6327_v11 = vld [vmem:[#allocation59_spill] sm:$0xff] }
 0x27f   : > { %6319 = vst [vmem:[#allocation17_spill] sm:$0xff] %v4978_v19  ;;  %v3338_v13 = vpop.eup %3337  ;;  %3363 = vpow2.f32 %v1941_v41  ;;  %v1661_v59 = vsub.f32 %v6324_v8, %v4804_v1  ;;  %v6325_v41 = vld [vmem:[#allocation55_spill] sm:$0xff] }
 0x280   : > { %v3340_v63 = vpop.eup %3339  ;;  %3365 = vpow2.f32 %v1931_v37  ;;  %v1662_v19 = vsub.f32 %v6325_v41, %v4808_v26  ;;  %v1961_v8 = vmul.f32 1.442695, %v1658_v38  ;;  %v1669_v41 = vsub.f32 %v6328_v60, %v4804_v1  ;;  %v6331_v60 = vld [vmem:[#allocation67_spill] sm:$0xff] }
 0x281   : > { %v3342_v34 = vpop.eup %3341  ;;  %3367 = vpow2.f32 %v1935_v7  ;;  %v1666_v7 = vsub.f32 %v6327_v11, %v4808_v26  ;;  %v1967_v5 = vmul.f32 1.442695, %v1661_v59  ;;  %v1732_v59 = vsub.f32 %v6158_v24, %v4800_v46 }
 0x282   : > { %v3344_v18 = vpop.eup %3343  ;;  %3369 = vpow2.f32 %v1939_v20  ;;  %v2458_v16 = vpack.c.bf16 %v3342_v34, %v3338_v13  ;;  %v1969_v4 = vmul.f32 1.442695, %v1662_v19  ;;  %v1975_v13 = vmul.f32 1.442695, %v1665_v22 }
 0x283   : > { %v3346_v50 = vpop.eup %3345  ;;  %3371 = vpow2.f32 %v1937_v35  ;;  %v2459_v20 = vpack.c.bf16 %v3344_v18, %v3340_v63  ;;  %v1674_v34 = vsub.f32 %v6331_v60, %v4808_v26  ;;  %v1977_v62 = vmul.f32 1.442695, %v1666_v7  ;;  %v6332_v7 = vld [vmem:[#allocation118_spill] sm:$0xff] }
 0x284   : > { %v3348_v37 = vpop.eup %3347  ;;  %3373 = vpow2.f32 %v1943_v57  ;;  %v1983_v18 = vmul.f32 1.442695, %v1669_v41  ;;  %v1985_v22 = vmul.f32 1.442695, %v1670_v17  ;;  %v3821_v11 = vmov 0.0   ;;  %v6336_v60 = vld [vmem:[#allocation110_spill] sm:$0xff] }
 0x285   : > { %v3350_v0 = vpop.eup %3349  ;;  %3375 = vpow2.f32 %v1945_v30  ;;  %2592 = vmatprep.subr.bf16.mxu0 %v2459_v20  ;;  %v2455_v57 = vpack.c.bf16 %v3348_v37, %v3346_v50  ;;  %v6330_v30 = vld [vmem:[#allocation65_spill] sm:$0xff]  ;;  %361 = vst [vmem:[#allocation3 + $0x28] sm:$0x1] %v3821_v11  ;;  %362 = vst [vmem:[#allocation3 + $0x48] sm:$0x1] %v3821_v11  ;;  %v6333_v20 = vld [vmem:[#allocation124_spill] sm:$0xff] }
 0x286   : > { %v3352_v47 = vpop.eup %3351  ;;  %3377 = vpow2.f32 %v1951_v6  ;;  %v1673_v38 = vsub.f32 %v6330_v30, %v4804_v1  ;;  %2593 = vmatpush1.bf16.msra.mxu0 %v2458_v16  ;;  %363 = vst [vmem:[#allocation3 + $0x10] sm:$0x1] %v3821_v11  ;;  %364 = vst [vmem:[#allocation3 + $0x40] sm:$0x1] %v3821_v11  ;;  %v1731_v16 = vsub.f32 %v6333_v20, %v4796_v45 }
 0x287   : > { %v3354_v35 = vpop.eup %3353  ;;  %3379 = vpow2.f32 %v1953_v2  ;;  %2594 = vmatprep.subr.bf16.mxu0 %v2455_v57  ;;  %v1736_v2 = vsub.f32 %v6163_v29, %v4800_v46  ;;  %v6334_v29 = vld [vmem:[#allocation128_spill] sm:$0xff]  ;;  %v6335_v57 = vld [vmem:[#allocation122_spill] sm:$0xff] }
 0x288   : > { %v3356_v14 = vpop.eup %3355  ;;  %3381 = vpow2.f32 %v1959_v44  ;;  %v2454_v6 = vpack.c.bf16 %v3354_v35, %v3352_v47  ;;  %v1724_v44 = vsub.f32 %v6332_v7, %v4800_v46  ;;  %v1735_v41 = vsub.f32 %v6334_v29, %v4796_v45 }
 0x289   : > { %v3358_v63 = vpop.eup %3357  ;;  %3383 = vpow2.f32 %v1961_v8  ;;  %v2451_v37 = vpack.c.bf16 %v3356_v14, %v3350_v0  ;;  %v1991_v8 = vmul.f32 1.442695, %v1673_v38  ;;  %v1728_v14 = vsub.f32 %v6335_v57, %v4800_v46 }
 0x28a   : > { %v3360_v19 = vpop.eup %3359  ;;  %3385 = vpow2.f32 %v1967_v5  ;;  %2595 = vmatpush1.bf16.msra.mxu0 %v2454_v6  ;;  %v2109_v5 = vmul.f32 1.442695, %v1732_v59  ;;  %v2117_v30 = vmul.f32 1.442695, %v1736_v2  ;;  %v6337_v59 = vld [vmem:[#allocation116_spill] sm:$0xff] }
 0x28b   : > { %v3362_v50 = vpop.eup %3361  ;;  %3387 = vpow2.f32 %v1969_v4  ;;  %v1993_v4 = vmul.f32 1.442695, %v1674_v34  ;;  %2596 = vmatprep.subr.bf16.mxu0 %v2451_v37  ;;  %v1716_v34 = vsub.f32 %v6336_v60, %v4800_v46 }
 0x28c   : > { %v3364_v24 = vpop.eup %3363  ;;  %3389 = vpow2.f32 %v1975_v13  ;;  %v2450_v35 = vpack.c.bf16 %v3362_v50, %v3360_v19  ;;  %v1723_v19 = vsub.f32 %v6337_v59, %v4796_v45 }
 0x28d   : > { %v3366_v47 = vpop.eup %3365  ;;  %3391 = vpow2.f32 %v1977_v62  ;;  %v2447_v38 = vpack.c.bf16 %v3364_v24, %v3358_v63  ;;  %v2093_v62 = vmul.f32 1.442695, %v1724_v44  ;;  %v6338_v63 = vld [vmem:[#allocation120_spill] sm:$0xff]  ;;  %v6339_v24 = vld [vmem:[#allocation114_spill] sm:$0xff]  ;;  %v2101_v44 = vmul.f32 1.442695, %v1728_v14 }
 0x28e   : > { %v5012_v0 = vpop.eup %3367  ;;  %3393 = vpow2.f32 %v1983_v18  ;;  %2597 = vmatpush1.bf16.msra.mxu0 %v2450_v35  ;;  %v2107_v18 = vmul.f32 1.442695, %v1731_v16  ;;  %v1727_v2 = vsub.f32 %v6338_v63, %v4796_v45  ;;  %v1720_v7 = vsub.f32 %v6339_v24, %v4800_v46  ;;  %v6340_v16 = vld [vmem:[#allocation102_spill] sm:$0xff]  ;;  %v6347_v24 = vld [vmem:[#allocation100_spill] sm:$0xff] }
 0x28f   : > { %v3370_v17 = vpop.eup %3369  ;;  %3395 = vpow2.f32 %v1985_v22  ;;  %2598 = vmatprep.subr.bf16.mxu0 %v2447_v38  ;;  %v2115_v22 = vmul.f32 1.442695, %v1735_v41  ;;  %v2077_v29 = vmul.f32 1.442695, %v1716_v34  ;;  %v2091_v35 = vmul.f32 1.442695, %v1723_v19 }
 0x290   : > { %v5018_v13 = vpop.eup %3371  ;;  %3397 = vpow2.f32 %v1991_v8  ;;  %v2446_v37 = vpack.c.bf16 %v3370_v17, %v3366_v47  ;;  %v2443_v8 = vpack.c.bf16 %v4970_v51, %v4954_v25  ;;  %v6341_v47 = vld [vmem:[#allocation108_spill] sm:$0xff]  ;;  %v2099_v57 = vmul.f32 1.442695, %v1727_v2  ;;  %v6343_v38 = vld [vmem:[#allocation106_spill] sm:$0xff] }
 0x291   : > { %v5022_v6 = vpop.eup %3373  ;;  %3399 = vpow2.f32 %v1993_v4  ;;  %v1708_v4 = vsub.f32 %v6340_v16, %v4800_v46  ;;  %v6342_v51 = vld [vmem:[#allocation112_spill] sm:$0xff]  ;;  %v2442_v14 = vpack.c.bf16 %v4966_v28, %v4950_v52  ;;  %v1712_v60 = vsub.f32 %v6343_v38, %v4800_v46  ;;  %v6344_v19 = vld [vmem:[#allocation70_spill] sm:$0xff] }
 0x292   : > { %v5026_v50 = vpop.eup %3375  ;;  %3401 = vpow2.f32 %v2109_v5  ;;  %2599 = vmatpush1.bf16.msra.mxu0 %v2446_v37  ;;  %v1715_v5 = vsub.f32 %v6341_v47, %v4796_v45  ;;  %v1719_v25 = vsub.f32 %v6342_v51, %v4796_v45  ;;  %v2085_v34 = vmul.f32 1.442695, %v1720_v7  ;;  %v6345_v63 = vld [vmem:[#allocation94_spill] sm:$0xff] }
 0x293   : > { %v5030_v11 = vpop.eup %3377  ;;  %3403 = vpow2.f32 %v2117_v30  ;;  %2600 = vmatprep.subr.bf16.mxu0 %v2443_v8  ;;  %v1700_v2 = vsub.f32 %v6345_v63, %v4800_v46  ;;  %v6346_v28 = vld [vmem:[#allocation74_spill] sm:$0xff]  ;;  %v1707_v7 = vsub.f32 %v6347_v24, %v4796_v45 }
 0x294   : > { %v5036_v20 = vpop.eup %3379  ;;  %3405 = vpow2.f32 %v2093_v62  ;;  %v2439_v62 = vpack.c.bf16 %v4938_v56, %v4922_v21  ;;  %v2075_v21 = vmul.f32 1.442695, %v1715_v5  ;;  %v2083_v16 = vmul.f32 1.442695, %v1719_v25  ;;  %v6349_v47 = vld [vmem:[#allocation98_spill] sm:$0xff] }
 0x295   : > { %v5040_v41 = vpop.eup %3381  ;;  %3407 = vpow2.f32 %v2107_v18  ;;  %v1704_v51 = vsub.f32 %v6349_v47, %v4800_v46  ;;  %v2435_v5 = vpack.c.bf16 %v4906_v32, %v4890_v15  ;;  %v6350_v38 = vld [vmem:[#allocation78_spill] sm:$0xff]  ;;  %v2045_v63 = vmul.f32 1.442695, %v1700_v2 }
 0x296   : > { %v5044_v17 = vpop.eup %3383  ;;  %3409 = vpow2.f32 %v2115_v22  ;;  %v2061_v22 = vmul.f32 1.442695, %v1708_v4  ;;  %2601 = vmatpush1.bf16.msra.mxu0 %v2442_v14  ;;  %v2438_v4 = vpack.c.bf16 %v4934_v9, %v4918_v42  ;;  %v2069_v14 = vmul.f32 1.442695, %v1712_v60  ;;  %v6351_v25 = vld [vmem:[#allocation86_spill] sm:$0xff] }
 0x297   : > { %v5050_v30 = vpop.eup %3385  ;;  %3411 = vpow2.f32 %v2101_v44  ;;  %2602 = vmatprep.subr.bf16.mxu0 %v2439_v62  ;;  %v6348_v44 = vld [vmem:[#allocation104_spill] sm:$0xff]  ;;  %v1684_v62 = vsub.f32 %v6350_v38, %v4800_v46  ;;  %v6352_v9 = vld [vmem:[#allocation82_spill] sm:$0xff]  ;;  %v2059_v15 = vmul.f32 1.442695, %v1707_v7  ;;  %v2434_v2 = vpack.c.bf16 %v4902_v55, %v4886_v12 }
 0x298   : > { %v5056_v59 = vpop.eup %3387  ;;  %3413 = vpow2.f32 %v2077_v29  ;;  %v1711_v8 = vsub.f32 %v6348_v44, %v4796_v45  ;;  %v1688_v60 = vsub.f32 %v6352_v9, %v4800_v46  ;;  %v6354_v44 = vld [vmem:[#allocation96_spill] sm:$0xff]  ;;  %v2053_v9 = vmul.f32 1.442695, %v1704_v51 }
 0x299   : > { %v5062_v52 = vpop.eup %3389  ;;  %3415 = vpow2.f32 %v2091_v35  ;;  %v1703_v47 = vsub.f32 %v6354_v44, %v4796_v45  ;;  %v2431_v7 = vpack.c.bf16 %v4874_v61, %v4858_v58  ;;  %v6357_v44 = vld [vmem:[#allocation88_spill] sm:$0xff]  ;;  %v5108_v51 = vrot.slane %v4850_v27, %v4790_v36 }
 0x29a   : > { %v5068_v56 = vpop.eup %3391  ;;  %3417 = vpow2.f32 %v2099_v57  ;;  %v1692_v57 = vsub.f32 %v6351_v25, %v4800_v46  ;;  %2603 = vmatpush1.bf16.msra.mxu0 %v2438_v4  ;;  %v2067_v38 = vmul.f32 1.442695, %v1711_v8  ;;  %v6355_v4 = vld [vmem:[#allocation90_spill] sm:$0xff]  ;;  %v1695_v8 = vsub.f32 %v6357_v44, %v4796_v45 }
 0x29b   : > { %v5074_v29 = vpop.eup %3393  ;;  %3419 = vpow2.f32 %v2085_v34  ;;  %v6353_v34 = vld [vmem:[#allocation92_spill] sm:$0xff]  ;;  %2604 = vmatprep.subr.bf16.mxu0 %v2435_v5  ;;  %v1696_v25 = vsub.f32 %v6355_v4, %v4800_v46  ;;  %v6358_v61 = vsub.s32 1, %v4784_v39  ;;  %v2051_v4 = vmul.f32 1.442695, %v1703_v47 }
 0x29c   : > { %v5080_v35 = vpop.eup %3395  ;;  %3421 = vpow2.f32 %v2061_v22  ;;  %v1699_v24 = vsub.f32 %v6353_v34, %v4796_v45  ;;  %v6356_v5 = vld [vmem:[#allocation84_spill] sm:$0xff]  ;;  %v2013_v37 = vmul.f32 1.442695, %v1684_v62 }
 0x29d   : > { %v5086_v42 = vpop.eup %3397  ;;  %3423 = vpow2.f32 %v2075_v21  ;;  %v1691_v34 = vsub.f32 %v6356_v5, %v4796_v45  ;;  %v5113_v58 = vrot.slane %v4850_v27, %v6358_v61  ;;  %v6361_v5 = vsub.s32 3, %v4784_v39  ;;  %v6363_v47 = vld [vmem:[#allocation76_spill] sm:$0xff] }
 0x29e   : > { %v5092_v32 = vpop.eup %3399  ;;  %3425 = vpow2.f32 %v2083_v16  ;;  %v2029_v16 = vmul.f32 1.442695, %v1692_v57  ;;  %2605 = vmatpush1.bf16.msra.mxu0 %v2434_v2  ;;  %v2043_v55 = vmul.f32 1.442695, %v1699_v24  ;;  %v2430_v57 = vpack.c.bf16 %v4870_v31, %v4854_v54  ;;  %v6364_v31 = vld [vmem:[#allocation80_spill] sm:$0xff] }
 0x29f   : > { %v3402_v22 = vpop.eup %3401  ;;  %3427 = vpow2.f32 %v2069_v14  ;;  %2606 = vmatprep.subr.bf16.mxu0 %v2431_v7  ;;  %v2037_v2 = vmul.f32 1.442695, %v1696_v25  ;;  %v5125_v44 = vrot.slane %v4850_v27, %v6361_v5  ;;  %v1687_v54 = vsub.f32 %v6364_v31, %v4796_v45 }
 0x2a0   : > { %v3404_v21 = vpop.eup %3403  ;;  %3429 = vpow2.f32 %v2045_v63  ;;  %v6359_v63 = vsub.s32 2, %v4784_v39  ;;  %v2027_v18 = vmul.f32 1.442695, %v1691_v34  ;;  %v5135_v39 = vmul.f32 0.0, %v5113_v58 }
 0x2a1   : > { %v3406_v12 = vpop.eup %3405  ;;  %3431 = vpow2.f32 %v2059_v15  ;;  %v2491_v7 = vpack.c.bf16 %v3404_v21, %v3402_v22  ;;  %6362 = vst [vmem:[#allocation20_spill] sm:$0xff] %v5125_v44  ;;  %v5132_v22 = vmul.f32 0.0, %v5108_v51  ;;  %v2035_v25 = vmul.f32 1.442695, %v1695_v8 }
 0x2a2   : > { %v3408_v14 = vpop.eup %3407  ;;  %3433 = vpow2.f32 %v2067_v38  ;;  %v5120_v24 = vrot.slane %v4850_v27, %v6359_v63  ;;  %v1683_v38 = vsub.f32 %v6363_v47, %v4796_v45  ;;  %2607 = vmatpush1.bf16.msra.mxu0 %v2430_v57  ;;  %v5141_v34 = vmul.f32 0.0, %v5125_v44 }
 0x2a3   : > { %v3410_v15 = vpop.eup %3409  ;;  %3435 = vpow2.f32 %v2053_v9  ;;  %2608 = vmatprep.subr.bf16.mxu0 %v2491_v7  ;;  %v6365_v7 = vld [vmem:[#allocation68_spill] sm:$0xff]  ;;  %v6366_v47 = vsub.f32 %v6344_v19, %v4800_v46  ;;  %v2019_v31 = vmul.f32 1.442695, %v1687_v54  ;;  %v6369_v19 = vld [vmem:[#allocation107_spill] sm:$0xff] }
 0x2a4   : > { %6360 = vst [vmem:[#allocation19_spill] sm:$0xff] %v5120_v24  ;;  %v3412_v61 = vpop.eup %3411  ;;  %3437 = vpow2.f32 %v2029_v16  ;;  %v2490_v9 = vpack.c.bf16 %v3410_v15, %v3408_v14  ;;  %v5138_v21 = vmul.f32 0.0, %v5120_v24  ;;  %v2021_v16 = vmul.f32 1.442695, %v1688_v60 }
 0x2a5   : > { %v3414_v63 = vpop.eup %3413  ;;  %3439 = vpow2.f32 %v2043_v55  ;;  %v2487_v57 = vpack.c.bf16 %v3412_v61, %v3406_v12  ;;  %v1675_v5 = vsub.f32 %v6365_v7, %v4796_v45  ;;  %v1997_v8 = vmul.f32 1.442695, %v6366_v47 }
 0x2a6   : > { %v3416_v27 = vpop.eup %3415  ;;  %3441 = vpow2.f32 %v2051_v4  ;;  %2609 = vmatpush2.bf16.msra.mxu0 %v2490_v9  ;;  %v6367_v4 = vld [vmem:[#allocation72_spill] sm:$0xff]  ;;  %v2011_v60 = vmul.f32 1.442695, %v1683_v38  ;;  %v1714_v47 = vsub.f32 %v6369_v19, %v4808_v26 }
 0x2a7   : > { %v3418_v62 = vpop.eup %3417  ;;  %3443 = vpow2.f32 %v2037_v2  ;;  %v1679_v15 = vsub.f32 %v6367_v4, %v4796_v45  ;;  %2610 = vmatprep.subr.bf16.mxu0 %v2487_v57  ;;  %v6368_v2 = vld [vmem:[#allocation103_spill] sm:$0xff]  ;;  %v1995_v24 = vmul.f32 1.442695, %v1675_v5 }
 0x2a8   : > { %v3420_v55 = vpop.eup %3419  ;;  %3445 = vpow2.f32 %v2013_v37  ;;  %v1710_v61 = vsub.f32 %v6368_v2, %v4808_v26  ;;  %v2486_v7 = vpack.c.bf16 %v3418_v62, %v3416_v27  ;;  %v6370_v37 = vsub.f32 %v6346_v28, %v4800_v46  ;;  %v6372_v27 = vld [vmem:[#allocation111_spill] sm:$0xff] }
 0x2a9   : > { %v3422_v14 = vpop.eup %3421  ;;  %3447 = vpow2.f32 %v2027_v18  ;;  %v2483_v4 = vpack.c.bf16 %v3420_v55, %v3414_v63  ;;  %v6371_v18 = vld [vmem:[#allocation109_spill] sm:$0xff]  ;;  %v2003_v62 = vmul.f32 1.442695, %v1679_v15  ;;  %v6373_v28 = vld [vmem:[#allocation115_spill] sm:$0xff] }
 0x2aa   : > { %v3424_v12 = vpop.eup %3423  ;;  %3449 = vpow2.f32 %v2035_v25  ;;  %v2005_v9 = vmul.f32 1.442695, %v6370_v37  ;;  %v1717_v57 = vsub.f32 %v6371_v18, %v4804_v1  ;;  %2611 = vmatpush2.bf16.msra.mxu0 %v2486_v7  ;;  %v1718_v25 = vsub.f32 %v6372_v27, %v4808_v26  ;;  %v6374_v37 = vld [vmem:[#allocation117_spill] sm:$0xff]  ;;  %v6375_v15 = vld [vmem:[#allocation119_spill] sm:$0xff] }
 0x2ab   : > { %v3426_v44 = vpop.eup %3425  ;;  %3451 = vpow2.f32 %v2021_v16  ;;  %2612 = vmatprep.subr.bf16.mxu0 %v2483_v4  ;;  %v1722_v19 = vsub.f32 %v6373_v28, %v4808_v26  ;;  %v2065_v63 = vmul.f32 1.442695, %v1710_v61  ;;  %v1725_v5 = vsub.f32 %v6374_v37, %v4804_v1 }
 0x2ac   : > { %v3428_v38 = vpop.eup %3427  ;;  %3453 = vpow2.f32 %v1997_v8  ;;  %v2482_v16 = vpack.c.bf16 %v3426_v44, %v3424_v12  ;;  %v2073_v8 = vmul.f32 1.442695, %v1714_v47  ;;  %v2079_v4 = vmul.f32 1.442695, %v1717_v57 }
 0x2ad   : > { %v3430_v54 = vpop.eup %3429  ;;  %3455 = vpow2.f32 %v2011_v60  ;;  %v2479_v7 = vpack.c.bf16 %v3428_v38, %v3422_v14  ;;  %v1726_v60 = vsub.f32 %v6375_v15, %v4808_v26  ;;  %v2081_v44 = vmul.f32 1.442695, %v1718_v25 }
 0x2ae   : > { %v3432_v2 = vpop.eup %3431  ;;  %3457 = vpow2.f32 %v2019_v31  ;;  %2613 = vmatpush2.bf16.msra.mxu0 %v2482_v16  ;;  %v6376_v31 = vld [vmem:[#allocation121_spill] sm:$0xff]  ;;  %v2089_v14 = vmul.f32 1.442695, %v1722_v19  ;;  %v2095_v16 = vmul.f32 1.442695, %v1725_v5  ;;  %v1738_v5 = vsub.f32 %v6164_v33, %v4808_v26 }
 0x2af   : > { %v3434_v55 = vpop.eup %3433  ;;  %3459 = vpow2.f32 %v2005_v9  ;;  %v1729_v61 = vsub.f32 %v6376_v31, %v4804_v1  ;;  %2614 = vmatprep.subr.bf16.mxu0 %v2479_v7  ;;  %v6377_v9 = vld [vmem:[#allocation123_spill] sm:$0xff]  ;;  %v2097_v7 = vmul.f32 1.442695, %v1726_v60  ;;  %v6380_v19 = vld [vmem:[#allocation129_spill] sm:$0xff]  ;;  %v5186_v60 = vld [vmem:[%s5179_s7 + $0x4] ss:$16 sps:$4 sm:$0xff]   ;;  %v1788_v31 = vsub.f32 %v6202_v48, %v4800_v46 }
 0x2b0   : > { %v3436_v18 = vpop.eup %3435  ;;  %3461 = vpow2.f32 %v1995_v24  ;;  %v1730_v47 = vsub.f32 %v6377_v9, %v4808_v26  ;;  %v2478_v38 = vpack.c.bf16 %v3434_v55, %v3432_v2  ;;  %v6378_v24 = vld [vmem:[#allocation125_spill] sm:$0xff]  ;;  %2624 = vmatprep.mubr.bf16.mxu0 %v5186_v60 }
 0x2b1   : > { %v3438_v27 = vpop.eup %3437  ;;  %3463 = vpow2.f32 %v2003_v62  ;;  %v1733_v57 = vsub.f32 %v6378_v24, %v4804_v1  ;;  %v2475_v37 = vpack.c.bf16 %v3436_v18, %v3430_v54  ;;  %v6379_v62 = vld [vmem:[#allocation127_spill] sm:$0xff]  ;;  %v2103_v54 = vmul.f32 1.442695, %v1729_v61 }
 0x2b2   : > { %v3440_v12 = vpop.eup %3439  ;;  %3465 = vpow2.f32 %v2065_v63  ;;  %v1734_v25 = vsub.f32 %v6379_v62, %v4808_v26  ;;  %2615 = vmatpush2.bf16.msra.mxu0 %v2478_v38  ;;  %v1737_v63 = vsub.f32 %v6380_v19, %v4804_v1  ;;  %v3266_v24 = vld [vmem:[%s5179_s7 + $0xc] ss:$16 sps:$4 sm:$0xff]   ;;  %v1792_v61 = vsub.f32 %v6208_v53, %v4800_v46 }
 0x2b3   : > { %v3442_v28 = vpop.eup %3441  ;;  %3467 = vpow2.f32 %v2073_v8  ;;  %2616 = vmatprep.subr.bf16.mxu0 %v2475_v37  ;;  %v2105_v8 = vmul.f32 1.442695, %v1730_v47  ;;  %v2111_v9 = vmul.f32 1.442695, %v1733_v57  ;;  %2675 = vmatprep.mubr.bf16.mxu1 %v3266_v24  ;;  %v1799_v57 = vsub.f32 %v6214_v10, %v4796_v45 }
 0x2b4   : > { %v3444_v15 = vpop.eup %3443  ;;  %3469 = vpow2.f32 %v2079_v4  ;;  %v2474_v18 = vpack.c.bf16 %v3442_v28, %v3440_v12  ;;  %v2113_v37 = vmul.f32 1.442695, %v1734_v25  ;;  %v1795_v12 = vsub.f32 %v4497_v49, %v4796_v45 }
 0x2b5   : > { %v3446_v2 = vpop.eup %3445  ;;  %3471 = vpow2.f32 %v2081_v44  ;;  %v2471_v38 = vpack.c.bf16 %v3444_v15, %v3438_v27  ;;  %v2119_v47 = vmul.f32 1.442695, %v1737_v63  ;;  %v1796_v27 = vsub.f32 %v6212_v3, %v4800_v46 }
 0x2b6   : > { %v3448_v55 = vpop.eup %3447  ;;  %3473 = vpow2.f32 %v2089_v14  ;;  %2617 = vmatpush2.bf16.msra.mxu0 %v2474_v18  ;;  %v2121_v14 = vmul.f32 1.442695, %v1738_v5  ;;  %v1800_v49 = vsub.f32 %v4521_v43, %v4800_v46  ;;  %v2229_v25 = vmul.f32 1.442695, %v1792_v61  ;;  %v6381_v43 = vld [vmem:[#allocation185_spill] sm:$0xff] }
 0x2b7   : > { %v3450_v4 = vpop.eup %3449  ;;  %3475 = vpow2.f32 %v2095_v16  ;;  %2618 = vmatprep.subr.bf16.mxu0 %v2471_v38  ;;  %v2221_v16 = vmul.f32 1.442695, %v1788_v31  ;;  %v1780_v3 = vsub.f32 %v6190_v40, %v4800_v46  ;;  %v2235_v19 = vmul.f32 1.442695, %v1795_v12  ;;  %v6383_v38 = vld [vmem:[#allocation167_spill] sm:$0xff] }
 0x2b8   : > { %v3452_v44 = vpop.eup %3451  ;;  %3477 = vpow2.f32 %v2097_v7  ;;  %v2470_v53 = vpack.c.bf16 %v3450_v4, %v3448_v55  ;;  %v1787_v10 = vsub.f32 %v6198_v23, %v4796_v45  ;;  %v1791_v5 = vsub.f32 %v6381_v43, %v4796_v45  ;;  %v6382_v4 = vld [vmem:[#allocation179_spill] sm:$0xff] }
 0x2b9   : > { %v3454_v33 = vpop.eup %3453  ;;  %3479 = vpow2.f32 %v2103_v54  ;;  %v2467_v15 = vpack.c.bf16 %v3452_v44, %v3446_v2  ;;  %v2237_v2 = vmul.f32 1.442695, %v1796_v27  ;;  %v1784_v31 = vsub.f32 %v6382_v4, %v4800_v46  ;;  %v2428_v61 = vld [vmem:[%s5179_s7 + $0x20] sm:$0x11] }
 0x2ba   : > { %v3456_v48 = vpop.eup %3455  ;;  %3481 = vpow2.f32 %v2105_v8  ;;  %2619 = vmatpush2.bf16.msra.mxu0 %v2470_v53  ;;  %v2243_v8 = vmul.f32 1.442695, %v1799_v57  ;;  %v1772_v24 = vsub.f32 %v6383_v38, %v4800_v46  ;;  %v2205_v44 = vmul.f32 1.442695, %v1780_v3  ;;  %v6390_v38 = vld [vmem:[#allocation163_spill] sm:$0xff] }
 0x2bb   : > { %v3458_v28 = vpop.eup %3457  ;;  %3483 = vpow2.f32 %v2111_v9  ;;  %2620 = vmatprep.subr.bf16.mxu0 %v2467_v15  ;;  %v2245_v9 = vmul.f32 1.442695, %v1800_v49  ;;  %v2461_v57 = vpack.c.bf16 %v5092_v32, %v5080_v35  ;;  %v6388_v32 = vld [vmem:[#allocation165_spill] sm:$0xff]  ;;  %v2460_v43 = vpack.c.bf16 %v5086_v42, %v5074_v29  ;;  %v6391_v42 = vld [vmem:[#allocation151_spill] sm:$0xff] }
 0x2bc   : > { %v3460_v62 = vpop.eup %3459  ;;  %3485 = vpow2.f32 %v2113_v37  ;;  %v2466_v54 = vpack.c.bf16 %v3458_v28, %v3456_v48  ;;  %v2227_v28 = vmul.f32 1.442695, %v1791_v5 }
 0x2bd   : > { %v3462_v7 = vpop.eup %3461  ;;  %3487 = vpow2.f32 %v2119_v47  ;;  %v2463_v18 = vpack.c.bf16 %v3460_v62, %v3454_v33  ;;  %v6384_v33 = vld [vmem:[#allocation173_spill] sm:$0xff]  ;;  %v2219_v47 = vmul.f32 1.442695, %v1787_v10  ;;  %v6386_v62 = vld [vmem:[#allocation171_spill] sm:$0xff]  ;;  %v2189_v10 = vmul.f32 1.442695, %v1772_v24 }
 0x2be   : > { %v3464_v63 = vpop.eup %3463  ;;  %3489 = vpow2.f32 %v2121_v14  ;;  %2621 = vmatpush2.bf16.msra.mxu0 %v2466_v54  ;;  %v1779_v12 = vsub.f32 %v6384_v33, %v4796_v45  ;;  %v6385_v14 = vld [vmem:[#allocation177_spill] sm:$0xff]  ;;  %v1776_v49 = vsub.f32 %v6386_v62, %v4800_v46  ;;  %v1768_v24 = vsub.f32 %v6390_v38, %v4800_v46 }
 0x2bf   : > { %v5206_v55 = vpop.eup %3465  ;;  %3491 = vpow2.f32 %v2221_v16  ;;  %2622 = vmatprep.subr.bf16.mxu0 %v2463_v18  ;;  %v2462_v48 = vpack.c.bf16 %v3464_v63, %v3462_v7  ;;  %v1783_v53 = vsub.f32 %v6385_v14, %v4796_v45  ;;  %v5230_v16 = vld [vmem:[%s5179_s7] ss:$16 sps:$4 sm:$0xff]   ;;  %v5236_v7 = vcombine.high %v2428_v61, %v2428_v61 }
 0x2c0   : > { %v5210_v40 = vpop.eup %3467  ;;  %3493 = vpow2.f32 %v2229_v25  ;;  %v2213_v25 = vmul.f32 1.442695, %v1784_v31  ;;  %v2203_v54 = vmul.f32 1.442695, %v1779_v12  ;;  %v2457_v31 = vpack.c.bf16 %v5068_v56, %v5056_v59  ;;  %v6392_v12 = vld [vmem:[#allocation157_spill] sm:$0xff] }
 0x2c1   : > { %v5214_v23 = vpop.eup %3469  ;;  %3495 = vpow2.f32 %v2235_v19  ;;  %v6387_v19 = vld [vmem:[#allocation159_spill] sm:$0xff]  ;;  %v2211_v4 = vmul.f32 1.442695, %v1783_v53  ;;  %v1756_v33 = vsub.f32 %v6391_v42, %v4800_v46  ;;  %v6393_v56 = vld [vmem:[#allocation161_spill] sm:$0xff]  ;;  %v6398_v42 = vld [vmem:[#allocation134_spill] sm:$0xff] }
 0x2c2   : > { %v5219_v37 = vpop.eup %3471  ;;  %3497 = vpow2.f32 %v2237_v2  ;;  %2623 = vmatpush2.bf16.msra.mxu0 %v2462_v48  ;;  %v1764_v63 = vsub.f32 %v6387_v19, %v4800_v46  ;;  %v1771_v2 = vsub.f32 %v6388_v32, %v4796_v45  ;;  %v1767_v14 = vsub.f32 %v6393_v56, %v4796_v45 }
 0x2c3   : > { %v5223_v27 = vpop.eup %3473  ;;  %3499 = vpow2.f32 %v2243_v8  ;;  %2694 = vmatprep.subr.bf16.mxu0 %v2461_v57  ;;  %v6389_v8 = vld [vmem:[#allocation169_spill] sm:$0xff]  ;;  %v2181_v32 = vmul.f32 1.442695, %v1768_v24  ;;  %v2449_v24 = vpack.c.bf16 %v5026_v50, %v5018_v13 }
 0x2c4   : > { %v5232_v15 = vpop.eup %3475  ;;  %3501 = vpow2.f32 %v2245_v9  ;;  %v1775_v18 = vsub.f32 %v6389_v8, %v4796_v45  ;;  %v2173_v48 = vmul.f32 1.442695, %v1764_v63  ;;  %v2187_v53 = vmul.f32 1.442695, %v1771_v2  ;;  %v6394_v63 = vld [vmem:[#allocation155_spill] sm:$0xff]  ;;  %v6396_v8 = vld [vmem:[#allocation149_spill] sm:$0xff] }
 0x2c5   : > { %v5238_v3 = vpop.eup %3477  ;;  %3503 = vpow2.f32 %v2205_v44  ;;  %2625 = vmatmul.mubr.bf16.vlgmr.msra.gmra.mxu0 %v5230_v16  ;;  %v2197_v44 = vmul.f32 1.442695, %v1776_v49  ;;  %v2453_v49 = vpack.c.bf16 %v5044_v17, %v5036_v20  ;;  %v1755_v20 = vsub.f32 %v6396_v8, %v4796_v45 }
 0x2c6   : > { %v5242_v35 = vpop.eup %3479  ;;  %3505 = vpow2.f32 %v2219_v47  ;;  %2695 = vmatpush1.bf16.msra.mxu0 %v2460_v43  ;;  %2634 = vmatprep.mubr.bf16.mxu0 %v5236_v7  ;;  %v1763_v47 = vsub.f32 %v6392_v12, %v4796_v45  ;;  %v2195_v62 = vmul.f32 1.442695, %v1775_v18  ;;  %v2179_v38 = vmul.f32 1.442695, %v1767_v14  ;;  %v6399_v12 = vld [vmem:[#allocation147_spill] sm:$0xff] }
 0x2c7   : > { %v5248_v5 = vpop.eup %3481  ;;  %3507 = vpow2.f32 %v2227_v28  ;;  %2696 = vmatprep.subr.bf16.mxu0 %v2457_v31  ;;  %v2456_v28 = vpack.c.bf16 %v5062_v52, %v5050_v30  ;;  %v2157_v52 = vmul.f32 1.442695, %v1756_v33  ;;  %v1740_v33 = vsub.f32 %v6398_v42, %v4800_v46 }
 0x2c8   : > { %v5255_v9 = vpop.eup %3483  ;;  %3509 = vpow2.f32 %v2213_v25  ;;  %v5276_v25 = vcombine.low %v2428_v61, %v2428_v61  ;;  %v2171_v17 = vmul.f32 1.442695, %v1763_v47  ;;  %v2452_v61 = vpack.c.bf16 %v5040_v41, %v5030_v11  ;;  %v6400_v41 = vld [vmem:[#allocation140_spill] sm:$0xff] }
 0x2c9   : > { %v5260_v29 = vpop.eup %3485  ;;  %3511 = vpow2.f32 %v2189_v10  ;;  %v1760_v10 = vsub.f32 %v6394_v63, %v4800_v46  ;;  %v1752_v47 = vsub.f32 %v6399_v12, %v4800_v46  ;;  %v1747_v56 = vsub.f32 %v6400_v41, %v4796_v45  ;;  %v6401_v63 = vld [vmem:[#allocation144_spill] sm:$0xff] }
 0x2ca   : > { %v5266_v59 = vpop.eup %3487  ;;  %3513 = vpow2.f32 %v2203_v54  ;;  %2697 = vmatpush1.bf16.msra.mxu0 %v2456_v28  ;;  %v6395_v54 = vld [vmem:[#allocation142_spill] sm:$0xff]  ;;  %v2155_v50 = vmul.f32 1.442695, %v1755_v20  ;;  %v6410_v41 = vld [vmem:[#allocation12_spill] sm:$0xff] }
 0x2cb   : > { %v5272_v57 = vpop.eup %3489  ;;  %3515 = vpow2.f32 %v2211_v4  ;;  %v1748_v30 = vsub.f32 %v6395_v54, %v4800_v46  ;;  %2698 = vmatprep.subr.bf16.mxu0 %v2453_v49  ;;  %v6397_v4 = vld [vmem:[#allocation153_spill] sm:$0xff]  ;;  %v2139_v42 = vmul.f32 1.442695, %v1747_v56 }
 0x2cc   : > { %v3492_v19 = vpop.eup %3491  ;;  %3517 = vpow2.f32 %v2197_v44  ;;  %v1759_v31 = vsub.f32 %v6397_v4, %v4796_v45  ;;  %v6403_v54 = vld [vmem:[#allocation17_spill] sm:$0xff] }
 0x2cd   : > { %v3494_v2 = vpop.eup %3493  ;;  %3519 = vpow2.f32 %v2173_v48  ;;  %2635 = vmatmul.mubr.bf16.gmra.mxu0 %v5276_v25  ;;  %v2165_v48 = vmul.f32 1.442695, %v1760_v10  ;;  %v2141_v14 = vmul.f32 1.442695, %v1748_v30  ;;  %v1751_v10 = vsub.f32 %v6401_v63, %v4796_v45 }
 0x2ce   : > { %v3496_v43 = vpop.eup %3495  ;;  %3521 = vpow2.f32 %v2187_v53  ;;  %2699 = vmatpush1.bf16.msra.mxu0 %v2452_v61  ;;  %2726 = vmatprep.mubr.bf16.mxu0 %v5186_v60  ;;  %v2163_v60 = vmul.f32 1.442695, %v1759_v31  ;;  %v2149_v61 = vmul.f32 1.442695, %v1752_v47  ;;  %v2519_v20 = vpack.c.bf16 %v3494_v2, %v3492_v19  ;;  %v6408_v19 = vld [vmem:[#allocation15_spill] sm:$0xff]  ;;  %v6409_v2 = vld [vmem:[#allocation18_spill] sm:$0xff] }
 0x2cf   : > { %v3498_v18 = vpop.eup %3497  ;;  %3523 = vpow2.f32 %v2195_v62  ;;  %2700 = vmatprep.subr.bf16.mxu0 %v2449_v24  ;;  %v2448_v62 = vpack.c.bf16 %v5022_v6, %v5012_v0  ;;  %v6405_v0 = vld [vmem:[#allocation113_spill] sm:$0xff]  ;;  %v2125_v31 = vmul.f32 1.442695, %v1740_v33  ;;  %v6407_v24 = vld [vmem:[#allocation136_spill] sm:$0xff]  ;;  %v2444_v12 = vpack.c.bf16 %v6409_v2, %v6408_v19  ;;  %v6420_v2 = vld [vmem:[#allocation87_spill] sm:$0xff] }
 0x2d0   : > { %v3500_v44 = vpop.eup %3499  ;;  %3525 = vpow2.f32 %v2181_v32  ;;  %v6402_v32 = vld [vmem:[#allocation16_spill] sm:$0xff]  ;;  %v1721_v6 = vsub.f32 %v6405_v0, %v4804_v1  ;;  %v6419_v19 = vld [vmem:[#allocation9_spill] sm:$0xff] }
 0x2d1   : > { %v3502_v11 = vpop.eup %3501  ;;  %3527 = vpow2.f32 %v2157_v52  ;;  %v2522_v53 = vpack.c.bf16 %v3500_v44, %v3496_v43  ;;  %v2445_v8 = vpack.c.bf16 %v6403_v54, %v6402_v32  ;;  %v6404_v52 = vld [vmem:[#allocation138_spill] sm:$0xff]  ;;  %v1743_v44 = vsub.f32 %v6407_v24, %v4796_v45  ;;  %v6418_v24 = vld [vmem:[#allocation8_spill] sm:$0xff] }
 0x2d2   : > { %v3504_v13 = vpop.eup %3503  ;;  %3529 = vpow2.f32 %v2171_v17  ;;  %v2523_v28 = vpack.c.bf16 %v3502_v11, %v3498_v18  ;;  %v1744_v43 = vsub.f32 %v6404_v52, %v4800_v46  ;;  %2701 = vmatpush1.bf16.msra.mxu0 %v2448_v62  ;;  %v6406_v18 = vld [vmem:[#allocation132_spill] sm:$0xff] }
 0x2d3   : > { %v3506_v49 = vpop.eup %3505  ;;  %3531 = vpow2.f32 %v2179_v38  ;;  %v1739_v4 = vsub.f32 %v6406_v18, %v4796_v45  ;;  %2702 = vmatprep.subr.bf16.mxu0 %v2445_v8  ;;  %v6414_v8 = vld [vmem:[#allocation101_spill] sm:$0xff]  ;;  %v2131_v0 = vmul.f32 1.442695, %v1743_v44 }
 0x2d4   : > { %v3508_v30 = vpop.eup %3507  ;;  %3533 = vpow2.f32 %v2165_v48  ;;  %2643 = vmatprep.subr.bf16.mxu1 %v2523_v28  ;;  %v2147_v48 = vmul.f32 1.442695, %v1751_v10  ;;  %v6411_v28 = vld [vmem:[#allocation13_spill] sm:$0xff]  ;;  %v2133_v63 = vmul.f32 1.442695, %v1744_v43  ;;  %v1709_v10 = vsub.f32 %v6414_v8, %v4804_v1  ;;  %v6417_v43 = vld [vmem:[#allocation14_spill] sm:$0xff] }
 0x2d5   : > { %v3510_v17 = vpop.eup %3509  ;;  %3535 = vpow2.f32 %v2141_v14  ;;  %2644 = vmatpush1.bf16.msra.mxu1 %v2522_v53  ;;  %v2518_v11 = vpack.c.bf16 %v3508_v30, %v3506_v49  ;;  %v2441_v33 = vpack.c.bf16 %v6411_v28, %v6410_v41  ;;  %v6412_v53 = vld [vmem:[#allocation95_spill] sm:$0xff]  ;;  %v6415_v30 = vld [vmem:[#allocation105_spill] sm:$0xff] }
 0x2d6   : > { %v3512_v38 = vpop.eup %3511  ;;  %3537 = vpow2.f32 %v2155_v50  ;;  %2645 = vmatprep.subr.bf16.mxu1 %v2519_v20  ;;  %v1702_v62 = vsub.f32 %v6412_v53, %v4808_v26  ;;  %v2515_v32 = vpack.c.bf16 %v3510_v17, %v3504_v13  ;;  %2703 = vmatpush1.bf16.msra.mxu0 %v2444_v12  ;;  %v6413_v50 = vld [vmem:[#allocation99_spill] sm:$0xff]  ;;  %v1713_v52 = vsub.f32 %v6415_v30, %v4804_v1  ;;  %v6426_v30 = vld [vmem:[#allocation4_spill] sm:$0xff] }
 0x2d7   : > { %v3514_v47 = vpop.eup %3513  ;;  %3539 = vpow2.f32 %v2163_v60  ;;  %v1706_v54 = vsub.f32 %v6413_v50, %v4808_v26  ;;  %v2087_v60 = vmul.f32 1.442695, %v1721_v6  ;;  %2704 = vmatprep.subr.bf16.mxu0 %v2441_v33  ;;  %v2123_v20 = vmul.f32 1.442695, %v1739_v4  ;;  %v6416_v13 = vld [vmem:[#allocation11_spill] sm:$0xff]  ;;  %v6422_v33 = vld [vmem:[#allocation93_spill] sm:$0xff] }
 0x2d8   : > { %v3516_v14 = vpop.eup %3515  ;;  %3541 = vpow2.f32 %v2149_v61  ;;  %v2440_v61 = vpack.c.bf16 %v6417_v43, %v6416_v13  ;;  %v2437_v6 = vpack.c.bf16 %v6419_v19, %v6418_v24  ;;  %v1694_v12 = vsub.f32 %v6420_v2, %v4808_v26  ;;  %v6427_v13 = vld [vmem:[#allocation5_spill] sm:$0xff]  ;;  %v6428_v43 = vld [vmem:[#allocation79_spill] sm:$0xff] }
 0x2d9   : > { %v3518_v56 = vpop.eup %3517  ;;  %3543 = vpow2.f32 %v2125_v31  ;;  %2646 = vmatpush1.bf16.msra.mxu1 %v2518_v11  ;;  %v2514_v18 = vpack.c.bf16 %v3516_v14, %v3514_v47  ;;  %v2049_v11 = vmul.f32 1.442695, %v1702_v62  ;;  %v1701_v44 = vsub.f32 %v6422_v33, %v4804_v1  ;;  %v6423_v14 = vld [vmem:[#allocation97_spill] sm:$0xff]  ;;  %v6425_v62 = vld [vmem:[#allocation10_spill] sm:$0xff] }
 0x2da   : > { %v3520_v49 = vpop.eup %3519  ;;  %3545 = vpow2.f32 %v2139_v42  ;;  %2647 = vmatprep.subr.bf16.mxu1 %v2515_v32  ;;  %v2511_v41 = vpack.c.bf16 %v3518_v56, %v3512_v38  ;;  %2705 = vmatpush1.bf16.msra.mxu0 %v2440_v61  ;;  %v6421_v42 = vld [vmem:[#allocation91_spill] sm:$0xff]  ;;  %v1705_v53 = vsub.f32 %v6423_v14, %v4804_v1  ;;  %v2071_v32 = vmul.f32 1.442695, %v1713_v52 }
 0x2db   : > { %v3522_v17 = vpop.eup %3521  ;;  %3547 = vpow2.f32 %v2147_v48  ;;  %v1698_v28 = vsub.f32 %v6421_v42, %v4808_v26  ;;  %v2063_v48 = vmul.f32 1.442695, %v1709_v10  ;;  %2706 = vmatprep.subr.bf16.mxu0 %v2437_v6  ;;  %v6424_v38 = vld [vmem:[#allocation7_spill] sm:$0xff]  ;;  %v2057_v50 = vmul.f32 1.442695, %v1706_v54  ;;  %v6430_v6 = vld [vmem:[#allocation85_spill] sm:$0xff] }
 0x2dc   : > { %v3524_v31 = vpop.eup %3523  ;;  %3549 = vpow2.f32 %v2133_v63  ;;  %v2436_v63 = vpack.c.bf16 %v6425_v62, %v6424_v38  ;;  %v2433_v10 = vpack.c.bf16 %v6427_v13, %v6426_v30  ;;  %v1686_v61 = vsub.f32 %v6428_v43, %v4808_v26  ;;  %v6434_v14 = vld [vmem:[#allocation71_spill] sm:$0xff]  ;;  %v6436_v30 = vld [vmem:[#allocation77_spill] sm:$0xff] }
 0x2dd   : > { %v3526_v4 = vpop.eup %3525  ;;  %3551 = vpow2.f32 %v2087_v60  ;;  %2648 = vmatpush1.bf16.msra.mxu1 %v2514_v18  ;;  %v2510_v8 = vpack.c.bf16 %v3524_v31, %v3522_v17  ;;  %v2033_v18 = vmul.f32 1.442695, %v1694_v12  ;;  %v1693_v54 = vsub.f32 %v6430_v6, %v4804_v1  ;;  %v6431_v31 = vld [vmem:[#allocation89_spill] sm:$0xff]  ;;  %v6433_v12 = vld [vmem:[#allocation6_spill] sm:$0xff] }
 0x2de   : > { %v3528_v47 = vpop.eup %3527  ;;  %3553 = vpow2.f32 %v2123_v20  ;;  %2649 = vmatprep.subr.bf16.mxu1 %v2511_v41  ;;  %v2507_v24 = vpack.c.bf16 %v3526_v4, %v3520_v49  ;;  %2707 = vmatpush1.bf16.msra.mxu0 %v2436_v63  ;;  %v6429_v20 = vld [vmem:[#allocation83_spill] sm:$0xff]  ;;  %v1697_v2 = vsub.f32 %v6431_v31, %v4804_v1  ;;  %v2055_v41 = vmul.f32 1.442695, %v1705_v53  ;;  %v6432_v49 = vld [vmem:[#allocation146_spill] sm:$0xff]  ;;  %v6438_v6 = vld [vmem:[#allocation69_spill] sm:$0xff] }
 0x2df   : > { %v3530_v56 = vpop.eup %3529  ;;  %3555 = vpow2.f32 %v2131_v0  ;;  %v1690_v19 = vsub.f32 %v6429_v20, %v4808_v26  ;;  %v2047_v0 = vmul.f32 1.442695, %v1701_v44  ;;  %2708 = vmatprep.subr.bf16.mxu0 %v2433_v10  ;;  %v2041_v42 = vmul.f32 1.442695, %v1698_v28 }
 0x2e0   : > { %v3532_v60 = vpop.eup %3531  ;;  %3557 = vpow2.f32 %v2049_v11  ;;  %v2432_v11 = vpack.c.bf16 %v6433_v12, %v6432_v49  ;;  %v2493_v44 = vpack.c.bf16 %v5272_v57, %v5260_v29  ;;  %v1678_v38 = vsub.f32 %v6434_v14, %v4808_v26  ;;  %v6437_v57 = vld [vmem:[#allocation81_spill] sm:$0xff] }
 0x2e1   : > { %v3534_v52 = vpop.eup %3533  ;;  %3559 = vpow2.f32 %v2063_v48  ;;  %2650 = vmatpush1.bf16.msra.mxu1 %v2510_v8  ;;  %v2506_v33 = vpack.c.bf16 %v3532_v60, %v3530_v56  ;;  %v2017_v62 = vmul.f32 1.442695, %v1686_v61  ;;  %v1685_v28 = vsub.f32 %v6436_v30, %v4804_v1 }
 0x2e2   : > { %v3536_v17 = vpop.eup %3535  ;;  %3561 = vpow2.f32 %v2071_v32  ;;  %2651 = vmatprep.subr.bf16.mxu1 %v2507_v24  ;;  %v2503_v63 = vpack.c.bf16 %v3534_v52, %v3528_v47  ;;  %2709 = vmatpush1.bf16.msra.mxu0 %v2432_v11  ;;  %v6435_v32 = vld [vmem:[#allocation75_spill] sm:$0xff]  ;;  %v1689_v56 = vsub.f32 %v6437_v57, %v4804_v1  ;;  %v2039_v13 = vmul.f32 1.442695, %v1697_v2 }
 0x2e3   : > { %v3538_v4 = vpop.eup %3537  ;;  %3563 = vpow2.f32 %v2057_v50  ;;  %v1682_v8 = vsub.f32 %v6435_v32, %v4808_v26  ;;  %v2031_v50 = vmul.f32 1.442695, %v1693_v54  ;;  %2710 = vmatprep.subr.bf16.mxu0 %v2493_v44  ;;  %v2492_v47 = vpack.c.bf16 %v5266_v59, %v5255_v9  ;;  %v6439_v59 = vld [vmem:[#allocation73_spill] sm:$0xff] }
 0x2e4   : > { %v3540_v48 = vpop.eup %3539  ;;  %3565 = vpow2.f32 %v2033_v18  ;;  %v2025_v60 = vmul.f32 1.442695, %v1690_v19  ;;  %v2489_v61 = vpack.c.bf16 %v5248_v5, %v5238_v3  ;;  %v2001_v24 = vmul.f32 1.442695, %v1678_v38 }
 0x2e5   : > { %v3542_v53 = vpop.eup %3541  ;;  %3567 = vpow2.f32 %v2047_v0  ;;  %2652 = vmatpush1.bf16.msra.mxu1 %v2506_v33  ;;  %v2502_v43 = vpack.c.bf16 %v3540_v48, %v3538_v4  ;;  %v1677_v54 = vsub.f32 %v6438_v6, %v4804_v1  ;;  %v2015_v0 = vmul.f32 1.442695, %v1685_v28 }
 0x2e6   : > { %v3544_v29 = vpop.eup %3543  ;;  %3569 = vpow2.f32 %v2055_v41  ;;  %2653 = vmatprep.subr.bf16.mxu1 %v2503_v63  ;;  %v2499_v52 = vpack.c.bf16 %v3542_v53, %v3536_v17  ;;  %2711 = vmatpush2.bf16.msra.mxu0 %v2492_v47  ;;  %v1681_v19 = vsub.f32 %v6439_v59, %v4804_v1  ;;  %v2023_v31 = vmul.f32 1.442695, %v1689_v56 }
 0x2e7   : > { %v3546_v10 = vpop.eup %3545  ;;  %3571 = vpow2.f32 %v2041_v42  ;;  %2712 = vmatprep.subr.bf16.mxu0 %v2489_v61  ;;  %v2488_v3 = vpack.c.bf16 %v5242_v35, %v5232_v15  ;;  %v2009_v17 = vmul.f32 1.442695, %v1682_v8  ;;  %v2485_v41 = vpack.c.bf16 %v5223_v27, %v5219_v37 }
 0x2e8   : > { %v3548_v18 = vpop.eup %3547  ;;  %3573 = vpow2.f32 %v2017_v62  ;;  %v1999_v4 = vmul.f32 1.442695, %v1677_v54  ;;  %v2007_v33 = vmul.f32 1.442695, %v1681_v19  ;;  %v2481_v37 = vpack.c.bf16 %v5210_v40, %v5206_v55  ;;  %v6440_v55 = vld [vmem:[#allocation236_spill] sm:$0xff] }
 0x2e9   : > { %v3550_v20 = vpop.eup %3549  ;;  %3575 = vpow2.f32 %v2031_v50  ;;  %2654 = vmatpush1.bf16.msra.mxu1 %v2502_v43  ;;  %v2498_v2 = vpack.c.bf16 %v3548_v18, %v3546_v10  ;;  %v1852_v40 = vsub.f32 %v6440_v55, %v4800_v46  ;;  %v6446_v19 = vld [vmem:[#allocation228_spill] sm:$0xff] }
 0x2ea   : > { %v3552_v9 = vpop.eup %3551  ;;  %3577 = vpow2.f32 %v2039_v13  ;;  %2655 = vmatprep.subr.bf16.mxu1 %v2499_v52  ;;  %v2495_v12 = vpack.c.bf16 %v3550_v20, %v3544_v29  ;;  %2713 = vmatpush2.bf16.msra.mxu0 %v2488_v3  ;;  %v6441_v29 = vld [vmem:[#allocation240_spill] sm:$0xff]  ;;  %v6442_v13 = vld [vmem:[#allocation242_spill] sm:$0xff] }
 0x2eb   : > { %v3554_v5 = vpop.eup %3553  ;;  %3579 = vpow2.f32 %v2025_v60  ;;  %2714 = vmatprep.subr.bf16.mxu0 %v2485_v41  ;;  %v2484_v15 = vpack.c.bf16 %v3552_v9, %v5214_v23  ;;  %v1856_v57 = vsub.f32 %v6441_v29, %v4800_v46  ;;  %v1859_v47 = vsub.f32 %v6442_v13, %v4796_v45  ;;  %v6443_v60 = vld [vmem:[#allocation244_spill] sm:$0xff]  ;;  %v6455_v29 = vld [vmem:[#allocation218_spill] sm:$0xff] }
 0x2ec   : > { %v3556_v49 = vpop.eup %3555  ;;  %3581 = vpow2.f32 %v2001_v24  ;;  %v1860_v43 = vsub.f32 %v6443_v60, %v4800_v46  ;;  %v6444_v24 = vld [vmem:[#allocation246_spill] sm:$0xff]  ;;  %v2349_v20 = vmul.f32 1.442695, %v1852_v40  ;;  %v6454_v40 = vld [vmem:[#allocation183_spill] sm:$0xff] }
 0x2ed   : > { %v3558_v11 = vpop.eup %3557  ;;  %3583 = vpow2.f32 %v2015_v0  ;;  %2656 = vmatpush1.bf16.msra.mxu1 %v2498_v2  ;;  %v2494_v44 = vpack.c.bf16 %v3556_v49, %v3554_v5  ;;  %v1863_v52 = vsub.f32 %v6444_v24, %v4796_v45  ;;  %v6445_v0 = vld [vmem:[#allocation248_spill] sm:$0xff]  ;;  %v2357_v59 = vmul.f32 1.442695, %v1856_v57  ;;  %v6456_v13 = vld [vmem:[#allocation222_spill] sm:$0xff] }
 0x2ee   : > { %v3560_v42 = vpop.eup %3559  ;;  %3585 = vpow2.f32 %v2023_v31  ;;  %2657 = vmatprep.subr.bf16.mxu1 %v2495_v12  ;;  %2715 = vmatpush2.bf16.msra.mxu0 %v2484_v15  ;;  %v1864_v9 = vsub.f32 %v6445_v0, %v4800_v46  ;;  %v1844_v31 = vsub.f32 %v6446_v19, %v4800_v46  ;;  %v2363_v3 = vmul.f32 1.442695, %v1859_v47  ;;  %v6449_v15 = vld [vmem:[#allocation232_spill] sm:$0xff]  ;;  %v6457_v60 = vld [vmem:[#allocation190_spill] sm:$0xff]  ;;  %v6460_v0 = vld [vmem:[#allocation187_spill] sm:$0xff] }
 0x2ef   : > { %v3562_v35 = vpop.eup %3561  ;;  %3587 = vpow2.f32 %v2009_v17  ;;  %2716 = vmatprep.subr.bf16.mxu0 %v2481_v37  ;;  %v6447_v17 = vld [vmem:[#allocation234_spill] sm:$0xff]  ;;  %v2365_v41 = vmul.f32 1.442695, %v1860_v43  ;;  %v6450_v37 = vld [vmem:[#allocation220_spill] sm:$0xff]  ;;  %v1835_v57 = vsub.f32 %v6455_v29, %v4796_v45  ;;  %v1839_v47 = vsub.f32 %v6456_v13, %v4796_v45  ;;  %v6461_v19 = vld [vmem:[#allocation175_spill] sm:$0xff] }
 0x2f0   : > { %v3564_v27 = vpop.eup %3563  ;;  %3589 = vpow2.f32 %v1999_v4  ;;  %v2480_v38 = vpack.c.bf16 %v3562_v35, %v3560_v42  ;;  %v1851_v2 = vsub.f32 %v6447_v17, %v4796_v45  ;;  %v2371_v42 = vmul.f32 1.442695, %v1863_v52 }
 0x2f1   : > { %v3566_v48 = vpop.eup %3565  ;;  %2658 = vmatpush1.bf16.msra.mxu1 %v2494_v44  ;;  %3591 = vpow2.f32 %v2007_v33  ;;  %v2477_v63 = vpack.c.bf16 %v3564_v27, %v3558_v11  ;;  %v6448_v11 = vld [vmem:[#allocation238_spill] sm:$0xff]  ;;  %v1848_v35 = vsub.f32 %v6449_v15, %v4800_v46  ;;  %v2373_v44 = vmul.f32 1.442695, %v1864_v9 }
 0x2f2   : > { %v3568_v14 = vpop.eup %3567  ;;  %2717 = vmatpush2.bf16.msra.mxu0 %v2480_v38  ;;  %v1855_v4 = vsub.f32 %v6448_v11, %v4796_v45  ;;  %3593 = vpow2.f32 %v2349_v20  ;;  %v1836_v27 = vsub.f32 %v6450_v37, %v4800_v46  ;;  %v1832_v43 = vsub.f32 %v6457_v60, %v4800_v46  ;;  %v6459_v20 = vld [vmem:[#allocation181_spill] sm:$0xff]  ;;  %v6471_v60 = vld [vmem:[#allocation191_spill] sm:$0xff] }
 0x2f3   : > { %v3570_v62 = vpop.eup %3569  ;;  %2718 = vmatprep.subr.bf16.mxu0 %v2477_v63  ;;  %3595 = vpow2.f32 %v2357_v59  ;;  %v2341_v55 = vmul.f32 1.442695, %v1848_v35  ;;  %v2323_v9 = vmul.f32 1.442695, %v1839_v47 }
 0x2f4   : > { %v3572_v53 = vpop.eup %3571  ;;  %v2476_v8 = vpack.c.bf16 %v3570_v62, %v3568_v14  ;;  %3597 = vpow2.f32 %v2363_v3  ;;  %v6451_v14 = vld [vmem:[#allocation226_spill] sm:$0xff]  ;;  %v2347_v62 = vmul.f32 1.442695, %v1851_v2 }
 0x2f5   : > { %v3574_v23 = vpop.eup %3573  ;;  %v2473_v28 = vpack.c.bf16 %v3572_v53, %v3566_v48  ;;  %v2333_v48 = vmul.f32 1.442695, %v1844_v31  ;;  %v1843_v38 = vsub.f32 %v6451_v14, %v4796_v45  ;;  %3599 = vpow2.f32 %v2365_v41  ;;  %v6452_v53 = vld [vmem:[#allocation230_spill] sm:$0xff] }
 0x2f6   : > { %v3576_v32 = vpop.eup %3575  ;;  %2719 = vmatpush2.bf16.msra.mxu0 %v2476_v8  ;;  %3601 = vpow2.f32 %v2371_v42  ;;  %v6453_v8 = vld [vmem:[#allocation224_spill] sm:$0xff]  ;;  %v1824_v31 = vsub.f32 %v6461_v19, %v4800_v46 }
 0x2f7   : > { %v3578_v30 = vpop.eup %3577  ;;  %2720 = vmatprep.subr.bf16.mxu0 %v2473_v28  ;;  %3603 = vpow2.f32 %v2373_v44  ;;  %v1828_v28 = vsub.f32 %v6454_v40, %v4800_v46  ;;  %v6464_v42 = vld [vmem:[#allocation212_spill] sm:$0xff]  ;;  %v6465_v44 = vld [vmem:[#allocation206_spill] sm:$0xff] }
 0x2f8   : > { %v3580_v50 = vpop.eup %3579  ;;  %v2472_v61 = vpack.c.bf16 %v3578_v30, %v3576_v32  ;;  %v2355_v32 = vmul.f32 1.442695, %v1855_v4  ;;  %v1840_v30 = vsub.f32 %v6453_v8, %v4800_v46  ;;  %3605 = vpow2.f32 %v2333_v48 }
 0x2f9   : > { %v3582_v56 = vpop.eup %3581  ;;  %v2469_v6 = vpack.c.bf16 %v3580_v50, %v3574_v23  ;;  %v1847_v23 = vsub.f32 %v6452_v53, %v4796_v45  ;;  %v2317_v50 = vmul.f32 1.442695, %v1836_v27  ;;  %3607 = vpow2.f32 %v2347_v62 }
 0x2fa   : > { %v3584_v10 = vpop.eup %3583  ;;  %2721 = vmatpush2.bf16.msra.mxu0 %v2472_v61  ;;  %3609 = vpow2.f32 %v2355_v32  ;;  %v2325_v61 = vmul.f32 1.442695, %v1840_v30  ;;  %v2301_v52 = vmul.f32 1.442695, %v1828_v28  ;;  %v1816_v37 = vsub.f32 %v6465_v44, %v4800_v46  ;;  %v6478_v44 = vld [vmem:[#allocation188_spill] sm:$0xff] }
 0x2fb   : > { %v3586_v18 = vpop.eup %3585  ;;  %2722 = vmatprep.subr.bf16.mxu0 %v2469_v6  ;;  %3611 = vpow2.f32 %v2341_v55  ;;  %v1827_v6 = vsub.f32 %v6459_v20, %v4796_v45  ;;  %v2293_v27 = vmul.f32 1.442695, %v1824_v31  ;;  %v6466_v48 = vmov 0   ;;  %v6469_v55 = vld [vmem:[#allocation204_spill] sm:$0xff] }
 0x2fc   : > { %v3588_v54 = vpop.eup %3587  ;;  %v2468_v49 = vpack.c.bf16 %v3586_v18, %v3584_v10  ;;  %v2339_v10 = vmul.f32 1.442695, %v1847_v23  ;;  %v6458_v18 = vld [vmem:[#allocation210_spill] sm:$0xff]  ;;  %3613 = vpow2.f32 %v2317_v50  ;;  %v6468_v23 = vld [vmem:[#allocation200_spill] sm:$0xff]  ;;  %v1815_v40 = vsub.f32 %v6469_v55, %v4796_v45 }
 0x2fd   : > { %v3590_v5 = vpop.eup %3589  ;;  %v2465_v33 = vpack.c.bf16 %v3588_v54, %v3582_v56  ;;  %v2331_v56 = vmul.f32 1.442695, %v1843_v38  ;;  %v1820_v24 = vsub.f32 %v6458_v18, %v4800_v46  ;;  %v2315_v54 = vmul.f32 1.442695, %v1835_v57  ;;  %v6467_v38 = vld [vmem:[#allocation194_spill] sm:$0xff] }
 0x2fe   : > { %v3592_v12 = vpop.eup %3591  ;;  %2723 = vmatpush2.bf16.msra.mxu0 %v2468_v49  ;;  %v6463_v49 = vld [vmem:[#allocation208_spill] sm:$0xff]  ;;  %v2299_v11 = vmul.f32 1.442695, %v1827_v6  ;;  %v1804_v62 = vsub.f32 %v6467_v38, %v4800_v46  ;;  %v1811_v32 = vsub.f32 %v6468_v23, %v4796_v45  ;;  %v6470_v57 = vld [vmem:[#allocation198_spill] sm:$0xff]  ;;  %v2277_v13 = vmul.f32 1.442695, %v1816_v37 }
 0x2ff   : > { %2724 = vmatprep.subr.bf16.mxu0 %v2465_v33  ;;  %v2464_v63 = vpack.c.bf16 %v3592_v12, %v3590_v5  ;;  %3615 = vpow2.f32 %v2331_v56  ;;  %v3594_v59 = vpop.eup %3593  ;;  %v6462_v5 = vld [vmem:[#allocation202_spill] sm:$0xff]  ;;  %v2285_v2 = vmul.f32 1.442695, %v1820_v24  ;;  %v1819_v12 = vsub.f32 %v6463_v49, %v4796_v45 }
 0x300   : > { %3617 = vpow2.f32 %v2339_v10  ;;  %v3596_v3 = vpop.eup %3595  ;;  %v1812_v17 = vsub.f32 %v6462_v5, %v4800_v46  ;;  %v1823_v33 = vsub.f32 %v6464_v42, %v4796_v45  ;;  %v1808_v56 = vsub.f32 %v6470_v57, %v4800_v46  ;;  %v6472_v24 = vld [vmem:[#allocation130_spill] sm:$0xff]  ;;  %v6473_v46 = vld [vmem:[#allocation196_spill] sm:$0xff] }
 0x301   : > { %3619 = vpow2.f32 %v2325_v61  ;;  %v3598_v41 = vpop.eup %3597  ;;  %v2283_v8 = vmul.f32 1.442695, %v1819_v12  ;;  %v2551_v47 = vpack.c.bf16 %v3596_v3, %v3594_v59  ;;  %v2253_v61 = vmul.f32 1.442695, %v1804_v62  ;;  %v6474_v59 = vld [vmem:[#allocation126_spill] sm:$0xff]  ;;  %v6475_v5 = vld [vmem:[#allocation184_spill] sm:$0xff] }
 0x302   : > { %2725 = vmatpush2.bf16.msra.mxu0 %v2464_v63  ;;  %3621 = vpow2.f32 %v2301_v52  ;;  %v3600_v4 = vpop.eup %3599  ;;  %v2269_v63 = vmul.f32 1.442695, %v1812_v17  ;;  %v2291_v28 = vmul.f32 1.442695, %v1823_v33  ;;  %v1803_v52 = vsub.f32 %v6472_v24, %v4796_v45  ;;  %v6479_v62 = vld [vmem:[#allocation176_spill] sm:$0xff]  ;;  %v6481_v55 = vld [vmem:[#allocation186_spill] sm:$0xff] }
 0x303   : > { %3623 = vpow2.f32 %v2315_v54  ;;  %v3602_v35 = vpop.eup %3601  ;;  %v2267_v20 = vmul.f32 1.442695, %v1811_v32  ;;  %v1807_v54 = vsub.f32 %v6473_v46, %v4796_v45  ;;  %v1802_v19 = vsub.f32 %v6474_v59, %v4808_v26  ;;  %v6480_v32 = vld [vmem:[#allocation182_spill] sm:$0xff]  ;;  %v6482_v57 = vld [vmem:[#allocation180_spill] sm:$0xff] }
 0x304   : > { %3625 = vpow2.f32 %v2323_v9  ;;  %v3604_v14 = vpop.eup %3603  ;;  %v2554_v50 = vpack.c.bf16 %v3602_v35, %v3598_v41  ;;  %v2261_v31 = vmul.f32 1.442695, %v1808_v56  ;;  %v1790_v17 = vsub.f32 %v6475_v5, %v4808_v26  ;;  %v6484_v24 = vld [vmem:[#allocation174_spill] sm:$0xff]  ;;  %v6486_v59 = vld [vmem:[#allocation172_spill] sm:$0xff] }
 0x305   : > { %2727 = vmatmul.mubr.bf16.vlgmr.msra.gmra.mxu0 %v5230_v16  ;;  %v1831_v16 = vsub.f32 %v6460_v0, %v4796_v45  ;;  %v3606_v53 = vpop.eup %3605  ;;  %v2275_v0 = vmul.f32 1.442695, %v1815_v40  ;;  %v6476_v45 = vld [vmem:[#allocation189_spill] sm:$0xff]  ;;  %v2251_v12 = vmul.f32 1.442695, %v1803_v52  ;;  %v1794_v37 = vsub.f32 %v6478_v44, %v4808_v26  ;;  %v6485_v46 = vld [vmem:[#allocation178_spill] sm:$0xff] }
 0x306   : > { %2736 = vmatprep.mubr.bf16.mxu0 %v5236_v7  ;;  %v2309_v7 = vmul.f32 1.442695, %v1832_v43  ;;  %v3608_v30 = vpop.eup %3607  ;;  %v1798_v43 = vsub.f32 %v6471_v60, %v4808_v26  ;;  %v1797_v49 = vsub.f32 %v6476_v45, %v4804_v1  ;;  %v2259_v33 = vmul.f32 1.442695, %v1807_v54  ;;  %v6483_v60 = vld [vmem:[#allocation168_spill] sm:$0xff]  ;;  %v6488_v45 = vld [vmem:[#allocation166_spill] sm:$0xff] }
 0x307   : > { %v2307_v15 = vmul.f32 1.442695, %v1831_v16  ;;  %v3610_v29 = vpop.eup %3609  ;;  %v1793_v40 = vsub.f32 %v6481_v55, %v4804_v1  ;;  %v1786_v56 = vsub.f32 %v6482_v57, %v4808_v26  ;;  %v1781_v52 = vsub.f32 %v6484_v24, %v4804_v1  ;;  %v6487_v5 = vld [vmem:[#allocation160_spill] sm:$0xff]  ;;  %v6493_v55 = vld [vmem:[#allocation162_spill] sm:$0xff] }
 0x308   : > { %3627 = vpow2.f32 %v2309_v7  ;;  %v3612_v10 = vpop.eup %3611  ;;  %v2550_v16 = vpack.c.bf16 %v3610_v29, %v3608_v30  ;;  %v1785_v54 = vsub.f32 %v6485_v46, %v4804_v1  ;;  %v6490_v44 = vld [vmem:[#allocation164_spill] sm:$0xff]  ;;  %v6496_v24 = vld [vmem:[#allocation150_spill] sm:$0xff] }
 0x309   : > { %3629 = vpow2.f32 %v2285_v2  ;;  %v3614_v18 = vpop.eup %3613  ;;  %v2547_v7 = vpack.c.bf16 %v3612_v10, %v3606_v53  ;;  %v2241_v2 = vmul.f32 1.442695, %v1798_v43  ;;  %v2225_v53 = vmul.f32 1.442695, %v1790_v17  ;;  %v6494_v57 = vld [vmem:[#allocation156_spill] sm:$0xff] }
 0x30a   : > { %3631 = vpow2.f32 %v2299_v11  ;;  %v1774_v43 = vsub.f32 %v6483_v60, %v4808_v26  ;;  %v1766_v17 = vsub.f32 %v6487_v5, %v4808_v26  ;;  %v6495_v60 = vld [vmem:[#allocation143_spill] sm:$0xff]  ;;  %v5497_v5 = vld [vmem:[%s5179_s7 + $0x8] ss:$16 sps:$4 sm:$0xff]  }
 0x30b   : > { %3633 = vpow2.f32 %v2307_v15 }
 0x30c   : > { %3635 = vpow2.f32 %v2293_v27  ;;  %v3616_v6 = vpop.eup %3615  ;;  %v2249_v27 = vmul.f32 1.442695, %v1802_v19  ;;  %v1778_v19 = vsub.f32 %v6486_v59, %v4808_v26 }
 0x30d   : > { %2737 = vmatmul.mubr.bf16.gmra.mxu0 %v5276_v25  ;;  %v2555_v25 = vpack.c.bf16 %v3604_v14, %v3600_v4  ;;  %3637 = vpow2.f32 %v2269_v63  ;;  %v3618_v9 = vpop.eup %3617  ;;  %v6477_v4 = vld [vmem:[#allocation193_spill] sm:$0xff]  ;;  %v1782_v63 = vsub.f32 %v6479_v62, %v4808_v26  ;;  %v6491_v62 = vld [vmem:[#allocation152_spill] sm:$0xff] }
 0x30e   : > { %2914 = vmatprep.mubr.bf16.mxu0 %v6466_v48  ;;  %3639 = vpow2.f32 %v2283_v8  ;;  %v3620_v3 = vpop.eup %3619  ;;  %v1801_v42 = vsub.f32 %v6477_v4, %v4804_v1  ;;  %v2546_v15 = vpack.c.bf16 %v3618_v9, %v3616_v6  ;;  %v1789_v8 = vsub.f32 %v6480_v32, %v4804_v1  ;;  %v6489_v4 = vld [vmem:[#allocation170_spill] sm:$0xff] }
 0x30f   : > { %2659 = vmatprep.subr.bf16.mxu1 %v2555_v25  ;;  %3641 = vpow2.f32 %v2291_v28  ;;  %v3622_v41 = vpop.eup %3621  ;;  %v2543_v14 = vpack.c.bf16 %v3620_v3, %v3614_v18  ;;  %v2239_v25 = vmul.f32 1.442695, %v1797_v49  ;;  %v1773_v49 = vsub.f32 %v6488_v45, %v4804_v1  ;;  %v6492_v32 = vld [vmem:[#allocation158_spill] sm:$0xff] }
 0x310   : > { %2660 = vmatpush2.bf16.msra.mxu1 %v2554_v50  ;;  %3643 = vpow2.f32 %v2277_v13  ;;  %v3624_v11 = vpop.eup %3623  ;;  %v2247_v28 = vmul.f32 1.442695, %v1801_v42  ;;  %v2233_v13 = vmul.f32 1.442695, %v1794_v37  ;;  %v1777_v42 = vsub.f32 %v6489_v4, %v4804_v1 }
 0x311   : > { %2661 = vmatprep.subr.bf16.mxu1 %v2551_v47  ;;  %3645 = vpow2.f32 %v2253_v61  ;;  %v3626_v35 = vpop.eup %3625  ;;  %v2209_v61 = vmul.f32 1.442695, %v1782_v63  ;;  %v1770_v37 = vsub.f32 %v6490_v44, %v4808_v26  ;;  %v1758_v63 = vsub.f32 %v6491_v62, %v4808_v26 }
 0x312   : > { %3647 = vpow2.f32 %v2267_v20  ;;  %v2542_v50 = vpack.c.bf16 %v3626_v35, %v3624_v11  ;;  %v2223_v20 = vmul.f32 1.442695, %v1789_v8  ;;  %v1765_v8 = vsub.f32 %v6492_v32, %v4804_v1 }
 0x313   : > { %3649 = vpow2.f32 %v2275_v0  ;;  %v2231_v0 = vmul.f32 1.442695, %v1793_v40  ;;  %v1769_v40 = vsub.f32 %v6493_v55, %v4804_v1 }
 0x314   : > { %2662 = vmatpush2.bf16.msra.mxu1 %v2550_v16  ;;  %3651 = vpow2.f32 %v2261_v31  ;;  %v2217_v31 = vmul.f32 1.442695, %v1786_v56  ;;  %v1762_v56 = vsub.f32 %v6494_v57, %v4808_v26  ;;  %v6506_v57 = vld [vmem:[#allocation245_spill] sm:$0xff] }
 0x315   : > { %2663 = vmatprep.subr.bf16.mxu1 %v2547_v7  ;;  %v3628_v38 = vpop.eup %3627  ;;  %3653 = vpow2.f32 %v2241_v2  ;;  %v2193_v2 = vmul.f32 1.442695, %v1774_v43  ;;  %v1750_v43 = vsub.f32 %v6495_v60, %v4808_v26 }
 0x316   : > { %v3630_v23 = vpop.eup %3629  ;;  %3655 = vpow2.f32 %v2251_v12  ;;  %v2539_v47 = vpack.c.bf16 %v3628_v38, %v3622_v41  ;;  %v2207_v12 = vmul.f32 1.442695, %v1781_v52  ;;  %v1757_v52 = vsub.f32 %v6496_v24, %v4804_v1 }
 0x317   : > { %v3632_v30 = vpop.eup %3631  ;;  %3657 = vpow2.f32 %v2259_v33  ;;  %v2215_v33 = vmul.f32 1.442695, %v1785_v54  ;;  %v6497_v54 = vld [vmem:[#allocation154_spill] sm:$0xff]  ;;  %v2145_v45 = vmul.f32 1.442695, %v1750_v43 }
 0x318   : > { %2664 = vmatpush2.bf16.msra.mxu1 %v2546_v15  ;;  %v3634_v29 = vpop.eup %3633  ;;  %3659 = vpow2.f32 %v2249_v27  ;;  %v2201_v27 = vmul.f32 1.442695, %v1778_v19  ;;  %v6498_v19 = vld [vmem:[#allocation148_spill] sm:$0xff] }
 0x319   : > { %2665 = vmatprep.subr.bf16.mxu1 %v2543_v14  ;;  %v3636_v10 = vpop.eup %3635  ;;  %3661 = vpow2.f32 %v2225_v53  ;;  %v2538_v16 = vpack.c.bf16 %v3634_v29, %v3632_v30  ;;  %v2177_v53 = vmul.f32 1.442695, %v1766_v17 }
 0x31a   : > { %v3638_v18 = vpop.eup %3637  ;;  %3663 = vpow2.f32 %v2239_v25  ;;  %v2535_v7 = vpack.c.bf16 %v3636_v10, %v3630_v23  ;;  %v2191_v25 = vmul.f32 1.442695, %v1773_v49 }
 0x31b   : > { %v3640_v6 = vpop.eup %3639  ;;  %3665 = vpow2.f32 %v2247_v28  ;;  %v2199_v28 = vmul.f32 1.442695, %v1777_v42  ;;  %v2159_v42 = vmul.f32 1.442695, %v1757_v52  ;;  %v6507_v52 = vld [vmem:[#allocation237_spill] sm:$0xff] }
 0x31c   : > { %2666 = vmatpush2.bf16.msra.mxu1 %v2542_v50  ;;  %v3642_v9 = vpop.eup %3641  ;;  %3667 = vpow2.f32 %v2233_v13  ;;  %v2185_v13 = vmul.f32 1.442695, %v1770_v37 }
 0x31d   : > { %2667 = vmatprep.subr.bf16.mxu1 %v2539_v47  ;;  %v3644_v3 = vpop.eup %3643  ;;  %3669 = vpow2.f32 %v2209_v61  ;;  %v2534_v15 = vpack.c.bf16 %v3642_v9, %v3640_v6  ;;  %v2161_v61 = vmul.f32 1.442695, %v1758_v63  ;;  %v2429_v6 = vld [vmem:[%s5179_s7 + $0x28] sm:$0x11] }
 0x31e   : > { %v3646_v41 = vpop.eup %3645  ;;  %3671 = vpow2.f32 %v2223_v20  ;;  %v2531_v14 = vpack.c.bf16 %v3644_v3, %v3638_v18  ;;  %v2175_v20 = vmul.f32 1.442695, %v1765_v8  ;;  %v5501_v49 = vcombine.high %v2429_v6, %v2429_v6 }
 0x31f   : > { %v3648_v11 = vpop.eup %3647  ;;  %3673 = vpow2.f32 %v2231_v0  ;;  %v1761_v0 = vsub.f32 %v6497_v54, %v4804_v1  ;;  %v6508_v54 = vld [vmem:[#allocation243_spill] sm:$0xff] }
 0x320   : > { %2668 = vmatpush2.bf16.msra.mxu1 %v2538_v16  ;;  %v3650_v35 = vpop.eup %3649  ;;  %3675 = vpow2.f32 %v2217_v31  ;;  %v2183_v16 = vmul.f32 1.442695, %v1769_v40  ;;  %v1754_v31 = vsub.f32 %v6498_v19, %v4808_v26  ;;  %v6505_v40 = vld [vmem:[#allocation137_spill] sm:$0xff] }
 0x321   : > { %2669 = vmatprep.subr.bf16.mxu1 %v2535_v7  ;;  %v3652_v38 = vpop.eup %3651  ;;  %3677 = vpow2.f32 %v2193_v2  ;;  %v2530_v50 = vpack.c.bf16 %v3650_v35, %v3648_v11  ;;  %v2169_v7 = vmul.f32 1.442695, %v1762_v56  ;;  %v6499_v2 = vld [vmem:[#allocation135_spill] sm:$0xff]  ;;  %v6500_v11 = vld [vmem:[#allocation141_spill] sm:$0xff]  ;;  %v2167_v44 = vmul.f32 1.442695, %v1761_v0 }
 0x322   : > { %v3654_v23 = vpop.eup %3653  ;;  %3679 = vpow2.f32 %v2207_v12  ;;  %v2527_v47 = vpack.c.bf16 %v3652_v38, %v3646_v41  ;;  %v1742_v41 = vsub.f32 %v6499_v2, %v4808_v26  ;;  %v1749_v4 = vsub.f32 %v6500_v11, %v4804_v1 }
 0x323   : > { %v3656_v30 = vpop.eup %3655  ;;  %3681 = vpow2.f32 %v2215_v33  ;;  %v2153_v62 = vmul.f32 1.442695, %v1754_v31  ;;  %v1862_v56 = vsub.f32 %v6506_v57, %v4808_v26  ;;  %v1861_v0 = vsub.f32 %v6508_v54, %v4804_v1  ;;  %v6519_v54 = vld [vmem:[#allocation216_spill] sm:$0xff] }
 0x324   : > { %2670 = vmatpush2.bf16.msra.mxu1 %v2534_v15  ;;  %v3658_v29 = vpop.eup %3657  ;;  %3683 = vpow2.f32 %v2201_v27  ;;  %v6501_v15 = vld [vmem:[#allocation145_spill] sm:$0xff]  ;;  %v2129_v8 = vmul.f32 1.442695, %v1742_v41 }
 0x325   : > { %2671 = vmatprep.subr.bf16.mxu1 %v2531_v14  ;;  %v3660_v10 = vpop.eup %3659  ;;  %3685 = vpow2.f32 %v2177_v53  ;;  %v2526_v9 = vpack.c.bf16 %v3658_v29, %v3656_v30  ;;  %v1753_v35 = vsub.f32 %v6501_v15, %v4804_v1  ;;  %v6502_v14 = vld [vmem:[#allocation139_spill] sm:$0xff]  ;;  %v6504_v30 = vld [vmem:[#allocation133_spill] sm:$0xff]  ;;  %v2369_v2 = vmul.f32 1.442695, %v1862_v56 }
 0x326   : > { %v3662_v18 = vpop.eup %3661  ;;  %3687 = vpow2.f32 %v2191_v25  ;;  %v2525_v3 = vpack.c.bf16 %v3660_v10, %v3654_v23  ;;  %v1746_v38 = vsub.f32 %v6502_v14, %v4808_v26  ;;  %v6503_v23 = vld [vmem:[#allocation249_spill] sm:$0xff]  ;;  %v1741_v55 = vsub.f32 %v6504_v30, %v4804_v1  ;;  %v6512_v15 = vld [vmem:[#allocation235_spill] sm:$0xff] }
 0x327   : > { %v3664_v46 = vpop.eup %3663  ;;  %3689 = vpow2.f32 %v2199_v28  ;;  %v1866_v32 = vsub.f32 %v6503_v23, %v4808_v26  ;;  %v1745_v28 = vsub.f32 %v6505_v40, %v4804_v1  ;;  %v6515_v30 = vld [vmem:[#allocation221_spill] sm:$0xff] }
 0x328   : > { %2672 = vmatpush2.bf16.msra.mxu1 %v2530_v50  ;;  %v3666_v59 = vpop.eup %3665  ;;  %3691 = vpow2.f32 %v2185_v13  ;;  %v2143_v50 = vmul.f32 1.442695, %v1749_v4  ;;  %v2151_v13 = vmul.f32 1.442695, %v1753_v35  ;;  %v2137_v60 = vmul.f32 1.442695, %v1746_v38 }
 0x329   : > { %2673 = vmatprep.subr.bf16.mxu1 %v2527_v47  ;;  %v3668_v17 = vpop.eup %3667  ;;  %3693 = vpow2.f32 %v2161_v61  ;;  %v2524_v37 = vpack.c.bf16 %v3666_v59, %v3664_v46  ;;  %v5519_v61 = vcombine.low %v2429_v6, %v2429_v6  ;;  %v2377_v24 = vmul.f32 1.442695, %v1866_v32  ;;  %v6509_v59 = vld [vmem:[#allocation247_spill] sm:$0xff] }
 0x32a   : > { %v3670_v12 = vpop.eup %3669  ;;  %3695 = vpow2.f32 %v2175_v20  ;;  %v2521_v63 = vpack.c.bf16 %v3668_v17, %v3662_v18  ;;  %v1854_v20 = vsub.f32 %v6507_v52, %v4808_v26  ;;  %v1865_v6 = vsub.f32 %v6509_v59, %v4804_v1  ;;  %v6520_v59 = vld [vmem:[#allocation219_spill] sm:$0xff] }
 0x32b   : > { %v3672_v33 = vpop.eup %3671  ;;  %3697 = vpow2.f32 %v2183_v16  ;;  %v2127_v16 = vmul.f32 1.442695, %v1741_v55  ;;  %v2135_v19 = vmul.f32 1.442695, %v1745_v28  ;;  %v1853_v35 = vsub.f32 %v6512_v15, %v4804_v1 }
 0x32c   : > { %2674 = vmatpush2.bf16.msra.mxu1 %v2526_v9  ;;  %v3674_v27 = vpop.eup %3673  ;;  %3699 = vpow2.f32 %v2169_v7  ;;  %v2353_v4 = vmul.f32 1.442695, %v1854_v20  ;;  %v2375_v38 = vmul.f32 1.442695, %v1865_v6  ;;  %v1838_v55 = vsub.f32 %v6515_v30, %v4808_v26 }
 0x32d   : > { %2745 = vmatprep.subr.bf16.mxu1 %v2525_v3  ;;  %v3676_v53 = vpop.eup %3675  ;;  %3701 = vpow2.f32 %v2145_v45  ;;  %v2520_v47 = vpack.c.bf16 %v3674_v27, %v3672_v33  ;;  %v6510_v3 = vld [vmem:[#allocation241_spill] sm:$0xff]  ;;  %v6513_v27 = vld [vmem:[#allocation239_spill] sm:$0xff]  ;;  %v2351_v57 = vmul.f32 1.442695, %v1853_v35  ;;  %v1837_v6 = vsub.f32 %v6520_v59, %v4804_v1 }
 0x32e   : > { %v3678_v25 = vpop.eup %3677  ;;  %3703 = vpow2.f32 %v2159_v42  ;;  %v2517_v43 = vpack.c.bf16 %v3676_v53, %v3670_v12  ;;  %v1858_v17 = vsub.f32 %v6510_v3, %v4808_v26  ;;  %v6511_v12 = vld [vmem:[#allocation229_spill] sm:$0xff]  ;;  %v1857_v14 = vsub.f32 %v6513_v27, %v4804_v1 }
 0x32f   : > { %2676 = vmatmul.mubr.bf16.vlgmr.msra.gmra.mxu1 %v5497_v5  ;;  %v3680_v29 = vpop.eup %3679  ;;  %3705 = vpow2.f32 %v2167_v44  ;;  %v1846_v11 = vsub.f32 %v6511_v12, %v4808_v26  ;;  %v3793_v42 = vld [vmem:[%s5179_s7 + $0xc] ss:$16 sps:$4 sm:$0xff]   ;;  %v2367_v44 = vmul.f32 1.442695, %v1861_v0  ;;  %v1830_v0 = vsub.f32 %v6519_v54, %v4808_v26 }
 0x330   : > { %2746 = vmatpush1.bf16.msra.mxu1 %v2524_v37  ;;  %2685 = vmatprep.mubr.bf16.mxu1 %v5501_v49  ;;  %v3682_v10 = vpop.eup %3681  ;;  %3707 = vpow2.f32 %v2153_v62  ;;  %v6514_v53 = vld [vmem:[#allocation233_spill] sm:$0xff]  ;;  %v2361_v32 = vmul.f32 1.442695, %v1858_v17 }
 0x331   : > { %2747 = vmatprep.subr.bf16.mxu1 %v2521_v63  ;;  %v3684_v18 = vpop.eup %3683  ;;  %3709 = vpow2.f32 %v2129_v8  ;;  %v2516_v31 = vpack.c.bf16 %v3682_v10, %v3680_v29  ;;  %v1850_v23 = vsub.f32 %v6514_v53, %v4808_v26  ;;  %v2337_v40 = vmul.f32 1.442695, %v1846_v11 }
 0x332   : > { %v3686_v46 = vpop.eup %3685  ;;  %3711 = vpow2.f32 %v2143_v50  ;;  %v2513_v41 = vpack.c.bf16 %v3684_v18, %v3678_v25  ;;  %v6516_v50 = vld [vmem:[#allocation227_spill] sm:$0xff]  ;;  %v2359_v10 = vmul.f32 1.442695, %v1857_v14  ;;  %v6518_v18 = vld [vmem:[#allocation225_spill] sm:$0xff]  ;;  %v2305_v35 = vmul.f32 1.442695, %v1830_v0 }
 0x333   : > { %v3688_v9 = vpop.eup %3687  ;;  %3713 = vpow2.f32 %v2151_v13  ;;  %v1845_v29 = vsub.f32 %v6516_v50, %v4804_v1  ;;  %v6517_v13 = vld [vmem:[#allocation231_spill] sm:$0xff]  ;;  %v2345_v52 = vmul.f32 1.442695, %v1850_v23  ;;  %v2319_v14 = vmul.f32 1.442695, %v1837_v6 }
 0x334   : > { %2748 = vmatpush1.bf16.msra.mxu1 %v2520_v47  ;;  %v3690_v7 = vpop.eup %3689  ;;  %3715 = vpow2.f32 %v2137_v60  ;;  %v1849_v47 = vsub.f32 %v6517_v13, %v4804_v1 }
 0x335   : > { %2749 = vmatprep.subr.bf16.mxu1 %v2517_v43  ;;  %v3692_v45 = vpop.eup %3691  ;;  %3717 = vpow2.f32 %v2377_v24  ;;  %v2512_v62 = vpack.c.bf16 %v3690_v7, %v3688_v9  ;;  %v1842_v24 = vsub.f32 %v6518_v18, %v4808_v26  ;;  %v6521_v7 = vld [vmem:[#allocation223_spill] sm:$0xff] }
 0x336   : > { %v3694_v33 = vpop.eup %3693  ;;  %3719 = vpow2.f32 %v2127_v16  ;;  %v2509_v8 = vpack.c.bf16 %v3692_v45, %v3686_v46  ;;  %v2321_v16 = vmul.f32 1.442695, %v1838_v55  ;;  %v1841_v3 = vsub.f32 %v6521_v7, %v4804_v1  ;;  %v6522_v45 = vld [vmem:[#allocation192_spill] sm:$0xff] }
 0x337   : > { %2686 = vmatmul.mubr.bf16.gmra.mxu1 %v5519_v61  ;;  %v3696_v37 = vpop.eup %3695  ;;  %3721 = vpow2.f32 %v2135_v19  ;;  %v2335_v19 = vmul.f32 1.442695, %v1845_v29  ;;  %v2343_v17 = vmul.f32 1.442695, %v1849_v47  ;;  %v1834_v12 = vsub.f32 %v6522_v45, %v4808_v26 }
 0x338   : > { %2750 = vmatpush1.bf16.msra.mxu1 %v2516_v31  ;;  %2777 = vmatprep.mubr.bf16.mxu1 %v3793_v42  ;;  %v3698_v63 = vpop.eup %3697  ;;  %3723 = vpow2.f32 %v2369_v2  ;;  %v2329_v11 = vmul.f32 1.442695, %v1842_v24  ;;  %v2327_v53 = vmul.f32 1.442695, %v1841_v3 }
 0x339   : > { %2751 = vmatprep.subr.bf16.mxu1 %v2513_v41  ;;  %v3700_v25 = vpop.eup %3699  ;;  %3725 = vpow2.f32 %v2353_v4  ;;  %v2508_v60 = vpack.c.bf16 %v3698_v63, %v3696_v37  ;;  %v6524_v37 = vld [vmem:[#allocation215_spill] sm:$0xff]  ;;  %v2313_v30 = vmul.f32 1.442695, %v1834_v12 }
 0x33a   : > { %v3702_v28 = vpop.eup %3701  ;;  %3727 = vpow2.f32 %v2367_v44  ;;  %v2505_v20 = vpack.c.bf16 %v3700_v25, %v3694_v33  ;;  %v6523_v33 = vld [vmem:[#allocation211_spill] sm:$0xff]  ;;  %v1829_v27 = vsub.f32 %v6524_v37, %v4804_v1 }
 0x33b   : > { %v3704_v56 = vpop.eup %3703  ;;  %3729 = vpow2.f32 %v2375_v38  ;;  %v1822_v15 = vsub.f32 %v6523_v33, %v4808_v26 }
 0x33c   : > { %2752 = vmatpush1.bf16.msra.mxu1 %v2512_v62  ;;  %v3706_v43 = vpop.eup %3705  ;;  %3731 = vpow2.f32 %v2361_v32  ;;  %v6525_v62 = vld [vmem:[#allocation217_spill] sm:$0xff]  ;;  %v2303_v47 = vmul.f32 1.442695, %v1829_v27  ;;  %v6535_v27 = vld [vmem:[#allocation131_spill] sm:$0xff] }
 0x33d   : > { %2753 = vmatprep.subr.bf16.mxu1 %v2509_v8  ;;  %v3708_v46 = vpop.eup %3707  ;;  %3733 = vpow2.f32 %v2337_v40  ;;  %v2504_v2 = vpack.c.bf16 %v3706_v43, %v3704_v56  ;;  %v1833_v63 = vsub.f32 %v6525_v62, %v4804_v1  ;;  %v6526_v8 = vld [vmem:[#allocation214_spill] sm:$0xff]  ;;  %v2289_v29 = vmul.f32 1.442695, %v1822_v15  ;;  %v6528_v56 = vld [vmem:[#allocation209_spill] sm:$0xff] }
 0x33e   : > { %v3710_v9 = vpop.eup %3709  ;;  %3735 = vpow2.f32 %v2351_v57  ;;  %v2501_v4 = vpack.c.bf16 %v3708_v46, %v3702_v28  ;;  %v1826_v25 = vsub.f32 %v6526_v8, %v4808_v26  ;;  %v6527_v28 = vld [vmem:[#allocation203_spill] sm:$0xff]  ;;  %v1821_v13 = vsub.f32 %v6528_v56, %v4804_v1 }
 0x33f   : > { %v3712_v31 = vpop.eup %3711  ;;  %3737 = vpow2.f32 %v2359_v10  ;;  %v1814_v50 = vsub.f32 %v6527_v28, %v4808_v26  ;;  %v2311_v18 = vmul.f32 1.442695, %v1833_v63  ;;  %v6536_v63 = vld [vmem:[#allocation197_spill] sm:$0xff] }
 0x340   : > { %2754 = vmatpush1.bf16.msra.mxu1 %v2508_v60  ;;  %v3714_v41 = vpop.eup %3713  ;;  %3739 = vpow2.f32 %v2345_v52  ;;  %v6529_v60 = vld [vmem:[#allocation213_spill] sm:$0xff]  ;;  %v2297_v54 = vmul.f32 1.442695, %v1826_v25  ;;  %v2287_v3 = vmul.f32 1.442695, %v1821_v13 }
 0x341   : > { %2755 = vmatprep.subr.bf16.mxu1 %v2505_v20  ;;  %v3716_v42 = vpop.eup %3715  ;;  %3741 = vpow2.f32 %v2321_v16  ;;  %v2500_v23 = vpack.c.bf16 %v3714_v41, %v3712_v31  ;;  %v1825_v43 = vsub.f32 %v6529_v60, %v4804_v1  ;;  %v6530_v20 = vld [vmem:[#allocation207_spill] sm:$0xff]  ;;  %v2273_v6 = vmul.f32 1.442695, %v1814_v50  ;;  %v6532_v31 = vld [vmem:[#allocation201_spill] sm:$0xff] }
 0x342   : > { %v3718_v44 = vpop.eup %3717  ;;  %3743 = vpow2.f32 %v2335_v19  ;;  %v2497_v55 = vpack.c.bf16 %v3716_v42, %v3710_v9  ;;  %v1818_v46 = vsub.f32 %v6530_v20, %v4808_v26  ;;  %v6531_v9 = vld [vmem:[#allocation195_spill] sm:$0xff]  ;;  %v1813_v7 = vsub.f32 %v6532_v31, %v4804_v1 }
 0x343   : > { %v3720_v38 = vpop.eup %3719  ;;  %3745 = vpow2.f32 %v2343_v17  ;;  %v1806_v59 = vsub.f32 %v6531_v9, %v4808_v26  ;;  %v2295_v45 = vmul.f32 1.442695, %v1825_v43 }
 0x344   : > { %2756 = vmatpush1.bf16.msra.mxu1 %v2504_v2  ;;  %v3722_v32 = vpop.eup %3721  ;;  %3747 = vpow2.f32 %v2329_v11  ;;  %v6533_v2 = vld [vmem:[#allocation205_spill] sm:$0xff]  ;;  %v2281_v33 = vmul.f32 1.442695, %v1818_v46 }
 0x345   : > { %2757 = vmatprep.subr.bf16.mxu1 %v2501_v4  ;;  %v3724_v40 = vpop.eup %3723  ;;  %3749 = vpow2.f32 %v2305_v35  ;;  %v2496_v24 = vpack.c.bf16 %v3722_v32, %v3720_v38  ;;  %v1817_v41 = vsub.f32 %v6533_v2, %v4804_v1  ;;  %v6534_v4 = vld [vmem:[#allocation199_spill] sm:$0xff]  ;;  %v2271_v38 = vmul.f32 1.442695, %v1813_v7 }
 0x346   : > { %v3726_v57 = vpop.eup %3725  ;;  %3751 = vpow2.f32 %v2319_v14  ;;  %v2557_v0 = vpack.c.bf16 %v3718_v44, %v3724_v40  ;;  %v1810_v42 = vsub.f32 %v6534_v4, %v4808_v26  ;;  %v2257_v44 = vmul.f32 1.442695, %v1806_v59 }
 0x347   : > { %v3728_v10 = vpop.eup %3727  ;;  %3753 = vpow2.f32 %v2327_v53  ;;  %v1805_v14 = vsub.f32 %v6535_v27, %v4804_v1  ;;  %v1809_v53 = vsub.f32 %v6536_v63, %v4804_v1 }
 0x348   : > { %2758 = vmatpush1.bf16.msra.mxu1 %v2500_v23  ;;  %v3730_v52 = vpop.eup %3729  ;;  %3755 = vpow2.f32 %v2313_v30  ;;  %v2279_v23 = vmul.f32 1.442695, %v1817_v41  ;;  %v2265_v8 = vmul.f32 1.442695, %v1810_v42 }
 0x349   : > { %2759 = vmatprep.subr.bf16.mxu1 %v2497_v55  ;;  %v3732_v16 = vpop.eup %3731  ;;  %3757 = vpow2.f32 %v2289_v29  ;;  %v2556_v12 = vpack.c.bf16 %v3730_v52, %v3728_v10  ;;  %v2255_v40 = vmul.f32 1.442695, %v1805_v14  ;;  %v2263_v50 = vmul.f32 1.442695, %v1809_v53 }
 0x34a   : > { %v3734_v19 = vpop.eup %3733  ;;  %3759 = vpow2.f32 %v2303_v47  ;;  %v2553_v15 = vpack.c.bf16 %v3732_v16, %v3726_v57 }
 0x34b   : > { %v3736_v17 = vpop.eup %3735  ;;  %3761 = vpow2.f32 %v2311_v18 }
 0x34c   : > { %2760 = vmatpush1.bf16.msra.mxu1 %v2496_v24  ;;  %v3738_v11 = vpop.eup %3737  ;;  %3763 = vpow2.f32 %v2297_v54 }
 0x34d   : > { %2761 = vmatprep.subr.bf16.mxu1 %v2557_v0  ;;  %v3740_v35 = vpop.eup %3739  ;;  %3765 = vpow2.f32 %v2273_v6  ;;  %v2552_v26 = vpack.c.bf16 %v3738_v11, %v3736_v17 }
 0x34e   : > { %v3742_v37 = vpop.eup %3741  ;;  %3767 = vpow2.f32 %v2287_v3  ;;  %v2549_v25 = vpack.c.bf16 %v3740_v35, %v3734_v19 }
 0x34f   : > { %v3744_v62 = vpop.eup %3743  ;;  %3769 = vpow2.f32 %v2295_v45 }
 0x350   : > { %2762 = vmatpush2.bf16.msra.mxu1 %v2556_v12  ;;  %v3746_v32 = vpop.eup %3745  ;;  %3771 = vpow2.f32 %v2281_v33 }
 0x351   : > { %2763 = vmatprep.subr.bf16.mxu1 %v2553_v15  ;;  %v3748_v30 = vpop.eup %3747  ;;  %3773 = vpow2.f32 %v2257_v44  ;;  %v2548_v29 = vpack.c.bf16 %v3746_v32, %v3744_v62 }
 0x352   : > { %v3750_v55 = vpop.eup %3749  ;;  %3775 = vpow2.f32 %v2271_v38  ;;  %v2545_v1 = vpack.c.bf16 %v3748_v30, %v3742_v37 }
 0x353   : > { %v3752_v28 = vpop.eup %3751  ;;  %3777 = vpow2.f32 %v2279_v23 }
 0x354   : > { %2764 = vmatpush2.bf16.msra.mxu1 %v2552_v26  ;;  %v3754_v57 = vpop.eup %3753  ;;  %3779 = vpow2.f32 %v2265_v8 }
 0x355   : > { %2765 = vmatprep.subr.bf16.mxu1 %v2549_v25  ;;  %v3756_v56 = vpop.eup %3755  ;;  %3781 = vpow2.f32 %v2255_v40  ;;  %v2544_v10 = vpack.c.bf16 %v3754_v57, %v3752_v28 }
 0x356   : > { %v3758_v13 = vpop.eup %3757  ;;  %3783 = vpow2.f32 %v2263_v50  ;;  %v2541_v43 = vpack.c.bf16 %v3756_v56, %v3750_v55  ;;  %v2387_v55 = vld [vmem:[#allocation3 + $0x28] sm:$0x1] }
 0x357   : > { %v3760_v47 = vpop.eup %3759 }
 0x358   : > { %2766 = vmatpush2.bf16.msra.mxu1 %v2548_v29  ;;  %v3762_v60 = vpop.eup %3761  ;;  %v2388_v29 = vld [vmem:[#allocation3 + $0x48] sm:$0x1] }
 0x359   : > { %2767 = vmatprep.subr.bf16.mxu1 %v2545_v1  ;;  %v3764_v18 = vpop.eup %3763  ;;  %v2540_v20 = vpack.c.bf16 %v3762_v60, %v3760_v47  ;;  %v2420_v1 = vmul.f32 %v5108_v51, %v2387_v55 }
 0x35a   : > { %v3766_v24 = vpop.eup %3765  ;;  %v2537_v54 = vpack.c.bf16 %v3764_v18, %v3758_v13 }
 0x35b   : > { %v3768_v52 = vpop.eup %3767 }
 0x35c   : > { %2768 = vmatpush2.bf16.msra.mxu1 %v2544_v10  ;;  %v3770_v46 = vpop.eup %3769  ;;  %v2421_v10 = vmul.f32 %v5113_v58, %v2388_v29 }
 0x35d   : > { %2769 = vmatprep.subr.bf16.mxu1 %v2541_v43  ;;  %v3772_v0 = vpop.eup %3771  ;;  %v2536_v59 = vpack.c.bf16 %v3770_v46, %v3768_v52 }
 0x35e   : > { %v3774_v16 = vpop.eup %3773  ;;  %v2533_v19 = vpack.c.bf16 %v3772_v0, %v3766_v24 }
 0x35f   : > { %v3776_v9 = vpop.eup %3775 }
 0x360   : > { %2770 = vmatpush2.bf16.msra.mxu1 %v2540_v20  ;;  %v3778_v6 = vpop.eup %3777 }
 0x361   : > { %2771 = vmatprep.subr.bf16.mxu1 %v2537_v54  ;;  %v3780_v31 = vpop.eup %3779  ;;  %v2532_v3 = vpack.c.bf16 %v3778_v6, %v3776_v9  ;;  %v2868_v6 = vld [vmem:[%s5633_s3] sm:$0xf] }
 0x362   : > { %v3782_v7 = vpop.eup %3781  ;;  %v2529_v2 = vpack.c.bf16 %v3780_v31, %v3774_v16 }
 0x363   : > { %v3784_v17 = vpop.eup %3783 }
 0x364   : > { %2772 = vmatpush2.bf16.msra.mxu1 %v2536_v59  ;;  %v2528_v41 = vpack.c.bf16 %v3784_v17, %v3782_v7 }
 0x365   : > { %2773 = vmatprep.subr.bf16.mxu1 %v2533_v19 }
 0x368   : > { %2774 = vmatpush2.bf16.msra.mxu1 %v2532_v3 }
 0x369   : > { %2775 = vmatprep.subr.bf16.mxu1 %v2529_v2 }
 0x36c   : > { %2776 = vmatpush2.bf16.msra.mxu1 %v2528_v41 }
 0x36f   : > { %2778 = vmatmul.mubr.bf16.vlgmr.msra.gmra.mxu1 %v5497_v5 }
 0x370   : > { %2787 = vmatprep.mubr.bf16.mxu1 %v5501_v49 }
 0x377   : > { %2788 = vmatmul.mubr.bf16.gmra.mxu1 %v5519_v61 }
 0x378   : > { %2955 = vmatprep.mubr.bf16.mxu1 %v6466_v48  ;;  %v2873_v48 = vld [vmem:[%s5634_s4] sm:$0xff] }
 0x379   : > { %2876 = vperm.xlu0 %3248, %v2873_v48  }
 0x385   : > { %v2626_v45 = vpop.f32.mrf.mxu0 }
 0x387   : > { %v2628_v12 = vpop.f32.mrf.mxu0 }
 0x389   : > { %v2630_v11 = vpop.f32.mrf.mxu0 }
 0x38b   : > { %v2632_v4 = vpop.f32.mrf.mxu0 }
 0x38d   : > { %v2636_v42 = vpop.f32.mrf.mxu0 }
 0x38f   : > { %v2638_v33 = vpop.f32.mrf.mxu0 }
 0x391   : > { %v2640_v15 = vpop.f32.mrf.mxu0 }
 0x392   : > { %v2390_v15 = vld [vmem:[#allocation3 + $0x40] sm:$0x1] }
 0x393   : > { %v2641_v35 = vpop.f32.mrf.mxu0 }
 0x3c5   : > { %v2728_v44 = vpop.f32.mrf.mxu0 }
 0x3c7   : > { %v2730_v37 = vpop.f32.mrf.mxu0 }
 0x3c9   : > { %v2732_v27 = vpop.f32.mrf.mxu0 }
 0x3cb   : > { %v2734_v14 = vpop.f32.mrf.mxu0 }
 0x3cd   : > { %v5587_v38 = vpop.f32.mrf.mxu0 }
 0x3cf   : > { %v5589_v5 = vpop.f32.mrf.mxu0 }
 0x3d1   : > { %v2742_v49 = vpop.f32.mrf.mxu0 }
 0x3d2   : > { %v6537_v49 = vld [vmem:[#allocation19_spill] sm:$0xff] }
 0x3d3   : > { %v2743_v61 = vpop.f32.mrf.mxu0 }
 0x3ef   : > { %v2677_v62 = vpop.f32.mrf.mxu1 }
 0x3f0   : > { %v2678_v63 = vadd.f32 %v2677_v62, %v2626_v45 }
 0x3f1   : > { %v2679_v53 = vpop.f32.mrf.mxu1 }
 0x3f2   : > { %v2796_v23 = vadd.f32 %v2678_v63, %v5132_v22  ;;  %v2680_v26 = vadd.f32 %v2679_v53, %v2628_v12 }
 0x3f3   : > { %v2681_v32 = vpop.f32.mrf.mxu1 }
 0x3f4   : > { %v2797_v8 = vadd.f32 %v2680_v26, %v5135_v39  ;;  %v2682_v25 = vadd.f32 %v2681_v32, %v2630_v11  ;;  %v2389_v11 = vld [vmem:[#allocation3 + $0x10] sm:$0x1] }
 0x3f5   : > { %v2683_v30 = vpop.f32.mrf.mxu1  ;;  %v2422_v61 = vmul.f32 %v6537_v49, %v2389_v11 }
 0x3f6   : > { %v2800_v40 = vadd.f32 %v2682_v25, %v5132_v22  ;;  %v2684_v28 = vadd.f32 %v2683_v30, %v2632_v4 }
 0x3f7   : > { %v2687_v50 = vpop.f32.mrf.mxu1 }
 0x3f8   : > { %v2801_v57 = vadd.f32 %v2684_v28, %v5135_v39  ;;  %v2688_v56 = vadd.f32 %v2687_v50, %v2636_v42  ;;  %v2877_v50 = vpop.permute.xlu0 %2876 }
 0x3f9   : > { %v2689_v13 = vpop.f32.mrf.mxu1 }
 0x3fa   : > { %v2804_v47 = vadd.f32 %v2688_v56, %v2420_v1  ;;  %v2690_v60 = vadd.f32 %v2689_v13, %v2638_v33 }
 0x3fb   : > { %v2691_v43 = vpop.f32.mrf.mxu1 }
 0x3fc   : > { %2816 = vst [vmem:[#allocation3 + $0x28] sm:$0x1] %v2804_v47  ;;  %v2805_v18 = vadd.f32 %v2690_v60, %v2421_v10 }
 0x3fd   : > { %v2692_v24 = vpop.f32.mrf.mxu1 }
 0x3fe   : > { %2817 = vst [vmem:[#allocation3 + $0x48] sm:$0x1] %v2805_v18 }
 0x403   : > { %v2836_v52 = vld [vmem:[#allocation3 + $0x28] sm:$0x1] }
 0x404   : > { %3785 = vrcp.f32 %v2836_v52 }
 0x405   : > { %v2837_v22 = vld [vmem:[#allocation3 + $0x48] sm:$0x1] }
 0x406   : > { %3787 = vrcp.f32 %v2837_v22 }
 0x411   : > { %v3786_v20 = vpop.eup %3785 }
 0x412   : > { %v2847_v39 = vrot.slane %v3786_v20, %v4790_v36 }
 0x413   : > { %v3788_v46 = vpop.eup %3787 }
 0x414   : > { %v2851_v51 = vrot.slane %v3788_v46, %v4790_v36  ;;  %v2860_v54 = vmul.f32 %v2847_v39, %v2796_v23  ;;  %v2864_v0 = vmul.f32 %v2847_v39, %v2800_v40 }
 0x416   : > { %v2861_v16 = vmul.f32 %v2851_v51, %v2797_v8  ;;  %v2865_v58 = vmul.f32 %v2851_v51, %v2801_v57  ;;  %v2869_v59 = vpack.c.bf16 %v2864_v0, %v2860_v54 }
 0x418   : > { %v2870_v9 = vpack.c.bf16 %v2865_v58, %v2861_v16 }
 0x41a   : > { %2896 = vmatprep.subr.bf16.mxu0 %v2870_v9 }
 0x41b   : > { %2897 = vmatpush1.bf16.msra.mxu0 %v2869_v59 }
 0x41e   : > { %3208 = vmatmul.mubr.msk.bf16.vlgmr.msra.gmra.mxu0 %vm477_vm0, %v2868_v6 }
 0x42f   : > { %v2779_v19 = vpop.f32.mrf.mxu1 }
 0x430   : > { %v2780_v31 = vadd.f32 %v2779_v19, %v2728_v44 }
 0x431   : > { %v2781_v7 = vpop.f32.mrf.mxu1 }
 0x432   : > { %v2798_v3 = vadd.f32 %v2780_v31, %v5138_v21  ;;  %v2782_v17 = vadd.f32 %v2781_v7, %v2730_v37  ;;  %v6538_v37 = vld [vmem:[#allocation20_spill] sm:$0xff] }
 0x433   : > { %v2783_v2 = vpop.f32.mrf.mxu1  ;;  %v2423_v63 = vmul.f32 %v6538_v37, %v2390_v15 }
 0x434   : > { %v2799_v41 = vadd.f32 %v2782_v17, %v5141_v34  ;;  %v2784_v45 = vadd.f32 %v2783_v2, %v2732_v27 }
 0x435   : > { %v2785_v12 = vpop.f32.mrf.mxu1 }
 0x436   : > { %v2802_v4 = vadd.f32 %v2784_v45, %v5138_v21  ;;  %v2786_v42 = vadd.f32 %v2785_v12, %v2734_v14 }
 0x437   : > { %v2789_v33 = vpop.f32.mrf.mxu1 }
 0x438   : > { %v2803_v35 = vadd.f32 %v2786_v42, %v5141_v34  ;;  %v2790_v44 = vadd.f32 %v2789_v33, %v5587_v38 }
 0x439   : > { %v2791_v48 = vpop.f32.mrf.mxu1 }
 0x43a   : > { %v2806_v62 = vadd.f32 %v2790_v44, %v2422_v61  ;;  %v2792_v53 = vadd.f32 %v2791_v48, %v5589_v5 }
 0x43b   : > { %v2793_v27 = vpop.f32.mrf.mxu1 }
 0x43c   : > { %2818 = vst [vmem:[#allocation3 + $0x10] sm:$0x1] %v2806_v62  ;;  %v2807_v23 = vadd.f32 %v2792_v53, %v2423_v63 }
 0x43d   : > { %v2794_v26 = vpop.f32.mrf.mxu1 }
 0x43e   : > { %2819 = vst [vmem:[#allocation3 + $0x40] sm:$0x1] %v2807_v23 }
 0x443   : > { %v2838_v21 = vld [vmem:[#allocation3 + $0x10] sm:$0x1] }
 0x444   : > { %3789 = vrcp.f32 %v2838_v21 }
 0x445   : > { %v2839_v14 = vld [vmem:[#allocation3 + $0x40] sm:$0x1] }
 0x446   : > { %3791 = vrcp.f32 %v2839_v14 }
 0x451   : > { %v3790_v34 = vpop.eup %3789 }
 0x452   : > { %v2855_v32 = vrot.slane %v3790_v34, %v4790_v36 }
 0x453   : > { %v3792_v8 = vpop.eup %3791 }
 0x454   : > { %v2859_v38 = vrot.slane %v3792_v8, %v4790_v36  ;;  %v2862_v25 = vmul.f32 %v2855_v32, %v2798_v3  ;;  %v2866_v30 = vmul.f32 %v2855_v32, %v2802_v4 }
 0x456   : > { %v2863_v55 = vmul.f32 %v2859_v38, %v2799_v41  ;;  %v2867_v5 = vmul.f32 %v2859_v38, %v2803_v35  ;;  %v2871_v28 = vpack.c.bf16 %v2866_v30, %v2862_v25 }
 0x458   : > { %v2872_v40 = vpack.c.bf16 %v2867_v5, %v2863_v55 }
 0x45a   : > { %2937 = vmatprep.subr.bf16.mxu1 %v2872_v40 }
 0x45b   : > { %2938 = vmatpush1.bf16.msra.mxu1 %v2871_v28 }
 0x45e   : > { %3209 = vmatmul.mubr.msk.bf16.vlgmr.msra.gmra.mxu1 %vm477_vm0, %v2868_v6 }
 0x4de   : > { %v2916_v29 = vpop.f32.mrf.mxu0 }
 0x4df   : > { %v2917_v57 = vadd.f32 %v2916_v29, %v2877_v50 }
 0x4e0   : > { %v2918_v1 = vpop.f32.mrf.mxu0 }
 0x4e1   : > { %v2919_v56 = vadd.f32 %v2918_v1, %v2877_v50  ;;  %v2964_v13 = vmul.f32 0.1, %v2917_v57 }
 0x4e2   : > { %v2920_v47 = vpop.f32.mrf.mxu0 }
 0x4e3   : > { %v2965_v36 = vmul.f32 0.1, %v2919_v56  ;;  %v2968_v10 = vmax.f32 %v2917_v57, %v2964_v13 }
 0x4e4   : > { %v2921_v60 = vpop.f32.mrf.mxu0 }
 0x4e5   : > { %v2969_v43 = vmax.f32 %v2919_v56, %v2965_v36 }
 0x4e7   : > { %v3217_v18 = vpack.c.bf16 %v2969_v43, %v2968_v10 }
 0x4e9   : > { %2988 = vst [vmem:[%s341_s15] sm:$0xff] %v3217_v18 }
 0x51e   : > { %v2957_v24 = vpop.f32.mrf.mxu1 }
 0x51f   : > { %v2958_v52 = vadd.f32 %v2957_v24, %v2877_v50 }
 0x520   : > { %v2959_v22 = vpop.f32.mrf.mxu1 }
 0x521   : > { %v2960_v20 = vadd.f32 %v2959_v22, %v2877_v50  ;;  %v2966_v39 = vmul.f32 0.1, %v2958_v52 }
 0x522   : > { %v2961_v46 = vpop.f32.mrf.mxu1 }
 0x523   : > { %v2967_v51 = vmul.f32 0.1, %v2960_v20  ;;  %v2970_v0 = vmax.f32 %v2958_v52, %v2966_v39 }
 0x524   : > { %v2962_v54 = vpop.f32.mrf.mxu1 }
 0x525   : > { %v2971_v16 = vmax.f32 %v2960_v20, %v2967_v51 }
 0x527   : > { %v3218_v58 = vpack.c.bf16 %v2971_v16, %v2970_v0 }
 0x529   : > { %2989 = vst [vmem:[%s341_s15 + $0x8] sm:$0xff] %v3218_v58 }
 0x52a PF: > { %s15_s20 = sadd.s32 1, %s3816_s20   ;;  %s6539_s18 = smov %s3812_s19 }
 0x52b   : > { %p12_p5 = scmp.ge.s32.totalorder %s15_s20, 4   ;;  %s6540_s19 = smov %s6542_s21 }
 0x52d   :  { %14 = sbr.rel (!%p12_p5) target bundleno = 2 (0x2), region = 84 }

</bundles_post_ra>
